<compile_context>
chip_gen: v7x
topology: tpu7x:2x2x1
jax: 0.10.0
libtpu: 0.0.40
codegen_flags: <defaults>
</compile_context>

<pallas_src>
import jax
import jax.numpy as jnp
import numpy as np
from jax import lax
from jax.experimental import pallas as pl
from jax.experimental.pallas import tpu as pltpu


# ------------------------------ fused kernel -------------------------------

def _lenet_kernel(xe_ref, xo_ref,
                  t1_ref, b1_ref, s1_ref,
                  t2_ref, b2_ref, s2_ref,
                  g1_ref, fb1_ref, g2_ref, fb2_ref, g3_ref, fb3_ref,
                  o_ref, m2_s, zw_s):
    """Whole LeNet forward for one image (grid = batch)."""

    def dot(a, b):
        return jnp.dot(a, b, preferred_element_type=jnp.float32)

    # ---- conv1 (5x5, 3->6, valid) fused with the H half of the 2x2 pool ----
    # xe/xo: even/odd input rows, (16, 128), lane = w*4 + cin (cin padded to 4)
    xe0 = xe_ref[pl.ds(0, 14), :]
    xe1 = xe_ref[pl.ds(1, 14), :]
    xe2 = xe_ref[pl.ds(2, 14), :]
    xo0 = xo_ref[pl.ds(0, 14), :]
    xo1 = xo_ref[pl.ds(1, 14), :]
    xo2 = xo_ref[pl.ds(2, 14), :]

    # even / odd conv1 output rows, (14, 224), lane = ow*8 + cout (cout pad->8)
    ye = (dot(xe0, t1_ref[0]) + dot(xo0, t1_ref[1]) + dot(xe1, t1_ref[2]) +
          dot(xo1, t1_ref[3]) + dot(xe2, t1_ref[4]))
    yo = (dot(xo0, t1_ref[0]) + dot(xe1, t1_ref[1]) + dot(xo1, t1_ref[2]) +
          dot(xe2, t1_ref[3]) + dot(xo2, t1_ref[4]))

    # bias + ReLU + H-pool (max over conv1 row pairs) -> (14, 224)
    p1 = jnp.maximum(jnp.maximum(ye, yo) + b1_ref[...], 0.0)
    # W-pool: max with an 8-lane-shifted copy (shift done as a constant matmul);
    # result is meaningful at lanes 16*w2 + c, garbage lanes hit zero T2 rows.
    m2_s[...] = jnp.maximum(p1, dot(p1, s1_ref[...]))        # (14, 224)

    # ---- conv2 (5x5, 6->16, valid): y2 (10, 160), lane = ow2*16 + cout ----
    y2 = dot(m2_s[pl.ds(0, 10), :], t2_ref[0])
    for kh in range(1, 5):
        y2 = y2 + dot(m2_s[pl.ds(kh, 10), :], t2_ref[kh])
    z = jnp.maximum(y2 + b2_ref[...], 0.0)                   # bias + ReLU
    # W-pool via 16-lane shift matmul; meaningful at lanes 32*w + cout
    zw_s[...] = jnp.maximum(z, dot(z, s2_ref[...]))          # (10, 160)

    # ---- flatten (torch CHW order) + fc1, with conv2's H-pool folded into
    #      five per-row-pair dots (rows 2h, 2h+1 of the 10 conv2 output rows)
    a1 = fb1_ref[...]                                        # (1, 128)
    for h in range(5):
        rp = jnp.maximum(zw_s[pl.ds(2 * h, 1), :],
                         zw_s[pl.ds(2 * h + 1, 1), :])       # (1, 160)
        a1 = a1 + dot(rp, g1_ref[h])
    a1 = jnp.maximum(a1, 0.0)                                # fc1 + ReLU (pad cols stay 0)

    # ---- fc2 + ReLU, fc3 ----
    a2 = jnp.maximum(dot(a1, g2_ref[...]) + fb2_ref[...], 0.0)
    a3 = dot(a2, g3_ref[...]) + fb3_ref[...]                 # (1, 128); cols >= 10 are 0

    # lane-dense (8, 128) store; row 0 carries the logits
    o_ref[...] = jnp.broadcast_to(a3, (8, 128)).astype(o_ref.dtype)


# ------------------------- one-time parameter packing -----------------------

def prepare_params(params):
    """Pack torch-layout weights into lane-dense constant matrices (done once)."""
    w1, b1, w2, b2, fw1, fb1, fw2, fb2, fw3, fb3 = [
        np.asarray(p, np.float32) for p in params]

    # conv1 row-Toeplitz: T1[kh][w*4 + ci, ow*8 + co] = W1[co, ci, kh, w-ow]
    t1 = np.zeros((5, 32, 4, 28, 8), np.float32)
    for kh in range(5):
        for kw in range(5):
            wt = w1[:, :, kh, kw].T                          # (ci=3, co=6)
            for ow in range(28):
                t1[kh, ow + kw, :3, ow, :6] = wt
    t1 = t1.reshape(5, 128, 224)

    b1row = np.zeros((1, 28, 8), np.float32)
    b1row[0, :, :6] = b1
    b1row = b1row.reshape(1, 224)

    # lane shift-by-8 permutation (conv1 W-pool pair)
    s1 = np.zeros((224, 224), np.float32)
    s1[np.arange(8, 224), np.arange(0, 216)] = 1.0

    # conv2 row-Toeplitz over the un-compacted pooled lanes:
    # rows: 16*w2 + ci (w2=0..13, ci<6), cols: ow2*16 + co
    t2 = np.zeros((5, 28, 8, 10, 16), np.float32)
    for kh in range(5):
        for kw in range(5):
            wt = w2[:, :, kh, kw].T                          # (ci=6, co=16)
            for ow in range(10):
                t2[kh, 2 * (ow + kw), :6, ow, :] = wt
    t2 = t2.reshape(5, 224, 160)

    b2row = np.zeros((1, 10, 16), np.float32)
    b2row[0, :, :] = b2
    b2row = b2row.reshape(1, 160)

    # lane shift-by-16 permutation (conv2 W-pool pair)
    s2 = np.zeros((160, 160), np.float32)
    s2[np.arange(16, 160), np.arange(0, 144)] = 1.0

    # fc1 folded with conv2 H-pool + torch CHW flatten:
    # G1[h][32*w + co, o] = FC1[o, co*25 + h*5 + w]
    g1 = np.zeros((5, 10, 16, 128), np.float32)
    for h in range(5):
        for w in range(5):
            cols = np.arange(16) * 25 + h * 5 + w
            g1[h, 2 * w, :, :120] = fw1[:, cols].T           # (16, 120)
    g1 = g1.reshape(5, 160, 128)

    fb1row = np.zeros((1, 128), np.float32); fb1row[0, :120] = fb1
    g2 = np.zeros((128, 128), np.float32);   g2[:120, :84] = fw2.T
    fb2row = np.zeros((1, 128), np.float32); fb2row[0, :84] = fb2
    g3 = np.zeros((128, 128), np.float32);   g3[:84, :10] = fw3.T
    fb3row = np.zeros((1, 128), np.float32); fb3row[0, :10] = fb3

    packed = (t1, b1row, s1, t2, b2row, s2,
              g1, fb1row, g2, fb2row, g3, fb3row)
    return tuple(jnp.asarray(a) for a in packed)


# --------------------------------- forward ---------------------------------

def lenet_forward(x_nchw, prep):
    (t1, b1row, s1, t2, b2row, s2,
     g1, fb1row, g2, fb2row, g3, fb3row) = prep
    n = x_nchw.shape[0]

    # tiny trace-time input re-layout: NCHW -> (n, 32, 128) with lane = w*4+cin,
    # then split rows by parity (feeds the fused H-pool of conv1).
    x = jnp.transpose(x_nchw, (0, 2, 3, 1))                  # (n, 32, 32, 3)
    x = jnp.pad(x, ((0, 0), (0, 0), (0, 0), (0, 1)))         # cin 3 -> 4
    x = x.reshape(n, 32, 128)
    xe = x[:, 0::2, :].reshape(n * 16, 128)
    xo = x[:, 1::2, :].reshape(n * 16, 128)

    out = pl.pallas_call(
        _lenet_kernel,
        out_shape=jax.ShapeDtypeStruct((n * 8, 128), jnp.float32),
        grid=(n,),
        in_specs=[
            pl.BlockSpec((16, 128), lambda i: (i, 0)),       # x even rows
            pl.BlockSpec((16, 128), lambda i: (i, 0)),       # x odd rows
            pl.BlockSpec((5, 128, 224), lambda i: (0, 0, 0)),  # conv1 Toeplitz
            pl.BlockSpec((1, 224), lambda i: (0, 0)),          # conv1 bias row
            pl.BlockSpec((224, 224), lambda i: (0, 0)),        # shift-by-8
            pl.BlockSpec((5, 224, 160), lambda i: (0, 0, 0)),  # conv2 Toeplitz
            pl.BlockSpec((1, 160), lambda i: (0, 0)),          # conv2 bias row
            pl.BlockSpec((160, 160), lambda i: (0, 0)),        # shift-by-16
            pl.BlockSpec((5, 160, 128), lambda i: (0, 0, 0)),  # fc1 (folded)
            pl.BlockSpec((1, 128), lambda i: (0, 0)),          # fc1 bias
            pl.BlockSpec((128, 128), lambda i: (0, 0)),        # fc2 weights
            pl.BlockSpec((1, 128), lambda i: (0, 0)),          # fc2 bias
            pl.BlockSpec((128, 128), lambda i: (0, 0)),        # fc3 weights
            pl.BlockSpec((1, 128), lambda i: (0, 0)),          # fc3 bias
        ],
        out_specs=pl.BlockSpec((8, 128), lambda i: (i, 0)),
        scratch_shapes=[pltpu.VMEM((14, 224), jnp.float32),    # pooled conv1
                        pltpu.VMEM((10, 160), jnp.float32)],   # relu/W-pooled conv2
        compiler_params=pltpu.CompilerParams(
            dimension_semantics=("parallel",)),
    )(xe, xo, t1, b1row, s1, t2, b2row, s2,
      g1, fb1row, g2, fb2row, g3, fb3row)

    return out.reshape(n, 8, 128)[:, 0, :10]


# ---------------------- pure-JAX reference (for check) ---------------------

def reference_forward(x_nchw, params):
    w1, b1, w2, b2, fw1, fb1, fw2, fb2, fw3, fb3 = params

    def conv(x, w, b):
        dn = lax.conv_dimension_numbers(x.shape, w.shape,
                                        ('NCHW', 'OIHW', 'NCHW'))
        y = lax.conv_general_dilated(x, w, (1, 1), 'VALID',
                                     dimension_numbers=dn)
        return jax.nn.relu(y + b[None, :, None, None])

    def pool(x):
        return lax.reduce_window(x, -jnp.inf, lax.max,
                                 (1, 1, 2, 2), (1, 1, 2, 2), 'VALID')

    y = pool(conv(x_nchw, w1, b1))
    y = pool(conv(y, w2, b2))
    y = y.reshape(y.shape[0], -1)
    y = jax.nn.relu(y @ fw1.T + fb1)
    y = jax.nn.relu(y @ fw2.T + fb2)
    return y @ fw3.T + fb3


# ----------------------------------- main ----------------------------------

if __name__ == "__main__":
    key = jax.random.PRNGKey(0)
    keys = jax.random.split(key, 11)

    def init(k, shape, fan_in):
        bound = float(1.0 / (fan_in ** 0.5))
        return jax.random.uniform(k, shape, jnp.float32, -bound, bound)

    # Shapes follow nn.Conv2d / nn.Linear in the PyTorch module.
    w1 = init(keys[0], (6, 3, 5, 5), 3 * 25)
    b1 = init(keys[1], (6,), 3 * 25)
    w2 = init(keys[2], (16, 6, 5, 5), 6 * 25)
    b2 = init(keys[3], (16,), 6 * 25)
    fw1 = init(keys[4], (120, 400), 400)
    fb1 = init(keys[5], (120,), 400)
    fw2 = init(keys[6], (84, 120), 120)
    fb2 = init(keys[7], (84,), 120)
    fw3 = init(keys[8], (10, 84), 84)
    fb3 = init(keys[9], (10,), 84)
    params = (w1, b1, w2, b2, fw1, fb1, fw2, fb2, fw3, fb3)

    prep = prepare_params(params)          # one-time weight packing

    # CIFAR-10 geometry is required by fc1 (16*5*5); small batch = 2.
    x = jax.random.normal(keys[10], (2, 3, 32, 32), jnp.float32)

    fwd = jax.jit(lenet_forward)
    out = jax.block_until_ready(fwd(x, prep))
    ref = jax.block_until_ready(reference_forward(x, params))

    assert out.shape == (2, 10), out.shape
    max_err = float(jnp.max(jnp.abs(out - ref)))
    assert jnp.allclose(out, ref, rtol=2e-4, atol=2e-4), max_err
    print("KERNEL_OK")
</pallas_src>

<mosaic_0001>
module attributes {stable_mosaic.version = 11 : i64} {
  func.func @_lenet_kernel(%arg0: i32, %arg1: memref<16x128xf32, #tpu.memory_space<vmem>>, %arg2: memref<16x128xf32, #tpu.memory_space<vmem>>, %arg3: memref<5x128x224xf32, #tpu.memory_space<vmem>>, %arg4: memref<1x224xf32, #tpu.memory_space<vmem>>, %arg5: memref<224x224xf32, #tpu.memory_space<vmem>>, %arg6: memref<5x224x160xf32, #tpu.memory_space<vmem>>, %arg7: memref<1x160xf32, #tpu.memory_space<vmem>>, %arg8: memref<160x160xf32, #tpu.memory_space<vmem>>, %arg9: memref<5x160x128xf32, #tpu.memory_space<vmem>>, %arg10: memref<1x128xf32, #tpu.memory_space<vmem>>, %arg11: memref<128x128xf32, #tpu.memory_space<vmem>>, %arg12: memref<1x128xf32, #tpu.memory_space<vmem>>, %arg13: memref<128x128xf32, #tpu.memory_space<vmem>>, %arg14: memref<1x128xf32, #tpu.memory_space<vmem>>, %arg15: memref<8x128xf32, #tpu.memory_space<vmem>>, %arg16: memref<14x224xf32, #tpu.memory_space<vmem>>, %arg17: memref<10x160xf32, #tpu.memory_space<vmem>>) attributes {dimension_semantics = [#tpu.dimension_semantics<parallel>], iteration_bounds = array<i64: 2>, scalar_prefetch = 0 : i64, scratch_operands = 2 : i64, tpu.core_type = #tpu.core_type<tc>, window_params = [{transform_indices = @transform_0, window_bounds = array<i64: 16, 128>}, {transform_indices = @transform_1, window_bounds = array<i64: 16, 128>}, {pipeline_mode = #tpu.pipeline_mode<synchronous>, transform_indices = @transform_2, window_bounds = array<i64: 5, 128, 224>}, {pipeline_mode = #tpu.pipeline_mode<synchronous>, transform_indices = @transform_3, window_bounds = array<i64: 1, 224>}, {pipeline_mode = #tpu.pipeline_mode<synchronous>, transform_indices = @transform_4, window_bounds = array<i64: 224, 224>}, {pipeline_mode = #tpu.pipeline_mode<synchronous>, transform_indices = @transform_5, window_bounds = array<i64: 5, 224, 160>}, {pipeline_mode = #tpu.pipeline_mode<synchronous>, transform_indices = @transform_6, window_bounds = array<i64: 1, 160>}, {pipeline_mode = #tpu.pipeline_mode<synchronous>, transform_indices = @transform_7, window_bounds = array<i64: 160, 160>}, {pipeline_mode = #tpu.pipeline_mode<synchronous>, transform_indices = @transform_8, window_bounds = array<i64: 5, 160, 128>}, {pipeline_mode = #tpu.pipeline_mode<synchronous>, transform_indices = @transform_9, window_bounds = array<i64: 1, 128>}, {pipeline_mode = #tpu.pipeline_mode<synchronous>, transform_indices = @transform_10, window_bounds = array<i64: 128, 128>}, {pipeline_mode = #tpu.pipeline_mode<synchronous>, transform_indices = @transform_11, window_bounds = array<i64: 1, 128>}, {pipeline_mode = #tpu.pipeline_mode<synchronous>, transform_indices = @transform_12, window_bounds = array<i64: 128, 128>}, {pipeline_mode = #tpu.pipeline_mode<synchronous>, transform_indices = @transform_13, window_bounds = array<i64: 1, 128>}, {transform_indices = @transform_14, window_bounds = array<i64: 8, 128>}]} {
    %c0 = arith.constant 0 : index
    %c0_0 = arith.constant 0 : index
    %0 = vector.load %arg1[%c0, %c0_0] : memref<16x128xf32, #tpu.memory_space<vmem>>, vector<14x128xf32>
    %c1 = arith.constant 1 : index
    %c0_1 = arith.constant 0 : index
    %1 = vector.load %arg1[%c1, %c0_1] : memref<16x128xf32, #tpu.memory_space<vmem>>, vector<14x128xf32>
    %c2 = arith.constant 2 : index
    %c0_2 = arith.constant 0 : index
    %2 = vector.load %arg1[%c2, %c0_2] : memref<16x128xf32, #tpu.memory_space<vmem>>, vector<14x128xf32>
    %c0_3 = arith.constant 0 : index
    %c0_4 = arith.constant 0 : index
    %3 = vector.load %arg2[%c0_3, %c0_4] : memref<16x128xf32, #tpu.memory_space<vmem>>, vector<14x128xf32>
    %c1_5 = arith.constant 1 : index
    %c0_6 = arith.constant 0 : index
    %4 = vector.load %arg2[%c1_5, %c0_6] : memref<16x128xf32, #tpu.memory_space<vmem>>, vector<14x128xf32>
    %c2_7 = arith.constant 2 : index
    %c0_8 = arith.constant 0 : index
    %5 = vector.load %arg2[%c2_7, %c0_8] : memref<16x128xf32, #tpu.memory_space<vmem>>, vector<14x128xf32>
    %c0_9 = arith.constant 0 : index
    %c0_10 = arith.constant 0 : index
    %c0_11 = arith.constant 0 : index
    %6 = vector.load %arg3[%c0_9, %c0_10, %c0_11] : memref<5x128x224xf32, #tpu.memory_space<vmem>>, vector<1x128x224xf32>
    %7 = vector.shape_cast %6 : vector<1x128x224xf32> to vector<128x224xf32>
    %cst = arith.constant dense<0.000000e+00> : vector<14x224xf32>
    %8 = tpu.matmul %0, %7, %cst {dimension_numbers = #tpu.dot_dimension_numbers<[1], [0], [0], [1], [0, 0, 1, 1], [], []>} : vector<14x128xf32>, vector<128x224xf32>, vector<14x224xf32> -> vector<14x224xf32>
    %c1_12 = arith.constant 1 : index
    %c0_13 = arith.constant 0 : index
    %c0_14 = arith.constant 0 : index
    %9 = vector.load %arg3[%c1_12, %c0_13, %c0_14] : memref<5x128x224xf32, #tpu.memory_space<vmem>>, vector<1x128x224xf32>
    %10 = vector.shape_cast %9 : vector<1x128x224xf32> to vector<128x224xf32>
    %cst_15 = arith.constant dense<0.000000e+00> : vector<14x224xf32>
    %11 = tpu.matmul %3, %10, %cst_15 {dimension_numbers = #tpu.dot_dimension_numbers<[1], [0], [0], [1], [0, 0, 1, 1], [], []>} : vector<14x128xf32>, vector<128x224xf32>, vector<14x224xf32> -> vector<14x224xf32>
    %12 = arith.addf %8, %11 : vector<14x224xf32>
    %c2_16 = arith.constant 2 : index
    %c0_17 = arith.constant 0 : index
    %c0_18 = arith.constant 0 : index
    %13 = vector.load %arg3[%c2_16, %c0_17, %c0_18] : memref<5x128x224xf32, #tpu.memory_space<vmem>>, vector<1x128x224xf32>
    %14 = vector.shape_cast %13 : vector<1x128x224xf32> to vector<128x224xf32>
    %cst_19 = arith.constant dense<0.000000e+00> : vector<14x224xf32>
    %15 = tpu.matmul %1, %14, %cst_19 {dimension_numbers = #tpu.dot_dimension_numbers<[1], [0], [0], [1], [0, 0, 1, 1], [], []>} : vector<14x128xf32>, vector<128x224xf32>, vector<14x224xf32> -> vector<14x224xf32>
    %16 = arith.addf %12, %15 : vector<14x224xf32>
    %c3 = arith.constant 3 : index
    %c0_20 = arith.constant 0 : index
    %c0_21 = arith.constant 0 : index
    %17 = vector.load %arg3[%c3, %c0_20, %c0_21] : memref<5x128x224xf32, #tpu.memory_space<vmem>>, vector<1x128x224xf32>
    %18 = vector.shape_cast %17 : vector<1x128x224xf32> to vector<128x224xf32>
    %cst_22 = arith.constant dense<0.000000e+00> : vector<14x224xf32>
    %19 = tpu.matmul %4, %18, %cst_22 {dimension_numbers = #tpu.dot_dimension_numbers<[1], [0], [0], [1], [0, 0, 1, 1], [], []>} : vector<14x128xf32>, vector<128x224xf32>, vector<14x224xf32> -> vector<14x224xf32>
    %20 = arith.addf %16, %19 : vector<14x224xf32>
    %c4 = arith.constant 4 : index
    %c0_23 = arith.constant 0 : index
    %c0_24 = arith.constant 0 : index
    %21 = vector.load %arg3[%c4, %c0_23, %c0_24] : memref<5x128x224xf32, #tpu.memory_space<vmem>>, vector<1x128x224xf32>
    %22 = vector.shape_cast %21 : vector<1x128x224xf32> to vector<128x224xf32>
    %cst_25 = arith.constant dense<0.000000e+00> : vector<14x224xf32>
    %23 = tpu.matmul %2, %22, %cst_25 {dimension_numbers = #tpu.dot_dimension_numbers<[1], [0], [0], [1], [0, 0, 1, 1], [], []>} : vector<14x128xf32>, vector<128x224xf32>, vector<14x224xf32> -> vector<14x224xf32>
    %24 = arith.addf %20, %23 : vector<14x224xf32>
    %c0_26 = arith.constant 0 : index
    %c0_27 = arith.constant 0 : index
    %c0_28 = arith.constant 0 : index
    %25 = vector.load %arg3[%c0_26, %c0_27, %c0_28] : memref<5x128x224xf32, #tpu.memory_space<vmem>>, vector<1x128x224xf32>
    %26 = vector.shape_cast %25 : vector<1x128x224xf32> to vector<128x224xf32>
    %cst_29 = arith.constant dense<0.000000e+00> : vector<14x224xf32>
    %27 = tpu.matmul %3, %26, %cst_29 {dimension_numbers = #tpu.dot_dimension_numbers<[1], [0], [0], [1], [0, 0, 1, 1], [], []>} : vector<14x128xf32>, vector<128x224xf32>, vector<14x224xf32> -> vector<14x224xf32>
    %c1_30 = arith.constant 1 : index
    %c0_31 = arith.constant 0 : index
    %c0_32 = arith.constant 0 : index
    %28 = vector.load %arg3[%c1_30, %c0_31, %c0_32] : memref<5x128x224xf32, #tpu.memory_space<vmem>>, vector<1x128x224xf32>
    %29 = vector.shape_cast %28 : vector<1x128x224xf32> to vector<128x224xf32>
    %cst_33 = arith.constant dense<0.000000e+00> : vector<14x224xf32>
    %30 = tpu.matmul %1, %29, %cst_33 {dimension_numbers = #tpu.dot_dimension_numbers<[1], [0], [0], [1], [0, 0, 1, 1], [], []>} : vector<14x128xf32>, vector<128x224xf32>, vector<14x224xf32> -> vector<14x224xf32>
    %31 = arith.addf %27, %30 : vector<14x224xf32>
    %c2_34 = arith.constant 2 : index
    %c0_35 = arith.constant 0 : index
    %c0_36 = arith.constant 0 : index
    %32 = vector.load %arg3[%c2_34, %c0_35, %c0_36] : memref<5x128x224xf32, #tpu.memory_space<vmem>>, vector<1x128x224xf32>
    %33 = vector.shape_cast %32 : vector<1x128x224xf32> to vector<128x224xf32>
    %cst_37 = arith.constant dense<0.000000e+00> : vector<14x224xf32>
    %34 = tpu.matmul %4, %33, %cst_37 {dimension_numbers = #tpu.dot_dimension_numbers<[1], [0], [0], [1], [0, 0, 1, 1], [], []>} : vector<14x128xf32>, vector<128x224xf32>, vector<14x224xf32> -> vector<14x224xf32>
    %35 = arith.addf %31, %34 : vector<14x224xf32>
    %c3_38 = arith.constant 3 : index
    %c0_39 = arith.constant 0 : index
    %c0_40 = arith.constant 0 : index
    %36 = vector.load %arg3[%c3_38, %c0_39, %c0_40] : memref<5x128x224xf32, #tpu.memory_space<vmem>>, vector<1x128x224xf32>
    %37 = vector.shape_cast %36 : vector<1x128x224xf32> to vector<128x224xf32>
    %cst_41 = arith.constant dense<0.000000e+00> : vector<14x224xf32>
    %38 = tpu.matmul %2, %37, %cst_41 {dimension_numbers = #tpu.dot_dimension_numbers<[1], [0], [0], [1], [0, 0, 1, 1], [], []>} : vector<14x128xf32>, vector<128x224xf32>, vector<14x224xf32> -> vector<14x224xf32>
    %39 = arith.addf %35, %38 : vector<14x224xf32>
    %c4_42 = arith.constant 4 : index
    %c0_43 = arith.constant 0 : index
    %c0_44 = arith.constant 0 : index
    %40 = vector.load %arg3[%c4_42, %c0_43, %c0_44] : memref<5x128x224xf32, #tpu.memory_space<vmem>>, vector<1x128x224xf32>
    %41 = vector.shape_cast %40 : vector<1x128x224xf32> to vector<128x224xf32>
    %cst_45 = arith.constant dense<0.000000e+00> : vector<14x224xf32>
    %42 = tpu.matmul %5, %41, %cst_45 {dimension_numbers = #tpu.dot_dimension_numbers<[1], [0], [0], [1], [0, 0, 1, 1], [], []>} : vector<14x128xf32>, vector<128x224xf32>, vector<14x224xf32> -> vector<14x224xf32>
    %43 = arith.addf %39, %42 : vector<14x224xf32>
    %44 = arith.maximumf %24, %43 : vector<14x224xf32>
    %c0_46 = arith.constant 0 : index
    %c0_47 = arith.constant 0 : index
    %45 = vector.load %arg4[%c0_46, %c0_47] : memref<1x224xf32, #tpu.memory_space<vmem>>, vector<1x224xf32>
    %46 = vector.broadcast %45 : vector<1x224xf32> to vector<14x224xf32>
    %47 = arith.addf %44, %46 : vector<14x224xf32>
    %cst_48 = arith.constant 0.000000e+00 : f32
    %48 = vector.broadcast %cst_48 : f32 to vector<14x224xf32>
    %49 = arith.maximumf %47, %48 : vector<14x224xf32>
    %c0_49 = arith.constant 0 : index
    %c0_50 = arith.constant 0 : index
    %50 = vector.load %arg5[%c0_49, %c0_50] : memref<224x224xf32, #tpu.memory_space<vmem>>, vector<224x224xf32>
    %cst_51 = arith.constant dense<0.000000e+00> : vector<14x224xf32>
    %51 = tpu.matmul %49, %50, %cst_51 {dimension_numbers = #tpu.dot_dimension_numbers<[1], [0], [0], [1], [0, 0, 1, 1], [], []>} : vector<14x224xf32>, vector<224x224xf32>, vector<14x224xf32> -> vector<14x224xf32>
    %52 = arith.maximumf %49, %51 : vector<14x224xf32>
    %c0_52 = arith.constant 0 : index
    %c0_53 = arith.constant 0 : index
    %53 = vector.load %arg16[%c0_52, %c0_53] : memref<14x224xf32, #tpu.memory_space<vmem>>, vector<14x224xf32>
    tpu.vector_store %arg16[%c0_52, %c0_53], %52 {strides = array<i32>} : memref<14x224xf32, #tpu.memory_space<vmem>>, vector<14x224xf32>,
    %c0_54 = arith.constant 0 : index
    %c0_55 = arith.constant 0 : index
    %54 = vector.load %arg16[%c0_54, %c0_55] : memref<14x224xf32, #tpu.memory_space<vmem>>, vector<10x224xf32>
    %c0_56 = arith.constant 0 : index
    %c0_57 = arith.constant 0 : index
    %c0_58 = arith.constant 0 : index
    %55 = vector.load %arg6[%c0_56, %c0_57, %c0_58] : memref<5x224x160xf32, #tpu.memory_space<vmem>>, vector<1x224x160xf32>
    %56 = vector.shape_cast %55 : vector<1x224x160xf32> to vector<224x160xf32>
    %cst_59 = arith.constant dense<0.000000e+00> : vector<10x160xf32>
    %57 = tpu.matmul %54, %56, %cst_59 {dimension_numbers = #tpu.dot_dimension_numbers<[1], [0], [0], [1], [0, 0, 1, 1], [], []>} : vector<10x224xf32>, vector<224x160xf32>, vector<10x160xf32> -> vector<10x160xf32>
    %c1_60 = arith.constant 1 : index
    %c0_61 = arith.constant 0 : index
    %58 = vector.load %arg16[%c1_60, %c0_61] : memref<14x224xf32, #tpu.memory_space<vmem>>, vector<10x224xf32>
    %c1_62 = arith.constant 1 : index
    %c0_63 = arith.constant 0 : index
    %c0_64 = arith.constant 0 : index
    %59 = vector.load %arg6[%c1_62, %c0_63, %c0_64] : memref<5x224x160xf32, #tpu.memory_space<vmem>>, vector<1x224x160xf32>
    %60 = vector.shape_cast %59 : vector<1x224x160xf32> to vector<224x160xf32>
    %cst_65 = arith.constant dense<0.000000e+00> : vector<10x160xf32>
    %61 = tpu.matmul %58, %60, %cst_65 {dimension_numbers = #tpu.dot_dimension_numbers<[1], [0], [0], [1], [0, 0, 1, 1], [], []>} : vector<10x224xf32>, vector<224x160xf32>, vector<10x160xf32> -> vector<10x160xf32>
    %62 = arith.addf %57, %61 : vector<10x160xf32>
    %c2_66 = arith.constant 2 : index
    %c0_67 = arith.constant 0 : index
    %63 = vector.load %arg16[%c2_66, %c0_67] : memref<14x224xf32, #tpu.memory_space<vmem>>, vector<10x224xf32>
    %c2_68 = arith.constant 2 : index
    %c0_69 = arith.constant 0 : index
    %c0_70 = arith.constant 0 : index
    %64 = vector.load %arg6[%c2_68, %c0_69, %c0_70] : memref<5x224x160xf32, #tpu.memory_space<vmem>>, vector<1x224x160xf32>
    %65 = vector.shape_cast %64 : vector<1x224x160xf32> to vector<224x160xf32>
    %cst_71 = arith.constant dense<0.000000e+00> : vector<10x160xf32>
    %66 = tpu.matmul %63, %65, %cst_71 {dimension_numbers = #tpu.dot_dimension_numbers<[1], [0], [0], [1], [0, 0, 1, 1], [], []>} : vector<10x224xf32>, vector<224x160xf32>, vector<10x160xf32> -> vector<10x160xf32>
    %67 = arith.addf %62, %66 : vector<10x160xf32>
    %c3_72 = arith.constant 3 : index
    %c0_73 = arith.constant 0 : index
    %68 = vector.load %arg16[%c3_72, %c0_73] : memref<14x224xf32, #tpu.memory_space<vmem>>, vector<10x224xf32>
    %c3_74 = arith.constant 3 : index
    %c0_75 = arith.constant 0 : index
    %c0_76 = arith.constant 0 : index
    %69 = vector.load %arg6[%c3_74, %c0_75, %c0_76] : memref<5x224x160xf32, #tpu.memory_space<vmem>>, vector<1x224x160xf32>
    %70 = vector.shape_cast %69 : vector<1x224x160xf32> to vector<224x160xf32>
    %cst_77 = arith.constant dense<0.000000e+00> : vector<10x160xf32>
    %71 = tpu.matmul %68, %70, %cst_77 {dimension_numbers = #tpu.dot_dimension_numbers<[1], [0], [0], [1], [0, 0, 1, 1], [], []>} : vector<10x224xf32>, vector<224x160xf32>, vector<10x160xf32> -> vector<10x160xf32>
    %72 = arith.addf %67, %71 : vector<10x160xf32>
    %c4_78 = arith.constant 4 : index
    %c0_79 = arith.constant 0 : index
    %73 = vector.load %arg16[%c4_78, %c0_79] : memref<14x224xf32, #tpu.memory_space<vmem>>, vector<10x224xf32>
    %c4_80 = arith.constant 4 : index
    %c0_81 = arith.constant 0 : index
    %c0_82 = arith.constant 0 : index
    %74 = vector.load %arg6[%c4_80, %c0_81, %c0_82] : memref<5x224x160xf32, #tpu.memory_space<vmem>>, vector<1x224x160xf32>
    %75 = vector.shape_cast %74 : vector<1x224x160xf32> to vector<224x160xf32>
    %cst_83 = arith.constant dense<0.000000e+00> : vector<10x160xf32>
    %76 = tpu.matmul %73, %75, %cst_83 {dimension_numbers = #tpu.dot_dimension_numbers<[1], [0], [0], [1], [0, 0, 1, 1], [], []>} : vector<10x224xf32>, vector<224x160xf32>, vector<10x160xf32> -> vector<10x160xf32>
    %77 = arith.addf %72, %76 : vector<10x160xf32>
    %c0_84 = arith.constant 0 : index
    %c0_85 = arith.constant 0 : index
    %78 = vector.load %arg7[%c0_84, %c0_85] : memref<1x160xf32, #tpu.memory_space<vmem>>, vector<1x160xf32>
    %79 = vector.broadcast %78 : vector<1x160xf32> to vector<10x160xf32>
    %80 = arith.addf %77, %79 : vector<10x160xf32>
    %cst_86 = arith.constant 0.000000e+00 : f32
    %81 = vector.broadcast %cst_86 : f32 to vector<10x160xf32>
    %82 = arith.maximumf %80, %81 : vector<10x160xf32>
    %c0_87 = arith.constant 0 : index
    %c0_88 = arith.constant 0 : index
    %83 = vector.load %arg8[%c0_87, %c0_88] : memref<160x160xf32, #tpu.memory_space<vmem>>, vector<160x160xf32>
    %cst_89 = arith.constant dense<0.000000e+00> : vector<10x160xf32>
    %84 = tpu.matmul %82, %83, %cst_89 {dimension_numbers = #tpu.dot_dimension_numbers<[1], [0], [0], [1], [0, 0, 1, 1], [], []>} : vector<10x160xf32>, vector<160x160xf32>, vector<10x160xf32> -> vector<10x160xf32>
    %85 = arith.maximumf %82, %84 : vector<10x160xf32>
    %c0_90 = arith.constant 0 : index
    %c0_91 = arith.constant 0 : index
    %86 = vector.load %arg17[%c0_90, %c0_91] : memref<10x160xf32, #tpu.memory_space<vmem>>, vector<10x160xf32>
    tpu.vector_store %arg17[%c0_90, %c0_91], %85 {strides = array<i32>} : memref<10x160xf32, #tpu.memory_space<vmem>>, vector<10x160xf32>,
    %c0_92 = arith.constant 0 : index
    %c0_93 = arith.constant 0 : index
    %87 = vector.load %arg10[%c0_92, %c0_93] : memref<1x128xf32, #tpu.memory_space<vmem>>, vector<1x128xf32>
    %c0_94 = arith.constant 0 : index
    %c0_95 = arith.constant 0 : index
    %88 = vector.load %arg17[%c0_94, %c0_95] : memref<10x160xf32, #tpu.memory_space<vmem>>, vector<1x160xf32>
    %c1_96 = arith.constant 1 : index
    %c0_97 = arith.constant 0 : index
    %89 = vector.load %arg17[%c1_96, %c0_97] : memref<10x160xf32, #tpu.memory_space<vmem>>, vector<1x160xf32>
    %90 = arith.maximumf %88, %89 : vector<1x160xf32>
    %c0_98 = arith.constant 0 : index
    %c0_99 = arith.constant 0 : index
    %c0_100 = arith.constant 0 : index
    %91 = vector.load %arg9[%c0_98, %c0_99, %c0_100] : memref<5x160x128xf32, #tpu.memory_space<vmem>>, vector<1x160x128xf32>
    %92 = vector.shape_cast %91 : vector<1x160x128xf32> to vector<160x128xf32>
    %cst_101 = arith.constant dense<0.000000e+00> : vector<1x128xf32>
    %93 = tpu.matmul %90, %92, %cst_101 {dimension_numbers = #tpu.dot_dimension_numbers<[1], [0], [0], [1], [0, 0, 1, 1], [], []>} : vector<1x160xf32>, vector<160x128xf32>, vector<1x128xf32> -> vector<1x128xf32>
    %94 = arith.addf %87, %93 : vector<1x128xf32>
    %c2_102 = arith.constant 2 : index
    %c0_103 = arith.constant 0 : index
    %95 = vector.load %arg17[%c2_102, %c0_103] : memref<10x160xf32, #tpu.memory_space<vmem>>, vector<1x160xf32>
    %c3_104 = arith.constant 3 : index
    %c0_105 = arith.constant 0 : index
    %96 = vector.load %arg17[%c3_104, %c0_105] : memref<10x160xf32, #tpu.memory_space<vmem>>, vector<1x160xf32>
    %97 = arith.maximumf %95, %96 : vector<1x160xf32>
    %c1_106 = arith.constant 1 : index
    %c0_107 = arith.constant 0 : index
    %c0_108 = arith.constant 0 : index
    %98 = vector.load %arg9[%c1_106, %c0_107, %c0_108] : memref<5x160x128xf32, #tpu.memory_space<vmem>>, vector<1x160x128xf32>
    %99 = vector.shape_cast %98 : vector<1x160x128xf32> to vector<160x128xf32>
    %cst_109 = arith.constant dense<0.000000e+00> : vector<1x128xf32>
    %100 = tpu.matmul %97, %99, %cst_109 {dimension_numbers = #tpu.dot_dimension_numbers<[1], [0], [0], [1], [0, 0, 1, 1], [], []>} : vector<1x160xf32>, vector<160x128xf32>, vector<1x128xf32> -> vector<1x128xf32>
    %101 = arith.addf %94, %100 : vector<1x128xf32>
    %c4_110 = arith.constant 4 : index
    %c0_111 = arith.constant 0 : index
    %102 = vector.load %arg17[%c4_110, %c0_111] : memref<10x160xf32, #tpu.memory_space<vmem>>, vector<1x160xf32>
    %c5 = arith.constant 5 : index
    %c0_112 = arith.constant 0 : index
    %103 = vector.load %arg17[%c5, %c0_112] : memref<10x160xf32, #tpu.memory_space<vmem>>, vector<1x160xf32>
    %104 = arith.maximumf %102, %103 : vector<1x160xf32>
    %c2_113 = arith.constant 2 : index
    %c0_114 = arith.constant 0 : index
    %c0_115 = arith.constant 0 : index
    %105 = vector.load %arg9[%c2_113, %c0_114, %c0_115] : memref<5x160x128xf32, #tpu.memory_space<vmem>>, vector<1x160x128xf32>
    %106 = vector.shape_cast %105 : vector<1x160x128xf32> to vector<160x128xf32>
    %cst_116 = arith.constant dense<0.000000e+00> : vector<1x128xf32>
    %107 = tpu.matmul %104, %106, %cst_116 {dimension_numbers = #tpu.dot_dimension_numbers<[1], [0], [0], [1], [0, 0, 1, 1], [], []>} : vector<1x160xf32>, vector<160x128xf32>, vector<1x128xf32> -> vector<1x128xf32>
    %108 = arith.addf %101, %107 : vector<1x128xf32>
    %c6 = arith.constant 6 : index
    %c0_117 = arith.constant 0 : index
    %109 = vector.load %arg17[%c6, %c0_117] : memref<10x160xf32, #tpu.memory_space<vmem>>, vector<1x160xf32>
    %c7 = arith.constant 7 : index
    %c0_118 = arith.constant 0 : index
    %110 = vector.load %arg17[%c7, %c0_118] : memref<10x160xf32, #tpu.memory_space<vmem>>, vector<1x160xf32>
    %111 = arith.maximumf %109, %110 : vector<1x160xf32>
    %c3_119 = arith.constant 3 : index
    %c0_120 = arith.constant 0 : index
    %c0_121 = arith.constant 0 : index
    %112 = vector.load %arg9[%c3_119, %c0_120, %c0_121] : memref<5x160x128xf32, #tpu.memory_space<vmem>>, vector<1x160x128xf32>
    %113 = vector.shape_cast %112 : vector<1x160x128xf32> to vector<160x128xf32>
    %cst_122 = arith.constant dense<0.000000e+00> : vector<1x128xf32>
    %114 = tpu.matmul %111, %113, %cst_122 {dimension_numbers = #tpu.dot_dimension_numbers<[1], [0], [0], [1], [0, 0, 1, 1], [], []>} : vector<1x160xf32>, vector<160x128xf32>, vector<1x128xf32> -> vector<1x128xf32>
    %115 = arith.addf %108, %114 : vector<1x128xf32>
    %c8 = arith.constant 8 : index
    %c0_123 = arith.constant 0 : index
    %116 = vector.load %arg17[%c8, %c0_123] : memref<10x160xf32, #tpu.memory_space<vmem>>, vector<1x160xf32>
    %c9 = arith.constant 9 : index
    %c0_124 = arith.constant 0 : index
    %117 = vector.load %arg17[%c9, %c0_124] : memref<10x160xf32, #tpu.memory_space<vmem>>, vector<1x160xf32>
    %118 = arith.maximumf %116, %117 : vector<1x160xf32>
    %c4_125 = arith.constant 4 : index
    %c0_126 = arith.constant 0 : index
    %c0_127 = arith.constant 0 : index
    %119 = vector.load %arg9[%c4_125, %c0_126, %c0_127] : memref<5x160x128xf32, #tpu.memory_space<vmem>>, vector<1x160x128xf32>
    %120 = vector.shape_cast %119 : vector<1x160x128xf32> to vector<160x128xf32>
    %cst_128 = arith.constant dense<0.000000e+00> : vector<1x128xf32>
    %121 = tpu.matmul %118, %120, %cst_128 {dimension_numbers = #tpu.dot_dimension_numbers<[1], [0], [0], [1], [0, 0, 1, 1], [], []>} : vector<1x160xf32>, vector<160x128xf32>, vector<1x128xf32> -> vector<1x128xf32>
    %122 = arith.addf %115, %121 : vector<1x128xf32>
    %cst_129 = arith.constant 0.000000e+00 : f32
    %123 = vector.broadcast %cst_129 : f32 to vector<1x128xf32>
    %124 = arith.maximumf %122, %123 : vector<1x128xf32>
    %c0_130 = arith.constant 0 : index
    %c0_131 = arith.constant 0 : index
    %125 = vector.load %arg11[%c0_130, %c0_131] : memref<128x128xf32, #tpu.memory_space<vmem>>, vector<128x128xf32>
    %cst_132 = arith.constant dense<0.000000e+00> : vector<1x128xf32>
    %126 = tpu.matmul %124, %125, %cst_132 {dimension_numbers = #tpu.dot_dimension_numbers<[1], [0], [0], [1], [0, 0, 1, 1], [], []>} : vector<1x128xf32>, vector<128x128xf32>, vector<1x128xf32> -> vector<1x128xf32>
    %c0_133 = arith.constant 0 : index
    %c0_134 = arith.constant 0 : index
    %127 = vector.load %arg12[%c0_133, %c0_134] : memref<1x128xf32, #tpu.memory_space<vmem>>, vector<1x128xf32>
    %128 = arith.addf %126, %127 : vector<1x128xf32>
    %cst_135 = arith.constant 0.000000e+00 : f32
    %129 = vector.broadcast %cst_135 : f32 to vector<1x128xf32>
    %130 = arith.maximumf %128, %129 : vector<1x128xf32>
    %c0_136 = arith.constant 0 : index
    %c0_137 = arith.constant 0 : index
    %131 = vector.load %arg13[%c0_136, %c0_137] : memref<128x128xf32, #tpu.memory_space<vmem>>, vector<128x128xf32>
    %cst_138 = arith.constant dense<0.000000e+00> : vector<1x128xf32>
    %132 = tpu.matmul %130, %131, %cst_138 {dimension_numbers = #tpu.dot_dimension_numbers<[1], [0], [0], [1], [0, 0, 1, 1], [], []>} : vector<1x128xf32>, vector<128x128xf32>, vector<1x128xf32> -> vector<1x128xf32>
    %c0_139 = arith.constant 0 : index
    %c0_140 = arith.constant 0 : index
    %133 = vector.load %arg14[%c0_139, %c0_140] : memref<1x128xf32, #tpu.memory_space<vmem>>, vector<1x128xf32>
    %134 = arith.addf %132, %133 : vector<1x128xf32>
    %135 = vector.shape_cast %134 : vector<1x128xf32> to vector<1x128xf32>
    %136 = vector.broadcast %135 : vector<1x128xf32> to vector<8x128xf32>
    %c0_141 = arith.constant 0 : index
    %c0_142 = arith.constant 0 : index
    %137 = vector.load %arg15[%c0_141, %c0_142] : memref<8x128xf32, #tpu.memory_space<vmem>>, vector<8x128xf32>
    tpu.vector_store %arg15[%c0_141, %c0_142], %136 {strides = array<i32>} : memref<8x128xf32, #tpu.memory_space<vmem>>, vector<8x128xf32>,
    return
  }
  func.func @transform_0(%arg0: i32) -> (i32, i32) {
    %c0_i32 = arith.constant 0 : i32
    %c0_i32_0 = arith.constant 0 : i32
    return %arg0, %c0_i32 : i32, i32
  }
  func.func @transform_1(%arg0: i32) -> (i32, i32) {
    %c0_i32 = arith.constant 0 : i32
    %c0_i32_0 = arith.constant 0 : i32
    return %arg0, %c0_i32 : i32, i32
  }
  func.func @transform_2(%arg0: i32) -> (i32, i32, i32) {
    %c0_i32 = arith.constant 0 : i32
    %c0_i32_0 = arith.constant 0 : i32
    %c0_i32_1 = arith.constant 0 : i32
    %c0_i32_2 = arith.constant 0 : i32
    return %c0_i32, %c0_i32_0, %c0_i32_1 : i32, i32, i32
  }
  func.func @transform_3(%arg0: i32) -> (i32, i32) {
    %c0_i32 = arith.constant 0 : i32
    %c0_i32_0 = arith.constant 0 : i32
    %c0_i32_1 = arith.constant 0 : i32
    return %c0_i32, %c0_i32_0 : i32, i32
  }
  func.func @transform_4(%arg0: i32) -> (i32, i32) {
    %c0_i32 = arith.constant 0 : i32
    %c0_i32_0 = arith.constant 0 : i32
    %c0_i32_1 = arith.constant 0 : i32
    return %c0_i32, %c0_i32_0 : i32, i32
  }
  func.func @transform_5(%arg0: i32) -> (i32, i32, i32) {
    %c0_i32 = arith.constant 0 : i32
    %c0_i32_0 = arith.constant 0 : i32
    %c0_i32_1 = arith.constant 0 : i32
    %c0_i32_2 = arith.constant 0 : i32
    return %c0_i32, %c0_i32_0, %c0_i32_1 : i32, i32, i32
  }
  func.func @transform_6(%arg0: i32) -> (i32, i32) {
    %c0_i32 = arith.constant 0 : i32
    %c0_i32_0 = arith.constant 0 : i32
    %c0_i32_1 = arith.constant 0 : i32
    return %c0_i32, %c0_i32_0 : i32, i32
  }
  func.func @transform_7(%arg0: i32) -> (i32, i32) {
    %c0_i32 = arith.constant 0 : i32
    %c0_i32_0 = arith.constant 0 : i32
    %c0_i32_1 = arith.constant 0 : i32
    return %c0_i32, %c0_i32_0 : i32, i32
  }
  func.func @transform_8(%arg0: i32) -> (i32, i32, i32) {
    %c0_i32 = arith.constant 0 : i32
    %c0_i32_0 = arith.constant 0 : i32
    %c0_i32_1 = arith.constant 0 : i32
    %c0_i32_2 = arith.constant 0 : i32
    return %c0_i32, %c0_i32_0, %c0_i32_1 : i32, i32, i32
  }
  func.func @transform_9(%arg0: i32) -> (i32, i32) {
    %c0_i32 = arith.constant 0 : i32
    %c0_i32_0 = arith.constant 0 : i32
    %c0_i32_1 = arith.constant 0 : i32
    return %c0_i32, %c0_i32_0 : i32, i32
  }
  func.func @transform_10(%arg0: i32) -> (i32, i32) {
    %c0_i32 = arith.constant 0 : i32
    %c0_i32_0 = arith.constant 0 : i32
    %c0_i32_1 = arith.constant 0 : i32
    return %c0_i32, %c0_i32_0 : i32, i32
  }
  func.func @transform_11(%arg0: i32) -> (i32, i32) {
    %c0_i32 = arith.constant 0 : i32
    %c0_i32_0 = arith.constant 0 : i32
    %c0_i32_1 = arith.constant 0 : i32
    return %c0_i32, %c0_i32_0 : i32, i32
  }
  func.func @transform_12(%arg0: i32) -> (i32, i32) {
    %c0_i32 = arith.constant 0 : i32
    %c0_i32_0 = arith.constant 0 : i32
    %c0_i32_1 = arith.constant 0 : i32
    return %c0_i32, %c0_i32_0 : i32, i32
  }
  func.func @transform_13(%arg0: i32) -> (i32, i32) {
    %c0_i32 = arith.constant 0 : i32
    %c0_i32_0 = arith.constant 0 : i32
    %c0_i32_1 = arith.constant 0 : i32
    return %c0_i32, %c0_i32_0 : i32, i32
  }
  func.func @transform_14(%arg0: i32) -> (i32, i32) {
    %c0_i32 = arith.constant 0 : i32
    %c0_i32_0 = arith.constant 0 : i32
    return %arg0, %c0_i32 : i32, i32
  }
}

</mosaic_0001>

<bundles_post_ra>
// kernel: lenet_forward.1
= control target key start
LH: loop header
LB: loop body
LE: loop exit
PB: predicated region body
PF: predicated region fallthrough
CT: control target
= control target key end

     0   :  { %s4966_s29 = smov 0   ;;  %s7245_s0 = inlined_call_operand.vmem [shape: f32[32,128], index: 0, kind: input, shape index: {}]   ;;  %s7246_s1 = inlined_call_operand.vmem [shape: f32[32,128], index: 1, kind: input, shape index: {}]   ;;  %s7247_s2 = inlined_call_operand.vmem [shape: f32[5,128,224], index: 2, kind: input, shape index: {}]   ;;  %s7248_s3 = inlined_call_operand.vmem [shape: f32[1,224], index: 3, kind: input, shape index: {}]   ;;  %s7249_s4 = inlined_call_operand.vmem [shape: f32[224,224], index: 4, kind: input, shape index: {}]   ;;  %s7250_s5 = inlined_call_operand.vmem [shape: f32[5,224,160], index: 5, kind: input, shape index: {}]   ;;  %s7251_s6 = inlined_call_operand.vmem [shape: f32[1,160], index: 6, kind: input, shape index: {}]   ;;  %s7252_s7 = inlined_call_operand.vmem [shape: f32[160,160], index: 7, kind: input, shape index: {}]   ;;  %s7253_s8 = inlined_call_operand.vmem [shape: f32[5,160,128], index: 8, kind: input, shape index: {}]   ;;  %s7254_s9 = inlined_call_operand.vmem [shape: f32[1,128], index: 9, kind: input, shape index: {}]   ;;  %s7255_s10 = inlined_call_operand.vmem [shape: f32[128,128], index: 10, kind: input, shape index: {}]   ;;  %s7256_s11 = inlined_call_operand.vmem [shape: f32[1,128], index: 11, kind: input, shape index: {}]   ;;  %s7257_s12 = inlined_call_operand.vmem [shape: f32[128,128], index: 12, kind: input, shape index: {}]   ;;  %s7258_s13 = inlined_call_operand.vmem [shape: f32[1,128], index: 13, kind: input, shape index: {}]   ;;  %s7259_s14 = inlined_call_operand.vmem [shape: f32[16,128], index: 14, kind: output, shape index: {}]  }
   0x1 LB: > { %s4972_s30 = sadd.s32 4294967295, %s4886_s29   ;;  %p3355_p0 = scmp.ge.s32.totalorder %s4886_s29, 1  ;;  %s4886_s29 = sphi %s4966_s29, %s24_s29  }
   0x2   : > { %p424_p1 = scmp.lt.s32.totalorder %s4886_s29, 3 }
   0x4   : > { %p425_p2 = pnand %p3355_p0, %p424_p1 }
   0x5   : > { %v3362_v0 = vld [vmem:[%s7247_s2 + $0x108] sm:$0xff] (!%p425_p2)  ;;  %v3364_v1 = vld [vmem:[%s7247_s2 + $0x118] sm:$0xff] (!%p425_p2)  ;;  %v3361_v2 = vld [vmem:[%s7247_s2 + $0x100] sm:$0xff] (!%p425_p2)  ;;  %v4888_v7 = vmov (!%p425_p2), 0.0   ;;  %s3356_s17 = sshll.u32 (!%p425_p2), %s4972_s30, 1  ;;  %vm1540_vm0 = vcmask (!%p425_p2), 785408  }
   0x6   : > { %428 = sbr.rel (%p425_p2) target bundleno = 2098 (0x832), region = 76  ;;  %v3918_v3 = vpack.c.bf16 (!%p425_p2), %v3364_v1, %v3362_v0  ;;  %v3363_v4 = vld [vmem:[%s7247_s2 + $0x110] sm:$0xff] (!%p425_p2)  ;;  %v3366_v5 = vld [vmem:[%s7247_s2 + $0x128] sm:$0xff] (!%p425_p2)  ;;  %v3368_v6 = vld [vmem:[%s7247_s2 + $0x138] sm:$0xff] (!%p425_p2)  ;;  %631 = vmatprep.mubr.f32.mxu0 (!%p425_p2), %v4888_v7  ;;  %1127 = vmatprep.mubr.f32.mxu1 (!%p425_p2), %v4888_v7  ;;  %p475_p3 = scmp.lt.s32.totalorder (!%p425_p2), %s3356_s17, 3  ;;  %vm1631_vm1 = vcmask (!%p425_p2), 783360  }
   0x7   : > { %v3920_v8 = vpack.c.bf16 (!%p425_p2), %v3363_v4, %v3361_v2  ;;  %v3922_v9 = vpack.c.bf16 (!%p425_p2), %v3368_v6, %v3366_v5  ;;  %v3365_v10 = vld [vmem:[%s7247_s2 + $0x120] sm:$0xff] (!%p425_p2)  ;;  %v3367_v11 = vld [vmem:[%s7247_s2 + $0x130] sm:$0xff] (!%p425_p2)  ;;  %v3370_v12 = vld [vmem:[%s7247_s2 + $0x148] sm:$0xff] (!%p425_p2)  ;;  %vm1758_vm2 = vcmask (!%p425_p2), 1046528   ;;  %vm1996_vm3 = vcmask (!%p425_p2), 1045504   ;;  %p486_p4 = scmp.lt.s32.totalorder (!%p425_p2), %s4972_s30, 1 }
   0x8   : > { %3919 = vmatprep.subr.bf16.mxu0 (!%p425_p2), %v3918_v3  ;;  %4079 = vmatprep.subr.bf16.mxu1 (!%p425_p2), %v3918_v3  ;;  %v3372_v13 = vld [vmem:[%s7247_s2 + $0x158] sm:$0xff] (!%p425_p2)  ;;  %v3924_v14 = vpack.c.bf16 (!%p425_p2), %v3367_v11, %v3365_v10  ;;  %v3369_v16 = vld [vmem:[%s7247_s2 + $0x140] sm:$0xff] (!%p425_p2)  ;;  %v3371_v17 = vld [vmem:[%s7247_s2 + $0x150] sm:$0xff] (!%p425_p2)  ;;  %vm2155_vm4 = vcmask (!%p425_p2), 1044480   ;;  %vm2314_vm5 = vcmask (!%p425_p2), 1043456   ;;  %vm2468_vm6 = vcmask (!%p425_p2), 261120  }
   0x9   : > { %3921 = vmatpush1.bf16.msra.mxu0 (!%p425_p2), %v3920_v8  ;;  %4081 = vmatpush1.bf16.msra.mxu1 (!%p425_p2), %v3920_v8  ;;  %v3926_v15 = vpack.c.bf16 (!%p425_p2), %v3372_v13, %v3370_v12  ;;  %v3374_v18 = vld [vmem:[%s7247_s2 + $0x168] sm:$0xff] (!%p425_p2)  ;;  %v3376_v19 = vld [vmem:[%s7247_s2 + $0x178] sm:$0xff] (!%p425_p2)  ;;  %v3928_v20 = vpack.c.bf16 (!%p425_p2), %v3371_v17, %v3369_v16  ;;  %v3373_v22 = vld [vmem:[%s7247_s2 + $0x160] sm:$0xff] (!%p425_p2)  ;;  %vm2559_vm7 = vcmask (!%p425_p2), 254976   ;;  %vm4890_vm8 = vmmov (!%p425_p2), 0  }
   0xa   : > { %3923 = vmatprep.subr.bf16.mxu0 (!%p425_p2), %v3922_v9  ;;  %4083 = vmatprep.subr.bf16.mxu1 (!%p425_p2), %v3922_v9  ;;  %v3930_v21 = vpack.c.bf16 (!%p425_p2), %v3376_v19, %v3374_v18  ;;  %v3375_v23 = vld [vmem:[%s7247_s2 + $0x170] sm:$0xff] (!%p425_p2)  ;;  %v3378_v24 = vld [vmem:[%s7247_s2 + $0x188] sm:$0xff] (!%p425_p2)  ;;  %v3380_v25 = vld [vmem:[%s7247_s2 + $0x198] sm:$0xff] (!%p425_p2) }
   0xb   : > { %v3932_v26 = vpack.c.bf16 (!%p425_p2), %v3375_v23, %v3373_v22  ;;  %v3934_v27 = vpack.c.bf16 (!%p425_p2), %v3380_v25, %v3378_v24  ;;  %v3377_v28 = vld [vmem:[%s7247_s2 + $0x180] sm:$0xff] (!%p425_p2)  ;;  %v3379_v29 = vld [vmem:[%s7247_s2 + $0x190] sm:$0xff] (!%p425_p2)  ;;  %v3382_v30 = vld [vmem:[%s7247_s2 + $0x1a8] sm:$0xff] (!%p425_p2) }
   0xc   : > { %v3384_v31 = vld [vmem:[%s7247_s2 + $0x1b8] sm:$0xff] (!%p425_p2)  ;;  %v3936_v32 = vpack.c.bf16 (!%p425_p2), %v3379_v29, %v3377_v28  ;;  %v3381_v34 = vld [vmem:[%s7247_s2 + $0x1a0] sm:$0xff] (!%p425_p2)  ;;  %v3383_v35 = vld [vmem:[%s7247_s2 + $0x1b0] sm:$0xff] (!%p425_p2) }
   0xd   : > { %3925 = vmatpush1.bf16.msra.mxu0 %v3924_v14  ;;  %4085 = vmatpush1.bf16.msra.mxu1 %v3924_v14  ;;  %v3938_v33 = vpack.c.bf16 %v3384_v31, %v3382_v30  ;;  %v3386_v36 = vld [vmem:[%s7247_s2 + $0x1c8] sm:$0xff]  ;;  %v3388_v37 = vld [vmem:[%s7247_s2 + $0x1d8] sm:$0xff]  ;;  %v3940_v38 = vpack.c.bf16 %v3383_v35, %v3381_v34  ;;  %v3385_v40 = vld [vmem:[%s7247_s2 + $0x1c0] sm:$0xff]  ;;  %s7261_s17 = smov (!%p475_p3, %s3356_s17), 3  ;;  %s7263_s30 = smov (!%p486_p4, %s4972_s30), 1 }
   0xe   : > { %3927 = vmatprep.subr.bf16.mxu0 %v3926_v15  ;;  %4087 = vmatprep.subr.bf16.mxu1 %v3926_v15  ;;  %v3942_v39 = vpack.c.bf16 %v3388_v37, %v3386_v36  ;;  %v3387_v41 = vld [vmem:[%s7247_s2 + $0x1d0] sm:$0xff]  ;;  %v3390_v42 = vld [vmem:[%s7247_s2 + $0x1e8] sm:$0xff]  ;;  %v3392_v43 = vld [vmem:[%s7247_s2 + $0x1f8] sm:$0xff]  ;;  %s3357_s15 = sshll.u32 %s7261_s17, 3  ;;  %s3360_s23 = sshll.u32 %s7263_s30, 3 }
   0xf   : > { %v3944_v44 = vpack.c.bf16 %v3387_v41, %v3385_v40  ;;  %v3946_v45 = vpack.c.bf16 %v3392_v43, %v3390_v42  ;;  %v3389_v46 = vld [vmem:[%s7247_s2 + $0x1e0] sm:$0xff]  ;;  %v3391_v47 = vld [vmem:[%s7247_s2 + $0x1f0] sm:$0xff]  ;;  %v503_v48 = vld [vmem:[%s7247_s2 + $0x8] sm:$0xff]  ;;  %s5084_s19 = scalar_lea.vmem %s7246_s1, %s3357_s15  ;;  %s5095_s25 = scalar_lea.vmem %s7245_s0, %s3357_s15 }
  0x10   : > { %v505_v49 = vld [vmem:[%s7247_s2 + $0x18] sm:$0xff]  ;;  %v3948_v50 = vpack.c.bf16 %v3391_v47, %v3389_v46  ;;  %v502_v52 = vld [vmem:[%s7247_s2] sm:$0xff]  ;;  %v504_v53 = vld [vmem:[%s7247_s2 + $0x10] sm:$0xff]  ;;  %s489_s26 = scalar_lea.vmem %s7259_s14, %s3360_s23 }
  0x11   : > { %3929 = vmatpush1.bf16.msra.mxu0 %v3928_v20  ;;  %4089 = vmatpush1.bf16.msra.mxu1 %v3928_v20  ;;  %v3950_v51 = vpack.c.bf16 %v505_v49, %v503_v48  ;;  %v507_v54 = vld [vmem:[%s7247_s2 + $0x28] sm:$0xff]  ;;  %v509_v55 = vld [vmem:[%s7247_s2 + $0x38] sm:$0xff]  ;;  %v5104_v56 = vld [vmem:[%s5084_s19] sm:$0xff]  ;;  %v3952_v57 = vpack.c.bf16 %v504_v53, %v502_v52 }
  0x12   : > { %3931 = vmatprep.subr.bf16.mxu0 %v3930_v21  ;;  %4091 = vmatprep.subr.bf16.mxu1 %v3930_v21  ;;  %v5107_v58 = vld [vmem:[%s5095_s25 + $0x1] sm:$0xff]  ;;  %v3954_v59 = vpack.c.bf16 %v509_v55, %v507_v54  ;;  %v508_v61 = vld [vmem:[%s7247_s2 + $0x30] sm:$0xff]  ;;  %v513_v63 = vld [vmem:[%s7247_s2 + $0x58] sm:$0xff] }
  0x13   : > { %v506_v60 = vld [vmem:[%s7247_s2 + $0x20] sm:$0xff]  ;;  %v511_v62 = vld [vmem:[%s7247_s2 + $0x48] sm:$0xff]  ;;  %v512_v5 = vld [vmem:[%s7247_s2 + $0x50] sm:$0xff] }
  0x14   : > { %v3956_v0 = vpack.c.bf16 %v508_v61, %v506_v60  ;;  %v5124_v1 = vld [vmem:[%s5084_s19 + $0x8] sm:$0x3f]  ;;  %v3958_v3 = vpack.c.bf16 %v513_v63, %v511_v62  ;;  %v510_v4 = vld [vmem:[%s7247_s2 + $0x40] sm:$0xff]  ;;  %v517_v8 = vld [vmem:[%s7247_s2 + $0x78] sm:$0xff] }
  0x15   : > { %3933 = vmatpush1.bf16.msra.mxu0 %v3932_v26  ;;  %4093 = vmatpush1.bf16.msra.mxu1 %v3932_v26  ;;  %v5127_v2 = vld [vmem:[%s5095_s25 + $0x9] sm:$0x3f]  ;;  %v3960_v9 = vpack.c.bf16 %v512_v5, %v510_v4  ;;  %v514_v11 = vld [vmem:[%s7247_s2 + $0x60] sm:$0xff]  ;;  %v516_v12 = vld [vmem:[%s7247_s2 + $0x70] sm:$0xff] }
  0x16   : > { %3935 = vmatprep.subr.bf16.mxu0 %v3934_v27  ;;  %4095 = vmatprep.subr.bf16.mxu1 %v3934_v27  ;;  %v515_v6 = vld [vmem:[%s7247_s2 + $0x68] sm:$0xff]  ;;  %v521_v14 = vld [vmem:[%s7247_s2 + $0x98] sm:$0xff]  ;;  %v3964_v15 = vpack.c.bf16 %v516_v12, %v514_v11  ;;  %v518_v17 = vld [vmem:[%s7247_s2 + $0x80] sm:$0xff] }
  0x17   : > { %v3962_v10 = vpack.c.bf16 %v517_v8, %v515_v6  ;;  %v519_v13 = vld [vmem:[%s7247_s2 + $0x88] sm:$0xff]  ;;  %v520_v18 = vld [vmem:[%s7247_s2 + $0x90] sm:$0xff]  ;;  %v525_v20 = vld [vmem:[%s7247_s2 + $0xb8] sm:$0xff] }
  0x18   : > { %v3966_v16 = vpack.c.bf16 %v521_v14, %v519_v13  ;;  %v523_v19 = vld [vmem:[%s7247_s2 + $0xa8] sm:$0xff]  ;;  %v3968_v21 = vpack.c.bf16 %v520_v18, %v518_v17  ;;  %v522_v23 = vld [vmem:[%s7247_s2 + $0xa0] sm:$0xff]  ;;  %v524_v24 = vld [vmem:[%s7247_s2 + $0xb0] sm:$0xff] }
  0x19   : > { %3937 = vmatpush1.bf16.msra.mxu0 %v3936_v32  ;;  %4097 = vmatpush1.bf16.msra.mxu1 %v3936_v32  ;;  %v3970_v22 = vpack.c.bf16 %v525_v20, %v523_v19  ;;  %v527_v25 = vld [vmem:[%s7247_s2 + $0xc8] sm:$0xff]  ;;  %v529_v26 = vld [vmem:[%s7247_s2 + $0xd8] sm:$0xff]  ;;  %v3972_v27 = vpack.c.bf16 %v524_v24, %v522_v23  ;;  %v526_v29 = vld [vmem:[%s7247_s2 + $0xc0] sm:$0xff] }
  0x1a   : > { %3939 = vmatprep.subr.bf16.mxu0 %v3938_v33  ;;  %4099 = vmatprep.subr.bf16.mxu1 %v3938_v33  ;;  %v3974_v28 = vpack.c.bf16 %v529_v26, %v527_v25  ;;  %v528_v30 = vld [vmem:[%s7247_s2 + $0xd0] sm:$0xff]  ;;  %v531_v31 = vld [vmem:[%s7247_s2 + $0xe8] sm:$0xff]  ;;  %v533_v32 = vld [vmem:[%s7247_s2 + $0xf8] sm:$0xff] }
  0x1b   : > { %v3976_v33 = vpack.c.bf16 %v528_v30, %v526_v29  ;;  %v3978_v34 = vpack.c.bf16 %v533_v32, %v531_v31  ;;  %v530_v35 = vld [vmem:[%s7247_s2 + $0xe0] sm:$0xff]  ;;  %v532_v36 = vld [vmem:[%s7247_s2 + $0xf0] sm:$0xff]  ;;  %v3394_v37 = vld [vmem:[%s7247_s2 + $0x208] sm:$0xff] }
  0x1c   : > { %v3393_v41 = vld [vmem:[%s7247_s2 + $0x200] sm:$0xff]  ;;  %v3395_v42 = vld [vmem:[%s7247_s2 + $0x210] sm:$0xff]  ;;  %v3398_v43 = vld [vmem:[%s7247_s2 + $0x228] sm:$0xff] }
  0x1d   : > { %3941 = vmatpush1.bf16.msra.mxu0 %v3940_v38  ;;  %4101 = vmatpush1.bf16.msra.mxu1 %v3940_v38  ;;  %v3396_v38 = vld [vmem:[%s7247_s2 + $0x218] sm:$0xff]  ;;  %v3984_v46 = vpack.c.bf16 %v3395_v42, %v3393_v41  ;;  %v3397_v48 = vld [vmem:[%s7247_s2 + $0x220] sm:$0xff]  ;;  %v3399_v49 = vld [vmem:[%s7247_s2 + $0x230] sm:$0xff] }
  0x1e   : > { %3943 = vmatprep.subr.bf16.mxu0 %v3942_v39  ;;  %4103 = vmatprep.subr.bf16.mxu1 %v3942_v39  ;;  %v3980_v39 = vpack.c.bf16 %v532_v36, %v530_v35  ;;  %v3982_v40 = vpack.c.bf16 %v3396_v38, %v3394_v37  ;;  %v3988_v52 = vpack.c.bf16 %v3399_v49, %v3397_v48  ;;  %v491_v53 = vld [vmem:[%s5095_s25 + $0x8] sm:$0x3f]  ;;  %v3401_v55 = vld [vmem:[%s7247_s2 + $0x240] sm:$0xff]  ;;  %v3407_v63 = vld [vmem:[%s7247_s2 + $0x270] sm:$0xff] }
  0x1f   : > { %v3405_v62 = vld [vmem:[%s7247_s2 + $0x260] sm:$0xff]  ;;  %v3411_v6 = vld [vmem:[%s7247_s2 + $0x290] sm:$0xff]  ;;  %v3414_v8 = vld [vmem:[%s7247_s2 + $0x2a8] sm:$0xff] }
  0x20   : > { %v3409_v5 = vld [vmem:[%s7247_s2 + $0x280] sm:$0xff]  ;;  %v3415_v13 = vld [vmem:[%s7247_s2 + $0x2b0] sm:$0xff]  ;;  %v3418_v14 = vld [vmem:[%s7247_s2 + $0x2c8] sm:$0xff] }
  0x21   : > { %3945 = vmatpush1.bf16.msra.mxu0 %v3944_v44  ;;  %4105 = vmatpush1.bf16.msra.mxu1 %v3944_v44  ;;  %v3400_v44 = vld [vmem:[%s7247_s2 + $0x238] sm:$0xff]  ;;  %v3413_v12 = vld [vmem:[%s7247_s2 + $0x2a0] sm:$0xff]  ;;  %v3419_v19 = vld [vmem:[%s7247_s2 + $0x2d0] sm:$0xff] }
  0x22   : > { %3947 = vmatprep.subr.bf16.mxu0 %v3946_v45  ;;  %4107 = vmatprep.subr.bf16.mxu1 %v3946_v45  ;;  %v490_v45 = vld [vmem:[%s5095_s25] sm:$0xff]  ;;  %v3986_v47 = vpack.c.bf16 %v3400_v44, %v3398_v43  ;;  %v3422_v20 = vld [vmem:[%s7247_s2 + $0x2e8] sm:$0xff]  ;;  %v3423_v25 = vld [vmem:[%s7247_s2 + $0x2f0] sm:$0xff] }
  0x23   : > { %v3417_v18 = vld [vmem:[%s7247_s2 + $0x2c0] sm:$0xff]  ;;  %v3426_v26 = vld [vmem:[%s7247_s2 + $0x308] sm:$0xff]  ;;  %v3427_v31 = vld [vmem:[%s7247_s2 + $0x310] sm:$0xff] }
  0x24   : > { %v3421_v24 = vld [vmem:[%s7247_s2 + $0x2e0] sm:$0xff]  ;;  %v3430_v32 = vld [vmem:[%s7247_s2 + $0x328] sm:$0xff]  ;;  %v3431_v38 = vld [vmem:[%s7247_s2 + $0x330] sm:$0xff] }
  0x25   : > { %3949 = vmatpush1.bf16.msra.mxu0 %v3948_v50  ;;  %4109 = vmatpush1.bf16.msra.mxu1 %v3948_v50  ;;  %v3402_v50 = vld [vmem:[%s7247_s2 + $0x248] sm:$0xff]  ;;  %v3425_v30 = vld [vmem:[%s7247_s2 + $0x300] sm:$0xff] }
  0x26   : > { %3951 = vmatprep.subr.bf16.mxu0 %v3950_v51  ;;  %4111 = vmatprep.subr.bf16.mxu1 %v3950_v51  ;;  %v3404_v51 = vld [vmem:[%s7247_s2 + $0x258] sm:$0xff]  ;;  %v5324_v35 = vld [vmem:[%s5084_s19 + $0x1] sm:$0xff]  ;;  %v5341_v42 = vld [vmem:[%s5084_s19 + $0x9] sm:$0x3f] }
  0x27   : > { %v3990_v54 = vpack.c.bf16 %v3404_v51, %v3402_v50  ;;  %v3429_v37 = vld [vmem:[%s7247_s2 + $0x320] sm:$0xff]  ;;  %v3439_v50 = vld [vmem:[%s7247_s2 + $0x370] sm:$0xff]  ;;  %v3444_v51 = vld [vmem:[%s7247_s2 + $0x398] sm:$0xff] }
  0x28   : > { %632 = vmatmul.mubr.f32.vlgmr.msra.gmra.mrb[0].mxu0 %v5104_v56  ;;  %1128 = vmatmul.mubr.f32.vlgmr.msra.gmra.mrb[0].mxu1 %v5107_v58  ;;  %v4020_v41 = vpack.c.bf16 %v3431_v38, %v3429_v37  ;;  %v3433_v44 = vld [vmem:[%s7247_s2 + $0x340] sm:$0xff]  ;;  %v3471_v38 = vld [vmem:[%s7247_s2 + $0x470] sm:$0xff] }
  0x29   : > { %3953 = vmatpush1.bf16.msra.mxu0 %v3952_v57  ;;  %4113 = vmatpush1.bf16.msra.mxu1 %v3952_v57  ;;  %v3403_v57 = vld [vmem:[%s7247_s2 + $0x250] sm:$0xff]  ;;  %v3437_v49 = vld [vmem:[%s7247_s2 + $0x360] sm:$0xff] }
  0x2a   : > { %3955 = vmatprep.subr.bf16.mxu0 %v3954_v59  ;;  %4115 = vmatprep.subr.bf16.mxu1 %v3954_v59  ;;  %v3406_v59 = vld [vmem:[%s7247_s2 + $0x268] sm:$0xff]  ;;  %v3992_v60 = vpack.c.bf16 %v3403_v57, %v3401_v55  ;;  %v3443_v55 = vld [vmem:[%s7247_s2 + $0x390] sm:$0xff]  ;;  %v3469_v37 = vld [vmem:[%s7247_s2 + $0x460] sm:$0xff] }
  0x2b   : > { %637 = vmatprep.mubr.f32.mxu0 %v4888_v7  ;;  %1133 = vmatprep.mubr.f32.mxu1 %v4888_v7  ;;  %v3446_v57 = vld [vmem:[%s7247_s2 + $0x3a8] sm:$0xff] }
  0x2c   : > { %638 = vmatmul.mubr.f32.gmra.mrb[2].mxu0 %v5124_v1  ;;  %1134 = vmatmul.mubr.f32.gmra.mrb[2].mxu1 %v5127_v2 }
  0x2d   : > { %3957 = vmatpush1.bf16.msra.mxu0 %v3956_v0  ;;  %4117 = vmatpush1.bf16.msra.mxu1 %v3956_v0  ;;  %v3410_v0 = vld [vmem:[%s7247_s2 + $0x288] sm:$0xff] }
  0x2e   : > { %3959 = vmatprep.subr.bf16.mxu0 %v3958_v3  ;;  %4119 = vmatprep.subr.bf16.mxu1 %v3958_v3  ;;  %v3996_v3 = vpack.c.bf16 %v3407_v63, %v3405_v62  ;;  %v3447_v62 = vld [vmem:[%s7247_s2 + $0x3b0] sm:$0xff]  ;;  %v3450_v63 = vld [vmem:[%s7247_s2 + $0x3c8] sm:$0xff] }
  0x2f   : > { %708 = vmatprep.mubr.f32.mxu0 %v4888_v7  ;;  %1204 = vmatprep.mubr.f32.mxu1 %v4888_v7 }
  0x31   : > { %3961 = vmatpush1.bf16.msra.mxu0 %v3960_v9  ;;  %4121 = vmatpush1.bf16.msra.mxu1 %v3960_v9  ;;  %v3416_v9 = vld [vmem:[%s7247_s2 + $0x2b8] sm:$0xff] }
  0x32   : > { %3963 = vmatprep.subr.bf16.mxu0 %v3962_v10  ;;  %4123 = vmatprep.subr.bf16.mxu1 %v3962_v10  ;;  %v4000_v10 = vpack.c.bf16 %v3411_v6, %v3409_v5  ;;  %v4002_v11 = vpack.c.bf16 %v3416_v9, %v3414_v8  ;;  %v3451_v5 = vld [vmem:[%s7247_s2 + $0x3d0] sm:$0xff]  ;;  %v3454_v6 = vld [vmem:[%s7247_s2 + $0x3e8] sm:$0xff]  ;;  %v3456_v8 = vld [vmem:[%s7247_s2 + $0x3f8] sm:$0xff] }
  0x35   : > { %3965 = vmatpush1.bf16.msra.mxu0 %v3964_v15  ;;  %4125 = vmatpush1.bf16.msra.mxu1 %v3964_v15  ;;  %v3420_v15 = vld [vmem:[%s7247_s2 + $0x2d8] sm:$0xff] }
  0x36   : > { %3967 = vmatprep.subr.bf16.mxu0 %v3966_v16  ;;  %4127 = vmatprep.subr.bf16.mxu1 %v3966_v16  ;;  %v4004_v16 = vpack.c.bf16 %v3415_v13, %v3413_v12  ;;  %v4006_v17 = vpack.c.bf16 %v3420_v15, %v3418_v14  ;;  %v3455_v12 = vld [vmem:[%s7247_s2 + $0x3f0] sm:$0xff]  ;;  %v3458_v13 = vld [vmem:[%s7247_s2 + $0x408] sm:$0xff]  ;;  %v3460_v14 = vld [vmem:[%s7247_s2 + $0x418] sm:$0xff] }
  0x39   : > { %3969 = vmatpush1.bf16.msra.mxu0 %v3968_v21  ;;  %4129 = vmatpush1.bf16.msra.mxu1 %v3968_v21  ;;  %v3424_v21 = vld [vmem:[%s7247_s2 + $0x2f8] sm:$0xff] }
  0x3a   : > { %3971 = vmatprep.subr.bf16.mxu0 %v3970_v22  ;;  %4131 = vmatprep.subr.bf16.mxu1 %v3970_v22  ;;  %v4008_v22 = vpack.c.bf16 %v3419_v19, %v3417_v18  ;;  %v4010_v23 = vpack.c.bf16 %v3424_v21, %v3422_v20  ;;  %v3459_v18 = vld [vmem:[%s7247_s2 + $0x410] sm:$0xff]  ;;  %v3462_v19 = vld [vmem:[%s7247_s2 + $0x428] sm:$0xff]  ;;  %v3464_v20 = vld [vmem:[%s7247_s2 + $0x438] sm:$0xff] }
  0x3d   : > { %3973 = vmatpush1.bf16.msra.mxu0 %v3972_v27  ;;  %4133 = vmatpush1.bf16.msra.mxu1 %v3972_v27  ;;  %v3428_v27 = vld [vmem:[%s7247_s2 + $0x318] sm:$0xff] }
  0x3e   : > { %3975 = vmatprep.subr.bf16.mxu0 %v3974_v28  ;;  %4135 = vmatprep.subr.bf16.mxu1 %v3974_v28  ;;  %v4012_v28 = vpack.c.bf16 %v3423_v25, %v3421_v24  ;;  %v4014_v29 = vpack.c.bf16 %v3428_v27, %v3426_v26  ;;  %v3461_v24 = vld [vmem:[%s7247_s2 + $0x420] sm:$0xff]  ;;  %v3463_v25 = vld [vmem:[%s7247_s2 + $0x430] sm:$0xff]  ;;  %v3466_v26 = vld [vmem:[%s7247_s2 + $0x448] sm:$0xff] }
  0x3f   : > { %v3468_v27 = vld [vmem:[%s7247_s2 + $0x458] sm:$0xff] }
  0x41   : > { %3977 = vmatpush1.bf16.msra.mxu0 %v3976_v33  ;;  %4137 = vmatpush1.bf16.msra.mxu1 %v3976_v33  ;;  %v3432_v33 = vld [vmem:[%s7247_s2 + $0x338] sm:$0xff] }
  0x42   : > { %3979 = vmatprep.subr.bf16.mxu0 %v3978_v34  ;;  %4139 = vmatprep.subr.bf16.mxu1 %v3978_v34  ;;  %v4016_v34 = vpack.c.bf16 %v3427_v31, %v3425_v30  ;;  %v4018_v36 = vpack.c.bf16 %v3432_v33, %v3430_v32  ;;  %v4054_v30 = vpack.c.bf16 %v3468_v27, %v3466_v26  ;;  %v3465_v31 = vld [vmem:[%s7247_s2 + $0x440] sm:$0xff]  ;;  %v3467_v32 = vld [vmem:[%s7247_s2 + $0x450] sm:$0xff]  ;;  %v3470_v33 = vld [vmem:[%s7247_s2 + $0x468] sm:$0xff] }
  0x43   : > { %v1501_v26 = vld [vmem:[%s7249_s4 + $0x88] sm:$0xff]  ;;  %v1503_v27 = vld [vmem:[%s7249_s4 + $0x98] sm:$0xff] }
  0x45   : > { %3981 = vmatpush1.bf16.msra.mxu0 %v3980_v39  ;;  %4141 = vmatpush1.bf16.msra.mxu1 %v3980_v39  ;;  %v3434_v39 = vld [vmem:[%s7247_s2 + $0x348] sm:$0xff] }
  0x46   : > { %3983 = vmatprep.subr.bf16.mxu0 %v3982_v40  ;;  %4143 = vmatprep.subr.bf16.mxu1 %v3982_v40  ;;  %v3436_v40 = vld [vmem:[%s7247_s2 + $0x358] sm:$0xff] }
  0x47   : > { %v4022_v43 = vpack.c.bf16 %v3436_v40, %v3434_v39  ;;  %v3474_v39 = vld [vmem:[%s7247_s2 + $0x488] sm:$0xff]  ;;  %v3476_v40 = vld [vmem:[%s7247_s2 + $0x498] sm:$0xff] }
  0x48   : > { %709 = vmatmul.mubr.f32.vlgmr.msra.gmra.mrb[0].mxu0 %v490_v45  ;;  %1205 = vmatmul.mubr.f32.vlgmr.msra.gmra.mrb[0].mxu1 %v5104_v56  ;;  %v3408_v56 = vld [vmem:[%s7247_s2 + $0x278] sm:$0xff]  ;;  %v3435_v45 = vld [vmem:[%s7247_s2 + $0x350] sm:$0xff] }
  0x49   : > { %3985 = vmatpush1.bf16.msra.mxu0 %v3984_v46  ;;  %4145 = vmatpush1.bf16.msra.mxu1 %v3984_v46  ;;  %v3994_v61 = vpack.c.bf16 %v3408_v56, %v3406_v59  ;;  %v3440_v46 = vld [vmem:[%s7247_s2 + $0x378] sm:$0xff] }
  0x4a   : > { %3987 = vmatprep.subr.bf16.mxu0 %v3986_v47  ;;  %4147 = vmatprep.subr.bf16.mxu1 %v3986_v47  ;;  %v4024_v47 = vpack.c.bf16 %v3435_v45, %v3433_v44  ;;  %v3448_v59 = vld [vmem:[%s7247_s2 + $0x3b8] sm:$0xff]  ;;  %v3475_v44 = vld [vmem:[%s7247_s2 + $0x490] sm:$0xff]  ;;  %v3478_v45 = vld [vmem:[%s7247_s2 + $0x4a8] sm:$0xff] }
  0x4b   : > { %714 = vmatprep.mubr.f32.mxu0 %v4888_v7  ;;  %1210 = vmatprep.mubr.f32.mxu1 %v4888_v7 }
  0x4c   : > { %715 = vmatmul.mubr.f32.gmra.mrb[2].mxu0 %v491_v53  ;;  %1211 = vmatmul.mubr.f32.gmra.mrb[2].mxu1 %v5124_v1  ;;  %v3412_v1 = vld [vmem:[%s7247_s2 + $0x298] sm:$0xff] }
  0x4d   : > { %3989 = vmatpush1.bf16.msra.mxu0 %v3988_v52  ;;  %4149 = vmatpush1.bf16.msra.mxu1 %v3988_v52  ;;  %v3998_v4 = vpack.c.bf16 %v3412_v1, %v3410_v0  ;;  %v4028_v52 = vpack.c.bf16 %v3439_v50, %v3437_v49  ;;  %v3452_v0 = vld [vmem:[%s7247_s2 + $0x3d8] sm:$0xff]  ;;  %v3479_v49 = vld [vmem:[%s7247_s2 + $0x4b0] sm:$0xff]  ;;  %v3482_v50 = vld [vmem:[%s7247_s2 + $0x4c8] sm:$0xff] }
  0x4e   : > { %3991 = vmatprep.subr.bf16.mxu0 %v3990_v54  ;;  %4151 = vmatprep.subr.bf16.mxu1 %v3990_v54  ;;  %v3441_v54 = vld [vmem:[%s7247_s2 + $0x380] sm:$0xff] }
  0x4f   : > { %818 = vmatprep.mubr.f32.mxu0 %v4888_v7  ;;  %1281 = vmatprep.mubr.f32.mxu1 %v4888_v7  ;;  %v4032_v56 = vpack.c.bf16 %v3443_v55, %v3441_v54  ;;  %v3483_v54 = vld [vmem:[%s7247_s2 + $0x4d0] sm:$0xff]  ;;  %v3486_v55 = vld [vmem:[%s7247_s2 + $0x4e8] sm:$0xff] }
  0x51   : > { %3993 = vmatpush1.bf16.msra.mxu0 %v3992_v60  ;;  %4153 = vmatpush1.bf16.msra.mxu1 %v3992_v60  ;;  %v4034_v60 = vpack.c.bf16 %v3448_v59, %v3446_v57  ;;  %v3488_v57 = vld [vmem:[%s7247_s2 + $0x4f8] sm:$0xff] }
  0x52   : > { %3995 = vmatprep.subr.bf16.mxu0 %v3994_v61  ;;  %4155 = vmatprep.subr.bf16.mxu1 %v3994_v61  ;;  %v3445_v61 = vld [vmem:[%s7247_s2 + $0x3a0] sm:$0xff] }
  0x53   : > { %v4036_v1 = vpack.c.bf16 %v3447_v62, %v3445_v61  ;;  %v3487_v61 = vld [vmem:[%s7247_s2 + $0x4f0] sm:$0xff]  ;;  %v1485_v62 = vld [vmem:[%s7249_s4 + $0x8] sm:$0xff] }
  0x55   : > { %3997 = vmatpush1.bf16.msra.mxu0 %v3996_v3  ;;  %4157 = vmatpush1.bf16.msra.mxu1 %v3996_v3  ;;  %v4038_v3 = vpack.c.bf16 %v3452_v0, %v3450_v63  ;;  %v1487_v63 = vld [vmem:[%s7249_s4 + $0x18] sm:$0xff] }
  0x56   : > { %3999 = vmatprep.subr.bf16.mxu0 %v3998_v4  ;;  %4159 = vmatprep.subr.bf16.mxu1 %v3998_v4  ;;  %v3449_v4 = vld [vmem:[%s7247_s2 + $0x3c0] sm:$0xff] }
  0x57   : > { %v4040_v9 = vpack.c.bf16 %v3451_v5, %v3449_v4  ;;  %v1486_v4 = vld [vmem:[%s7249_s4 + $0x10] sm:$0xff]  ;;  %v1489_v5 = vld [vmem:[%s7249_s4 + $0x28] sm:$0xff] }
  0x59   : > { %4001 = vmatpush1.bf16.msra.mxu0 %v4000_v10  ;;  %4161 = vmatpush1.bf16.msra.mxu1 %v4000_v10  ;;  %v4042_v10 = vpack.c.bf16 %v3456_v8, %v3454_v6  ;;  %v1491_v6 = vld [vmem:[%s7249_s4 + $0x38] sm:$0xff]  ;;  %v500_v8 = vld [vmem:[%s5084_s19 + $0x2] sm:$0xff] }
  0x5a   : > { %4003 = vmatprep.subr.bf16.mxu0 %v4002_v11  ;;  %4163 = vmatprep.subr.bf16.mxu1 %v4002_v11  ;;  %v3453_v11 = vld [vmem:[%s7247_s2 + $0x3e0] sm:$0xff] }
  0x5b   : > { %v4044_v15 = vpack.c.bf16 %v3455_v12, %v3453_v11  ;;  %v1488_v11 = vld [vmem:[%s7249_s4 + $0x20] sm:$0xff]  ;;  %v1490_v12 = vld [vmem:[%s7249_s4 + $0x30] sm:$0xff] }
  0x5d   : > { %4005 = vmatpush1.bf16.msra.mxu0 %v4004_v16  ;;  %4165 = vmatpush1.bf16.msra.mxu1 %v4004_v16  ;;  %v4046_v16 = vpack.c.bf16 %v3460_v14, %v3458_v13  ;;  %v1493_v13 = vld [vmem:[%s7249_s4 + $0x48] sm:$0xff]  ;;  %v1495_v14 = vld [vmem:[%s7249_s4 + $0x58] sm:$0xff] }
  0x5e   : > { %4007 = vmatprep.subr.bf16.mxu0 %v4006_v17  ;;  %4167 = vmatprep.subr.bf16.mxu1 %v4006_v17  ;;  %v3457_v17 = vld [vmem:[%s7247_s2 + $0x400] sm:$0xff] }
  0x5f   : > { %v4048_v21 = vpack.c.bf16 %v3459_v18, %v3457_v17  ;;  %v4246_v17 = vpack.c.bf16 %v1495_v14, %v1493_v13  ;;  %v1492_v18 = vld [vmem:[%s7249_s4 + $0x40] sm:$0xff]  ;;  %v1535_v13 = vld [vmem:[%s7249_s4 + $0x198] sm:$0xff] }
  0x61   : > { %4009 = vmatpush1.bf16.msra.mxu0 %v4008_v22  ;;  %4169 = vmatpush1.bf16.msra.mxu1 %v4008_v22  ;;  %v5434_v22 = vld [vmem:[%s5095_s25 + $0x2] sm:$0xff] }
  0x62   : > { %4011 = vmatprep.subr.bf16.mxu0 %v4010_v23  ;;  %4171 = vmatprep.subr.bf16.mxu1 %v4010_v23  ;;  %v4050_v23 = vpack.c.bf16 %v3464_v20, %v3462_v19  ;;  %v1494_v19 = vld [vmem:[%s7249_s4 + $0x50] sm:$0xff]  ;;  %v1497_v20 = vld [vmem:[%s7249_s4 + $0x68] sm:$0xff] }
  0x65   : > { %4013 = vmatpush1.bf16.msra.mxu0 %v4012_v28  ;;  %4173 = vmatpush1.bf16.msra.mxu1 %v4012_v28  ;;  %v4052_v28 = vpack.c.bf16 %v3463_v25, %v3461_v24  ;;  %v1496_v24 = vld [vmem:[%s7249_s4 + $0x60] sm:$0xff]  ;;  %v1498_v25 = vld [vmem:[%s7249_s4 + $0x70] sm:$0xff] }
  0x66   : > { %4015 = vmatprep.subr.bf16.mxu0 %v4014_v29  ;;  %4175 = vmatprep.subr.bf16.mxu1 %v4014_v29  ;;  %v5451_v29 = vld [vmem:[%s5095_s25 + $0xa] sm:$0x3f] }
  0x68   : > { %819 = vmatmul.mubr.f32.vlgmr.msra.gmra.mrb[0].mxu0 %v5107_v58  ;;  %1282 = vmatmul.mubr.f32.vlgmr.msra.gmra.mrb[0].mxu1 %v5324_v35  ;;  %v3438_v58 = vld [vmem:[%s7247_s2 + $0x368] sm:$0xff] }
  0x69   : > { %4017 = vmatpush1.bf16.msra.mxu0 %v4016_v34  ;;  %4177 = vmatpush1.bf16.msra.mxu1 %v4016_v34  ;;  %v4026_v48 = vpack.c.bf16 %v3440_v46, %v3438_v58  ;;  %v3472_v34 = vld [vmem:[%s7247_s2 + $0x478] sm:$0xff] }
  0x6a   : > { %4019 = vmatprep.subr.bf16.mxu0 %v4018_v36  ;;  %4179 = vmatprep.subr.bf16.mxu1 %v4018_v36  ;;  %v4058_v36 = vpack.c.bf16 %v3472_v34, %v3470_v33  ;;  %v3480_v58 = vld [vmem:[%s7247_s2 + $0x4b8] sm:$0xff] }
  0x6b   : > { %824 = vmatprep.mubr.f32.mxu0 %v4888_v7  ;;  %1287 = vmatprep.mubr.f32.mxu1 %v4888_v7  ;;  %v1507_v33 = vld [vmem:[%s7249_s4 + $0xb8] sm:$0xff] }
  0x6c   : > { %825 = vmatmul.mubr.f32.gmra.mrb[2].mxu0 %v5127_v2  ;;  %1288 = vmatmul.mubr.f32.gmra.mrb[2].mxu1 %v5341_v42  ;;  %v3442_v2 = vld [vmem:[%s7247_s2 + $0x388] sm:$0xff] }
  0x6d   : > { %4021 = vmatpush1.bf16.msra.mxu0 %v4020_v41  ;;  %4181 = vmatpush1.bf16.msra.mxu1 %v4020_v41  ;;  %v4030_v53 = vpack.c.bf16 %v3444_v51, %v3442_v2  ;;  %v4060_v41 = vpack.c.bf16 %v3471_v38, %v3469_v37  ;;  %v3484_v2 = vld [vmem:[%s7247_s2 + $0x4d8] sm:$0xff]  ;;  %v1506_v37 = vld [vmem:[%s7249_s4 + $0xb0] sm:$0xff]  ;;  %v1509_v38 = vld [vmem:[%s7249_s4 + $0xc8] sm:$0xff] }
  0x6e   : > { %4023 = vmatprep.subr.bf16.mxu0 %v4022_v43  ;;  %4183 = vmatprep.subr.bf16.mxu1 %v4022_v43  ;;  %v3473_v43 = vld [vmem:[%s7247_s2 + $0x480] sm:$0xff] }
  0x6f   : > { %932 = vmatprep.mubr.f32.mxu0 %v4888_v7  ;;  %1362 = vmatprep.mubr.f32.mxu1 %v4888_v7  ;;  %v4064_v46 = vpack.c.bf16 %v3475_v44, %v3473_v43  ;;  %v1510_v43 = vld [vmem:[%s7249_s4 + $0xd0] sm:$0xff]  ;;  %v1513_v44 = vld [vmem:[%s7249_s4 + $0xe8] sm:$0xff] }
  0x71   : > { %4025 = vmatpush1.bf16.msra.mxu0 %v4024_v47  ;;  %4185 = vmatpush1.bf16.msra.mxu1 %v4024_v47  ;;  %v4066_v47 = vpack.c.bf16 %v3480_v58, %v3478_v45  ;;  %v1515_v45 = vld [vmem:[%s7249_s4 + $0xf8] sm:$0xff] }
  0x72   : > { %4027 = vmatprep.subr.bf16.mxu0 %v4026_v48  ;;  %4187 = vmatprep.subr.bf16.mxu1 %v4026_v48  ;;  %v3477_v48 = vld [vmem:[%s7247_s2 + $0x4a0] sm:$0xff] }
  0x73   : > { %v4068_v51 = vpack.c.bf16 %v3479_v49, %v3477_v48  ;;  %v1514_v48 = vld [vmem:[%s7249_s4 + $0xf0] sm:$0xff]  ;;  %v1517_v49 = vld [vmem:[%s7249_s4 + $0x108] sm:$0xff] }
  0x75   : > { %4029 = vmatpush1.bf16.msra.mxu0 %v4028_v52  ;;  %4189 = vmatpush1.bf16.msra.mxu1 %v4028_v52  ;;  %v4070_v52 = vpack.c.bf16 %v3484_v2, %v3482_v50  ;;  %v1519_v50 = vld [vmem:[%s7249_s4 + $0x118] sm:$0xff] }
  0x76   : > { %4031 = vmatprep.subr.bf16.mxu0 %v4030_v53  ;;  %4191 = vmatprep.subr.bf16.mxu1 %v4030_v53  ;;  %v3481_v53 = vld [vmem:[%s7247_s2 + $0x4c0] sm:$0xff] }
  0x77   : > { %v4072_v59 = vpack.c.bf16 %v3483_v54, %v3481_v53  ;;  %v1518_v53 = vld [vmem:[%s7249_s4 + $0x110] sm:$0xff]  ;;  %v1521_v54 = vld [vmem:[%s7249_s4 + $0x128] sm:$0xff] }
  0x79   : > { %4033 = vmatpush1.bf16.msra.mxu0 %v4032_v56  ;;  %4193 = vmatpush1.bf16.msra.mxu1 %v4032_v56  ;;  %v4074_v56 = vpack.c.bf16 %v3488_v57, %v3486_v55  ;;  %v1523_v55 = vld [vmem:[%s7249_s4 + $0x138] sm:$0xff] }
  0x7a   : > { %4035 = vmatprep.subr.bf16.mxu0 %v4034_v60  ;;  %4195 = vmatprep.subr.bf16.mxu1 %v4034_v60  ;;  %v3485_v60 = vld [vmem:[%s7247_s2 + $0x4e0] sm:$0xff] }
  0x7b   : > { %v4076_v0 = vpack.c.bf16 %v3487_v61, %v3485_v60  ;;  %v1522_v60 = vld [vmem:[%s7249_s4 + $0x130] sm:$0xff]  ;;  %v1525_v61 = vld [vmem:[%s7249_s4 + $0x148] sm:$0xff] }
  0x7d   : > { %4037 = vmatpush1.bf16.msra.mxu0 %v4036_v1  ;;  %4197 = vmatpush1.bf16.msra.mxu1 %v4036_v1  ;;  %v4238_v1 = vpack.c.bf16 %v1487_v63, %v1485_v62  ;;  %v1527_v62 = vld [vmem:[%s7249_s4 + $0x158] sm:$0xff] }
  0x7e   : > { %4039 = vmatprep.subr.bf16.mxu0 %v4038_v3  ;;  %4199 = vmatprep.subr.bf16.mxu1 %v4038_v3  ;;  %v1484_v3 = vld [vmem:[%s7249_s4] sm:$0xff] }
  0x81   : > { %4041 = vmatpush1.bf16.msra.mxu0 %v4040_v9  ;;  %4201 = vmatpush1.bf16.msra.mxu1 %v4040_v9  ;;  %v4240_v9 = vpack.c.bf16 %v1486_v4, %v1484_v3  ;;  %v1526_v3 = vld [vmem:[%s7249_s4 + $0x150] sm:$0xff]  ;;  %v1529_v4 = vld [vmem:[%s7249_s4 + $0x168] sm:$0xff] }
  0x82   : > { %4043 = vmatprep.subr.bf16.mxu0 %v4042_v10  ;;  %4203 = vmatprep.subr.bf16.mxu1 %v4042_v10  ;;  %v4242_v10 = vpack.c.bf16 %v1491_v6, %v1489_v5  ;;  %v1531_v5 = vld [vmem:[%s7249_s4 + $0x178] sm:$0xff] }
  0x85   : > { %4045 = vmatpush1.bf16.msra.mxu0 %v4044_v15  ;;  %4205 = vmatpush1.bf16.msra.mxu1 %v4044_v15  ;;  %v501_v15 = vld [vmem:[%s5084_s19 + $0xa] sm:$0x3f] }
  0x86   : > { %4047 = vmatprep.subr.bf16.mxu0 %v4046_v16  ;;  %4207 = vmatprep.subr.bf16.mxu1 %v4046_v16  ;;  %v4244_v16 = vpack.c.bf16 %v1490_v12, %v1488_v11  ;;  %v1533_v12 = vld [vmem:[%s7249_s4 + $0x188] sm:$0xff] }
  0x87   : > { %v4286_v14 = vpack.c.bf16 %v1535_v13, %v1533_v12  ;;  %v3523_v12 = vld [vmem:[%s7250_s5 + $0x2c0] sm:$0xff]  ;;  %v3525_v13 = vld [vmem:[%s7250_s5 + $0x2d0] sm:$0xff] }
  0x88   : > { %933 = vmatmul.mubr.f32.vlgmr.msra.gmra.mrb[0].mxu0 %v5324_v35  ;;  %1363 = vmatmul.mubr.f32.vlgmr.msra.gmra.mrb[0].mxu1 %v5434_v22  ;;  %v4056_v35 = vpack.c.bf16 %v3467_v32, %v3465_v31  ;;  %v1502_v31 = vld [vmem:[%s7249_s4 + $0x90] sm:$0xff]  ;;  %v1505_v32 = vld [vmem:[%s7249_s4 + $0xa8] sm:$0xff] }
  0x89   : > { %4049 = vmatpush1.bf16.msra.mxu0 %v4048_v21  ;;  %4209 = vmatpush1.bf16.msra.mxu1 %v4048_v21  ;;  %v1499_v21 = vld [vmem:[%s7249_s4 + $0x78] sm:$0xff] }
  0x8a   : > { %4051 = vmatprep.subr.bf16.mxu0 %v4050_v23  ;;  %4211 = vmatprep.subr.bf16.mxu1 %v4050_v23  ;;  %v4250_v23 = vpack.c.bf16 %v1499_v21, %v1497_v20  ;;  %v1536_v21 = vld [vmem:[%s7249_s4 + $0x1a0] sm:$0xff] }
  0x8b   : > { %938 = vmatprep.mubr.f32.mxu0 %v4888_v7  ;;  %1368 = vmatprep.mubr.f32.mxu1 %v4888_v7 }
  0x8c   : > { %939 = vmatmul.mubr.f32.gmra.mrb[2].mxu0 %v5341_v42  ;;  %1369 = vmatmul.mubr.f32.gmra.mrb[2].mxu1 %v5451_v29  ;;  %v4062_v42 = vpack.c.bf16 %v3476_v40, %v3474_v39  ;;  %v1511_v39 = vld [vmem:[%s7249_s4 + $0xd8] sm:$0xff] }
  0x8d   : > { %4053 = vmatpush1.bf16.msra.mxu0 %v4052_v28  ;;  %4213 = vmatpush1.bf16.msra.mxu1 %v4052_v28  ;;  %v4252_v28 = vpack.c.bf16 %v1498_v25, %v1496_v24  ;;  %v3492_v24 = vld [vmem:[%s7250_s5 + $0x1c8] sm:$0xff]  ;;  %v3494_v25 = vld [vmem:[%s7250_s5 + $0x1d8] sm:$0xff] }
  0x8e   : > { %4055 = vmatprep.subr.bf16.mxu0 %v4054_v30  ;;  %4215 = vmatprep.subr.bf16.mxu1 %v4054_v30  ;;  %v1500_v30 = vld [vmem:[%s7249_s4 + $0x80] sm:$0xff] }
  0x8f   : > { %1046 = vmatprep.mubr.f32.mxu0 %v4888_v7  ;;  %1443 = vmatprep.mubr.f32.mxu1 %v4888_v7  ;;  %v4256_v34 = vpack.c.bf16 %v1502_v31, %v1500_v30  ;;  %v3498_v30 = vld [vmem:[%s7250_s5 + $0x1f8] sm:$0xff] }
  0x91   : > { %4057 = vmatpush1.bf16.msra.mxu0 %v4056_v35  ;;  %4217 = vmatpush1.bf16.msra.mxu1 %v4056_v35  ;;  %v4258_v35 = vpack.c.bf16 %v1507_v33, %v1505_v32  ;;  %v3495_v33 = vld [vmem:[%s7250_s5 + $0x1e0] sm:$0xff] }
  0x92   : > { %4059 = vmatprep.subr.bf16.mxu0 %v4058_v36  ;;  %4219 = vmatprep.subr.bf16.mxu1 %v4058_v36  ;;  %v1504_v36 = vld [vmem:[%s7249_s4 + $0xa0] sm:$0xff] }
  0x93   : > { %v4260_v40 = vpack.c.bf16 %v1506_v37, %v1504_v36  ;;  %v3502_v36 = vld [vmem:[%s7250_s5 + $0x218] sm:$0xff] }
  0x95   : > { %4061 = vmatpush1.bf16.msra.mxu0 %v4060_v41  ;;  %4221 = vmatpush1.bf16.msra.mxu1 %v4060_v41  ;;  %v4262_v41 = vpack.c.bf16 %v1511_v39, %v1509_v38  ;;  %v3499_v39 = vld [vmem:[%s7250_s5 + $0x200] sm:$0xff] }
  0x96   : > { %4063 = vmatprep.subr.bf16.mxu0 %v4062_v42  ;;  %4223 = vmatprep.subr.bf16.mxu1 %v4062_v42  ;;  %v1508_v42 = vld [vmem:[%s7249_s4 + $0xc0] sm:$0xff] }
  0x97   : > { %v4264_v58 = vpack.c.bf16 %v1510_v43, %v1508_v42  ;;  %v3506_v42 = vld [vmem:[%s7250_s5 + $0x238] sm:$0xff] }
  0x99   : > { %4065 = vmatpush1.bf16.msra.mxu0 %v4064_v46  ;;  %4225 = vmatpush1.bf16.msra.mxu1 %v4064_v46  ;;  %v4266_v46 = vpack.c.bf16 %v1515_v45, %v1513_v44  ;;  %v3503_v45 = vld [vmem:[%s7250_s5 + $0x220] sm:$0xff] }
  0x9a   : > { %4067 = vmatprep.subr.bf16.mxu0 %v4066_v47  ;;  %4227 = vmatprep.subr.bf16.mxu1 %v4066_v47  ;;  %v1512_v47 = vld [vmem:[%s7249_s4 + $0xe0] sm:$0xff] }
  0x9b   : > { %v4268_v2 = vpack.c.bf16 %v1514_v48, %v1512_v47  ;;  %v3510_v47 = vld [vmem:[%s7250_s5 + $0x258] sm:$0xff] }
  0x9d   : > { %4069 = vmatpush1.bf16.msra.mxu0 %v4068_v51  ;;  %4229 = vmatpush1.bf16.msra.mxu1 %v4068_v51  ;;  %v4270_v51 = vpack.c.bf16 %v1519_v50, %v1517_v49  ;;  %v3507_v50 = vld [vmem:[%s7250_s5 + $0x240] sm:$0xff] }
  0x9e   : > { %4071 = vmatprep.subr.bf16.mxu0 %v4070_v52  ;;  %4231 = vmatprep.subr.bf16.mxu1 %v4070_v52  ;;  %v1516_v52 = vld [vmem:[%s7249_s4 + $0x100] sm:$0xff] }
  0x9f   : > { %v4272_v57 = vpack.c.bf16 %v1518_v53, %v1516_v52  ;;  %v3514_v52 = vld [vmem:[%s7250_s5 + $0x278] sm:$0xff] }
  0xa1   : > { %4073 = vmatpush1.bf16.msra.mxu0 %v4072_v59  ;;  %4233 = vmatpush1.bf16.msra.mxu1 %v4072_v59  ;;  %v4274_v59 = vpack.c.bf16 %v1523_v55, %v1521_v54  ;;  %v3511_v55 = vld [vmem:[%s7250_s5 + $0x260] sm:$0xff] }
  0xa2   : > { %4075 = vmatprep.subr.bf16.mxu0 %v4074_v56  ;;  %4235 = vmatprep.subr.bf16.mxu1 %v4074_v56  ;;  %v1520_v56 = vld [vmem:[%s7249_s4 + $0x120] sm:$0xff] }
  0xa3   : > { %v4276_v63 = vpack.c.bf16 %v1522_v60, %v1520_v56  ;;  %v3518_v56 = vld [vmem:[%s7250_s5 + $0x298] sm:$0xff] }
  0xa5   : > { %4077 = vmatpush1.bf16.msra.mxu0 %v4076_v0  ;;  %4237 = vmatpush1.bf16.msra.mxu1 %v4076_v0  ;;  %v4278_v0 = vpack.c.bf16 %v1527_v62, %v1525_v61  ;;  %v3515_v62 = vld [vmem:[%s7250_s5 + $0x280] sm:$0xff] }
  0xa6   : > { %4239 = vmatprep.subr.bf16.mxu0 %v4238_v1  ;;  %v1524_v1 = vld [vmem:[%s7249_s4 + $0x140] sm:$0xff] }
  0xa7   : > { %v4280_v6 = vpack.c.bf16 %v1526_v3, %v1524_v1  ;;  %v3522_v1 = vld [vmem:[%s7250_s5 + $0x2b8] sm:$0xff] }
  0xa8   : > { %1047 = vmatmul.mubr.f32.vlgmr.msra.gmra.mrb[0].mxu0 %v5434_v22  ;;  %1444 = vmatmul.mubr.f32.vlgmr.msra.gmra.mrb[0].mxu1 %v500_v8  ;;  %v4248_v22 = vpack.c.bf16 %v1494_v19, %v1492_v18  ;;  %v4282_v8 = vpack.c.bf16 %v1531_v5, %v1529_v4  ;;  %v1537_v18 = vld [vmem:[%s7249_s4 + $0x1a8] sm:$0xff]  ;;  %v1539_v19 = vld [vmem:[%s7249_s4 + $0x1b8] sm:$0xff]  ;;  %v3519_v5 = vld [vmem:[%s7250_s5 + $0x2a0] sm:$0xff] }
  0xa9   : > { %1052 = vmatprep.mubr.f32.mxu0 %v4888_v7  ;;  %1449 = vmatprep.mubr.f32.mxu1 %v4888_v7  ;;  %v4290_v20 = vpack.c.bf16 %v1539_v19, %v1537_v18  ;;  %v1466_v18 = vlaneseq }
  0xaa   : > { %4241 = vmatpush1.bf16.msra.mxu0 %v4240_v9  ;;  %v1528_v9 = vld [vmem:[%s7249_s4 + $0x160] sm:$0xff] }
  0xab   : > { %4243 = vmatprep.subr.bf16.mxu0 %v4242_v10  ;;  %v1530_v10 = vld [vmem:[%s7249_s4 + $0x170] sm:$0xff]  ;;  %v1467_v19 = vshrl.u32 %v1466_v18, 7 }
  0xac   : > { %1053 = vmatmul.mubr.f32.gmra.mrb[2].mxu0 %v5451_v29  ;;  %1450 = vmatmul.mubr.f32.gmra.mrb[2].mxu1 %v501_v15  ;;  %v4254_v29 = vpack.c.bf16 %v1503_v27, %v1501_v26  ;;  %v4284_v11 = vpack.c.bf16 %v1530_v10, %v1528_v9  ;;  %v1532_v15 = vld [vmem:[%s7249_s4 + $0x180] sm:$0xff]  ;;  %v4294_v27 = vpack.c.bf16 %v3494_v25, %v3492_v24  ;;  %v3526_v9 = vld [vmem:[%s7250_s5 + $0x2d8] sm:$0xff] }
  0xad   : > { %v3491_v26 = vld [vmem:[%s7250_s5 + $0x1c0] sm:$0xff] }
  0xae   : > { %4245 = vmatpush1.bf16.msra.mxu0 %v4244_v16  ;;  %v1534_v16 = vld [vmem:[%s7249_s4 + $0x190] sm:$0xff]  ;;  %4295 = vmatprep.subr.bf16.mxu1 %v4294_v27 }
  0xaf   : > { %4247 = vmatprep.subr.bf16.mxu0 %v4246_v17  ;;  %v4288_v17 = vpack.c.bf16 %v1534_v16, %v1532_v15  ;;  %v3530_v15 = vld [vmem:[%s7250_s5 + $0x2f8] sm:$0xff]  ;;  %v4328_v16 = vpack.c.bf16 %v3525_v13, %v3523_v12 }
  0xb2   : > { %4249 = vmatpush1.bf16.msra.mxu0 %v4248_v22  ;;  %v1538_v22 = vld [vmem:[%s7249_s4 + $0x1b0] sm:$0xff] }
  0xb3   : > { %4251 = vmatprep.subr.bf16.mxu0 %v4250_v23  ;;  %v4292_v23 = vpack.c.bf16 %v1538_v22, %v1536_v21  ;;  %v1464_v21 = vld [vmem:[%s7248_s3] sm:$0x3]  ;;  %v5818_v22 = vsub.s32 1, %v1467_v19 }
  0xb6   : > { %4253 = vmatpush1.bf16.msra.mxu0 %v4252_v28  ;;  %v3493_v28 = vld [vmem:[%s7250_s5 + $0x1d0] sm:$0xff] }
  0xb7   : > { %4255 = vmatprep.subr.bf16.mxu0 %v4254_v29  ;;  %v3496_v29 = vld [vmem:[%s7250_s5 + $0x1e8] sm:$0xff]  ;;  %v4296_v31 = vpack.c.bf16 %v3493_v28, %v3491_v26  ;;  %v1473_v26 = vrot.slane %v1464_v21, %v5818_v22 }
  0xb8   : > { %v4298_v32 = vpack.c.bf16 %v3498_v30, %v3496_v29 }
  0xb9   : > { %4297 = vmatpush1.bf16.msra.mxu1 %v4296_v31 }
  0xba   : > { %4257 = vmatpush1.bf16.msra.mxu0 %v4256_v34  ;;  %v3497_v34 = vld [vmem:[%s7250_s5 + $0x1f0] sm:$0xff]  ;;  %4299 = vmatprep.subr.bf16.mxu1 %v4298_v32 }
  0xbb   : > { %4259 = vmatprep.subr.bf16.mxu0 %v4258_v35  ;;  %v3500_v35 = vld [vmem:[%s7250_s5 + $0x208] sm:$0xff]  ;;  %v4300_v37 = vpack.c.bf16 %v3497_v34, %v3495_v33 }
  0xbc   : > { %v4302_v38 = vpack.c.bf16 %v3502_v36, %v3500_v35 }
  0xbd   : > { %4301 = vmatpush1.bf16.msra.mxu1 %v4300_v37 }
  0xbe   : > { %4261 = vmatpush1.bf16.msra.mxu0 %v4260_v40  ;;  %v3501_v40 = vld [vmem:[%s7250_s5 + $0x210] sm:$0xff]  ;;  %4303 = vmatprep.subr.bf16.mxu1 %v4302_v38 }
  0xbf   : > { %4263 = vmatprep.subr.bf16.mxu0 %v4262_v41  ;;  %v3504_v41 = vld [vmem:[%s7250_s5 + $0x228] sm:$0xff]  ;;  %v4304_v43 = vpack.c.bf16 %v3501_v40, %v3499_v39 }
  0xc0   : > { %v4306_v44 = vpack.c.bf16 %v3506_v42, %v3504_v41 }
  0xc1   : > { %4305 = vmatpush1.bf16.msra.mxu1 %v4304_v43 }
  0xc2   : > { %4265 = vmatpush1.bf16.msra.mxu0 %v4264_v58  ;;  %v3505_v58 = vld [vmem:[%s7250_s5 + $0x230] sm:$0xff]  ;;  %4307 = vmatprep.subr.bf16.mxu1 %v4306_v44 }
  0xc3   : > { %4267 = vmatprep.subr.bf16.mxu0 %v4266_v46  ;;  %v3508_v46 = vld [vmem:[%s7250_s5 + $0x248] sm:$0xff]  ;;  %v4308_v48 = vpack.c.bf16 %v3505_v58, %v3503_v45  ;;  %v3527_v45 = vld [vmem:[%s7250_s5 + $0x2e0] sm:$0xff]  ;;  %v3529_v58 = vld [vmem:[%s7250_s5 + $0x2f0] sm:$0xff] }
  0xc4   : > { %v4310_v49 = vpack.c.bf16 %v3510_v47, %v3508_v46  ;;  %v4332_v46 = vpack.c.bf16 %v3529_v58, %v3527_v45  ;;  %v3532_v47 = vld [vmem:[%s7250_s5 + $0x308] sm:$0xff]  ;;  %v1647_v45 = vld [vmem:[%s7250_s5 + $0x50] sm:$0xff] }
  0xc5   : > { %4309 = vmatpush1.bf16.msra.mxu1 %v4308_v48  ;;  %v3534_v48 = vld [vmem:[%s7250_s5 + $0x318] sm:$0xff]  ;;  %v1650_v58 = vld [vmem:[%s7250_s5 + $0x68] sm:$0xff] }
  0xc6   : > { %4269 = vmatpush1.bf16.msra.mxu0 %v4268_v2  ;;  %v3509_v2 = vld [vmem:[%s7250_s5 + $0x250] sm:$0xff]  ;;  %4311 = vmatprep.subr.bf16.mxu1 %v4310_v49  ;;  %v4334_v49 = vpack.c.bf16 %v3534_v48, %v3532_v47 }
  0xc7   : > { %4271 = vmatprep.subr.bf16.mxu0 %v4270_v51  ;;  %v3512_v51 = vld [vmem:[%s7250_s5 + $0x268] sm:$0xff]  ;;  %v4312_v53 = vpack.c.bf16 %v3509_v2, %v3507_v50  ;;  %v3531_v50 = vld [vmem:[%s7250_s5 + $0x300] sm:$0xff]  ;;  %v3533_v2 = vld [vmem:[%s7250_s5 + $0x310] sm:$0xff] }
  0xc8   : > { %v4314_v54 = vpack.c.bf16 %v3514_v52, %v3512_v51  ;;  %v4336_v51 = vpack.c.bf16 %v3533_v2, %v3531_v50  ;;  %v3536_v52 = vld [vmem:[%s7250_s5 + $0x328] sm:$0xff]  ;;  %v1649_v50 = vld [vmem:[%s7250_s5 + $0x60] sm:$0xff]  ;;  %v1651_v2 = vld [vmem:[%s7250_s5 + $0x70] sm:$0xff] }
  0xc9   : > { %4313 = vmatpush1.bf16.msra.mxu1 %v4312_v53  ;;  %v3538_v53 = vld [vmem:[%s7250_s5 + $0x338] sm:$0xff] }
  0xca   : > { %4273 = vmatpush1.bf16.msra.mxu0 %v4272_v57  ;;  %v3513_v57 = vld [vmem:[%s7250_s5 + $0x270] sm:$0xff]  ;;  %4315 = vmatprep.subr.bf16.mxu1 %v4314_v54  ;;  %v4338_v54 = vpack.c.bf16 %v3538_v53, %v3536_v52  ;;  %v1656_v52 = vld [vmem:[%s7250_s5 + $0x98] sm:$0xff]  ;;  %v4364_v53 = vpack.c.bf16 %v1651_v2, %v1649_v50  ;;  %v1689_v50 = vld [vmem:[%s7250_s5 + $0x1a0] sm:$0xff] }
  0xcb   : > { %4275 = vmatprep.subr.bf16.mxu0 %v4274_v59  ;;  %v3516_v59 = vld [vmem:[%s7250_s5 + $0x288] sm:$0xff]  ;;  %v4316_v60 = vpack.c.bf16 %v3513_v57, %v3511_v55  ;;  %v3535_v55 = vld [vmem:[%s7250_s5 + $0x320] sm:$0xff]  ;;  %v3537_v57 = vld [vmem:[%s7250_s5 + $0x330] sm:$0xff] }
  0xcc   : > { %v4318_v61 = vpack.c.bf16 %v3518_v56, %v3516_v59  ;;  %v4340_v59 = vpack.c.bf16 %v3537_v57, %v3535_v55  ;;  %v3540_v56 = vld [vmem:[%s7250_s5 + $0x348] sm:$0xff]  ;;  %v1653_v55 = vld [vmem:[%s7250_s5 + $0x80] sm:$0xff]  ;;  %v1655_v57 = vld [vmem:[%s7250_s5 + $0x90] sm:$0xff] }
  0xcd   : > { %4317 = vmatpush1.bf16.msra.mxu1 %v4316_v60  ;;  %v3542_v60 = vld [vmem:[%s7250_s5 + $0x358] sm:$0xff]  ;;  %v1691_v2 = vld [vmem:[%s7250_s5 + $0x1b0] sm:$0xff] }
  0xce   : > { %4277 = vmatpush1.bf16.msra.mxu0 %v4276_v63  ;;  %v3517_v63 = vld [vmem:[%s7250_s5 + $0x290] sm:$0xff]  ;;  %4319 = vmatprep.subr.bf16.mxu1 %v4318_v61  ;;  %v3539_v61 = vld [vmem:[%s7250_s5 + $0x340] sm:$0xff] }
  0xcf   : > { %4279 = vmatprep.subr.bf16.mxu0 %v4278_v0  ;;  %v3520_v0 = vld [vmem:[%s7250_s5 + $0x2a8] sm:$0xff]  ;;  %v4320_v3 = vpack.c.bf16 %v3517_v63, %v3515_v62  ;;  %v4342_v62 = vpack.c.bf16 %v3542_v60, %v3540_v56  ;;  %v3541_v63 = vld [vmem:[%s7250_s5 + $0x350] sm:$0xff]  ;;  %v1660_v56 = vld [vmem:[%s7250_s5 + $0xb8] sm:$0xff]  ;;  %v4368_v60 = vpack.c.bf16 %v1655_v57, %v1653_v55 }
  0xd0   : > { %v4322_v4 = vpack.c.bf16 %v3522_v1, %v3520_v0  ;;  %v3544_v0 = vld [vmem:[%s7250_s5 + $0x368] sm:$0xff]  ;;  %v3546_v1 = vld [vmem:[%s7250_s5 + $0x378] sm:$0xff]  ;;  %v3551_v55 = vld [vmem:[%s7250_s5 + $0x380] sm:$0xff] }
  0xd1   : > { %4321 = vmatpush1.bf16.msra.mxu1 %v4320_v3  ;;  %v4344_v3 = vpack.c.bf16 %v3541_v63, %v3539_v61  ;;  %v1659_v63 = vld [vmem:[%s7250_s5 + $0xb0] sm:$0xff] }
  0xd2   : > { %4281 = vmatpush1.bf16.msra.mxu0 %v4280_v6  ;;  %v3521_v6 = vld [vmem:[%s7250_s5 + $0x2b0] sm:$0xff]  ;;  %4323 = vmatprep.subr.bf16.mxu1 %v4322_v4  ;;  %v4346_v4 = vpack.c.bf16 %v3546_v1, %v3544_v0  ;;  %v1662_v0 = vld [vmem:[%s7250_s5 + $0xc8] sm:$0xff]  ;;  %v1664_v1 = vld [vmem:[%s7250_s5 + $0xd8] sm:$0xff] }
  0xd3   : > { %4283 = vmatprep.subr.bf16.mxu0 %v4282_v8  ;;  %v3524_v8 = vld [vmem:[%s7250_s5 + $0x2c8] sm:$0xff]  ;;  %v4324_v10 = vpack.c.bf16 %v3521_v6, %v3519_v5  ;;  %v3543_v5 = vld [vmem:[%s7250_s5 + $0x360] sm:$0xff]  ;;  %v3545_v6 = vld [vmem:[%s7250_s5 + $0x370] sm:$0xff] }
  0xd4   : > { %v3553_v57 = vld [vmem:[%s7250_s5 + $0x390] sm:$0xff] }
  0xd5   : > { %4325 = vmatpush1.bf16.msra.mxu1 %v4324_v10  ;;  %v1640_v10 = vld [vmem:[%s7250_s5 + $0x18] sm:$0xff] }
  0xd6   : > { %4285 = vmatpush1.bf16.msra.mxu0 %v4284_v11  ;;  %v4326_v11 = vpack.c.bf16 %v3526_v9, %v3524_v8  ;;  %v4348_v8 = vpack.c.bf16 %v3545_v6, %v3543_v5  ;;  %v1638_v9 = vld [vmem:[%s7250_s5 + $0x8] sm:$0xff]  ;;  %v1661_v5 = vld [vmem:[%s7250_s5 + $0xc0] sm:$0xff]  ;;  %v1663_v6 = vld [vmem:[%s7250_s5 + $0xd0] sm:$0xff] }
  0xd7   : > { %4287 = vmatprep.subr.bf16.mxu0 %v4286_v14  ;;  %v3528_v14 = vld [vmem:[%s7250_s5 + $0x2e8] sm:$0xff] }
  0xd8   : > { %4327 = vmatprep.subr.bf16.mxu1 %v4326_v11  ;;  %v4350_v11 = vpack.c.bf16 %v1640_v10, %v1638_v9  ;;  %v1668_v9 = vld [vmem:[%s7250_s5 + $0xf8] sm:$0xff]  ;;  %v4376_v10 = vpack.c.bf16 %v1663_v6, %v1661_v5 }
  0xd9   : > { %4329 = vmatpush1.bf16.msra.mxu1 %v4328_v16 }
  0xda   : > { %4289 = vmatpush1.bf16.msra.mxu0 %v4288_v17  ;;  %v4330_v17 = vpack.c.bf16 %v3530_v15, %v3528_v14 }
  0xdb   : > { %4291 = vmatprep.subr.bf16.mxu0 %v4290_v20  ;;  %v5813_v20 = vsub.s32 0, %v1467_v19 }
  0xdc   : > { %4331 = vmatprep.subr.bf16.mxu1 %v4330_v17 }
  0xdd   : > { %4333 = vmatpush1.bf16.msra.mxu1 %v4332_v46  ;;  %v1652_v46 = vld [vmem:[%s7250_s5 + $0x78] sm:$0xff] }
  0xde   : > { %4293 = vmatpush1.bf16.msra.mxu0 %v4292_v23  ;;  %v1469_v23 = vrot.slane %v1464_v21, %v5813_v20  ;;  %4335 = vmatprep.subr.bf16.mxu1 %v4334_v49  ;;  %v4362_v49 = vpack.c.bf16 %v1652_v46, %v1650_v58  ;;  %v1687_v58 = vld [vmem:[%s7250_s5 + $0x190] sm:$0xff]  ;;  %v1690_v46 = vld [vmem:[%s7250_s5 + $0x1a8] sm:$0xff] }
  0xe1   : > { %4337 = vmatpush1.bf16.msra.mxu1 %v4336_v51  ;;  %v1654_v51 = vld [vmem:[%s7250_s5 + $0x88] sm:$0xff] }
  0xe2   : > { %4339 = vmatprep.subr.bf16.mxu1 %v4338_v54  ;;  %v4366_v54 = vpack.c.bf16 %v1656_v52, %v1654_v51  ;;  %v3552_v51 = vld [vmem:[%s7250_s5 + $0x388] sm:$0xff]  ;;  %v3554_v52 = vld [vmem:[%s7250_s5 + $0x398] sm:$0xff] }
  0xe5   : > { %4341 = vmatpush1.bf16.msra.mxu1 %v4340_v59  ;;  %v1658_v59 = vld [vmem:[%s7250_s5 + $0xa8] sm:$0xff] }
  0xe6   : > { %4343 = vmatprep.subr.bf16.mxu1 %v4342_v62  ;;  %v4370_v61 = vpack.c.bf16 %v1660_v56, %v1658_v59  ;;  %v1657_v62 = vld [vmem:[%s7250_s5 + $0xa0] sm:$0xff]  ;;  %v3556_v59 = vld [vmem:[%s7250_s5 + $0x3a8] sm:$0xff]  ;;  %v3558_v56 = vld [vmem:[%s7250_s5 + $0x3b8] sm:$0xff] }
  0xe9   : > { %4345 = vmatpush1.bf16.msra.mxu1 %v4344_v3  ;;  %v4372_v3 = vpack.c.bf16 %v1659_v63, %v1657_v62  ;;  %v4410_v62 = vpack.c.bf16 %v3558_v56, %v3556_v59  ;;  %v3555_v63 = vld [vmem:[%s7250_s5 + $0x3a0] sm:$0xff]  ;;  %v3592_v59 = vld [vmem:[%s7250_s5 + $0x4c8] sm:$0xff]  ;;  %v3594_v56 = vld [vmem:[%s7250_s5 + $0x4d8] sm:$0xff] }
  0xea   : > { %4347 = vmatprep.subr.bf16.mxu1 %v4346_v4  ;;  %v4374_v4 = vpack.c.bf16 %v1664_v1, %v1662_v0  ;;  %v3557_v0 = vld [vmem:[%s7250_s5 + $0x3b0] sm:$0xff] }
  0xed   : > { %4349 = vmatpush1.bf16.msra.mxu1 %v4348_v8  ;;  %v1666_v8 = vld [vmem:[%s7250_s5 + $0xe8] sm:$0xff] }
  0xee   : > { %4351 = vmatprep.subr.bf16.mxu1 %v4350_v11  ;;  %v4378_v11 = vpack.c.bf16 %v1668_v9, %v1666_v8  ;;  %v4412_v8 = vpack.c.bf16 %v3557_v0, %v3555_v63  ;;  %v3591_v63 = vld [vmem:[%s7250_s5 + $0x4c0] sm:$0xff]  ;;  %v3593_v0 = vld [vmem:[%s7250_s5 + $0x4d0] sm:$0xff] }
 0x17b   : > { %v1048_v24 = vpop.f32.mrb[0].mxu0  ;;  %v1445_v25 = vpop.f32.mrb[0].mxu1 }
 0x17c   : > { %v1460_v27 = vmax.f32 %v1048_v24, %v1445_v25  ;;  %v1050_v28 = vpop.f32.mrb[1].mxu0  ;;  %v1447_v29 = vpop.f32.mrb[1].mxu1 }
 0x17d   : > { %v1461_v30 = vmax.f32 %v1050_v28, %v1447_v29  ;;  %v1642_v29 = vld [vmem:[%s7250_s5 + $0x28] sm:$0xff] }
 0x17e   : > { %v1476_v31 = vadd.f32 %v1469_v23, %v1460_v27 }
 0x17f   : > { %v1477_v32 = vadd.f32 %v1473_v26, %v1461_v30  ;;  %v1054_v33 = vpop.f32.mrb[2].mxu0  ;;  %v1451_v34 = vpop.f32.mrb[2].mxu1  ;;  %v1644_v30 = vld [vmem:[%s7250_s5 + $0x38] sm:$0xff] }
 0x180   : > { %v1462_v35 = vmax.f32 %v1054_v33, %v1451_v34  ;;  %v1056_v36 = vpop.f32.mrb[3].mxu0  ;;  %v1453_v37 = vpop.f32.mrb[3].mxu1  ;;  %v1480_v40 = vmax.f32 %v1476_v31, 0.0 }
 0x181   : > { %v1481_v38 = vmax.f32 %v1477_v32, 0.0  ;;  %v1463_v39 = vmax.f32 %v1056_v36, %v1453_v37  ;;  %v4354_v36 = vpack.c.bf16 %v1644_v30, %v1642_v29  ;;  %v1641_v37 = vld [vmem:[%s7250_s5 + $0x20] sm:$0xff]  ;;  %v1678_v29 = vld [vmem:[%s7250_s5 + $0x148] sm:$0xff]  ;;  %v1680_v30 = vld [vmem:[%s7250_s5 + $0x158] sm:$0xff] }
 0x182   : > { %v1478_v41 = vadd.f32 %v1469_v23, %v1462_v35  ;;  %v1637_v23 = vld [vmem:[%s7250_s5] sm:$0xff] }
 0x183   : > { %v1479_v42 = vadd.f32 %v1473_v26, %v1463_v39  ;;  %3489 = vmatprep.mubr.msk.f32.mxu0 %vm1540_vm0, %v1481_v38  ;;  %v1639_v26 = vld [vmem:[%s7250_s5 + $0x10] sm:$0xff] }
 0x184   : > { %1612 = vmatmul.mubr.f32.vlgmr.msra.gmra.mrb[4].mxu0 %v1480_v40  ;;  %v1482_v44 = vmax.f32 %v1478_v41, 0.0  ;;  %v4352_v34 = vpack.c.bf16 %v1639_v26, %v1637_v23  ;;  %v1648_v41 = vld [vmem:[%s7250_s5 + $0x58] sm:$0xff]  ;;  %v1674_v23 = vld [vmem:[%s7250_s5 + $0x128] sm:$0xff] }
 0x185   : > { %v1483_v43 = vmax.f32 %v1479_v42, 0.0 }
 0x187   : > { %3490 = vmatprep.mubr.msk.f32.mxu0 %vm1540_vm0, %v1483_v43 }
 0x188   : > { %1618 = vmatmul.mubr.f32.gmra.mrb[6].mxu0 %v1482_v44 }
 0x257   : > { %v1613_v12 = vpop.f32.mrb[4].mxu0 }
 0x258   : > { %v5884_v13 = vmax.f32 %v1480_v40, %v1613_v12  ;;  %v1615_v14 = vpop.f32.mrb[5].mxu0  ;;  %v1646_v40 = vld [vmem:[%s7250_s5 + $0x48] sm:$0xff]  ;;  %v1665_v12 = vld [vmem:[%s7250_s5 + $0xe0] sm:$0xff] }
 0x259   : > { %v1625_v15 = vmax.f32 %v1481_v38, %v1615_v14  ;;  %v1643_v38 = vld [vmem:[%s7250_s5 + $0x30] sm:$0xff] }
 0x25a   : > { %1628 = vst [vmem:[#allocation2] sm:$0xff] %v5884_v13  ;;  %v4356_v42 = vpack.c.bf16 %v1643_v38, %v1641_v37  ;;  %v1667_v14 = vld [vmem:[%s7250_s5 + $0xf0] sm:$0xff] }
 0x25b   : > { %1629 = vst.msk [vmem:[#allocation2 + $0x8] sm:$0xff] %vm1540_vm0, %v1625_v15  ;;  %v1619_v16 = vpop.f32.mrb[6].mxu0  ;;  %v1670_v15 = vld [vmem:[%s7250_s5 + $0x108] sm:$0xff] }
 0x25c   : > { %v1626_v17 = vmax.f32 %v1482_v44, %v1619_v16  ;;  %v1621_v18 = vpop.f32.mrb[7].mxu0  ;;  %v1645_v44 = vld [vmem:[%s7250_s5 + $0x40] sm:$0xff]  ;;  %v1672_v16 = vld [vmem:[%s7250_s5 + $0x118] sm:$0xff] }
 0x25d   : > { %v1627_v19 = vmax.f32 %v1483_v43, %v1621_v18  ;;  %v4358_v43 = vpack.c.bf16 %v1648_v41, %v1646_v40  ;;  %v4360_v48 = vpack.c.bf16 %v1647_v45, %v1645_v44  ;;  %v4382_v18 = vpack.c.bf16 %v1672_v16, %v1670_v15  ;;  %v1683_v40 = vld [vmem:[%s7250_s5 + $0x170] sm:$0xff]  ;;  %v1686_v41 = vld [vmem:[%s7250_s5 + $0x188] sm:$0xff]  ;;  %v1685_v45 = vld [vmem:[%s7250_s5 + $0x180] sm:$0xff] }
 0x25e   : > { %1630 = vst [vmem:[#allocation2 + $0x10] sm:$0x3f] %v1626_v17  ;;  %v4380_v17 = vpack.c.bf16 %v1667_v14, %v1665_v12  ;;  %v3561_v12 = vld [vmem:[%s7250_s5 + $0x3d0] sm:$0xff]  ;;  %v3564_v14 = vld [vmem:[%s7250_s5 + $0x3e8] sm:$0xff]  ;;  %v3566_v15 = vld [vmem:[%s7250_s5 + $0x3f8] sm:$0xff] }
 0x25f   : > { %1632 = vst.msk [vmem:[#allocation2 + $0x18] sm:$0x3f] %vm1631_vm1, %v1627_v19  ;;  %v1669_v19 = vld [vmem:[%s7250_s5 + $0x100] sm:$0xff] }
 0x261   : > { %v1693_v24 = vld [vmem:[#allocation2] sm:$0xfe] }
 0x262   : > { %v1694_v21 = vld [vmem:[#allocation2 + $0x8] sm:$0xfe]  ;;  %v1759_v33 = vrot.slane %v1693_v24, 1  ;;  %v1676_v24 = vld [vmem:[%s7250_s5 + $0x138] sm:$0xff] }
 0x263   : > { %v1762_v31 = vrot.slane %v1694_v21, 1  ;;  %v1634_v47 = vld [vmem:[#allocation2 + $0x8] sm:$0xff]  ;;  %v1671_v21 = vld [vmem:[%s7250_s5 + $0x110] sm:$0xff]  ;;  %v4386_v26 = vpack.c.bf16 %v1676_v24, %v1674_v23  ;;  %v3570_v24 = vld [vmem:[%s7250_s5 + $0x418] sm:$0xff] }
 0x264   : > { %v1932_v1 = vld [vmem:[#allocation2 + $0x8] sm:$0xfc] }
 0x265   : > { %v1695_v25 = vld [vmem:[#allocation2 + $0x10] sm:$0x7]  ;;  %v2000_v9 = vrot.slane %v1932_v1, 2  ;;  %v3568_v23 = vld [vmem:[%s7250_s5 + $0x408] sm:$0xff] }
 0x266   : > { %v1696_v27 = vld [vmem:[#allocation2 + $0x18] sm:$0x7]  ;;  %v1760_v28 = vrot.slane %v1695_v25, 1  ;;  %v4384_v25 = vpack.c.bf16 %v1671_v21, %v1669_v19  ;;  %v3563_v19 = vld [vmem:[%s7250_s5 + $0x3e0] sm:$0xff]  ;;  %v3565_v21 = vld [vmem:[%s7250_s5 + $0x3f0] sm:$0xff] }
 0x267   : > { %v1763_v32 = vrot.slane %v1696_v27, 1  ;;  %v1673_v27 = vld [vmem:[%s7250_s5 + $0x120] sm:$0xff]  ;;  %v1636_v5 = vld [vmem:[#allocation2 + $0x18] sm:$0x3]  ;;  %v3596_v1 = vld [vmem:[%s7250_s5 + $0x4e8] sm:$0xff] }
 0x268   : > { %v1761_v39 = vsel %vm1758_vm2, %v1759_v33, %v1760_v28  ;;  %v1677_v33 = vld [vmem:[%s7250_s5 + $0x140] sm:$0xff] }
 0x269   : > { %v1764_v35 = vsel %vm1758_vm2, %v1762_v31, %v1763_v32 }
 0x26a   : > { %3547 = vmatprep.mubr.msk.f32.mxu1 %vm1540_vm0, %v1764_v35  ;;  %v1682_v35 = vld [vmem:[%s7250_s5 + $0x168] sm:$0xff] }
 0x26b   : > { %1836 = vmatmul.mubr.f32.vlgmr.msra.gmra.mrb[4].mxu1 %v1761_v39  ;;  %v1681_v39 = vld [vmem:[%s7250_s5 + $0x160] sm:$0xff] }
 0x26c   : > { %4353 = vmatpush1.bf16.msra.mxu1 %v4352_v34  ;;  %3548 = vmatprep.mubr.msk.f32.mxu1 %vm1540_vm0, %v1763_v32  ;;  %v4390_v32 = vpack.c.bf16 %v1680_v30, %v1678_v29  ;;  %v1679_v34 = vld [vmem:[%s7250_s5 + $0x150] sm:$0xff]  ;;  %v3572_v29 = vld [vmem:[%s7250_s5 + $0x428] sm:$0xff]  ;;  %v3574_v30 = vld [vmem:[%s7250_s5 + $0x438] sm:$0xff] }
 0x26d   : > { %4355 = vmatprep.subr.bf16.mxu1 %v4354_v36  ;;  %v1684_v36 = vld [vmem:[%s7250_s5 + $0x178] sm:$0xff]  ;;  %v4392_v37 = vpack.c.bf16 %v1679_v34, %v1677_v33  ;;  %v3571_v33 = vld [vmem:[%s7250_s5 + $0x420] sm:$0xff]  ;;  %v3573_v34 = vld [vmem:[%s7250_s5 + $0x430] sm:$0xff] }
 0x26e   : > { %v4394_v38 = vpack.c.bf16 %v1684_v36, %v1682_v35  ;;  %v3576_v35 = vld [vmem:[%s7250_s5 + $0x448] sm:$0xff]  ;;  %v3578_v36 = vld [vmem:[%s7250_s5 + $0x458] sm:$0xff] }
 0x26f   : > { %1842 = vmatmul.mubr.f32.gmra.mrb[6].mxu1 %v1760_v28  ;;  %v1675_v28 = vld [vmem:[%s7250_s5 + $0x130] sm:$0xff] }
 0x270   : > { %4357 = vmatpush1.bf16.msra.mxu1 %v4356_v42  ;;  %3549 = vmatprep.mubr.msk.f32.mxu1 %vm1540_vm0, %v1634_v47  ;;  %v4388_v31 = vpack.c.bf16 %v1675_v28, %v1673_v27  ;;  %v1688_v42 = vld [vmem:[%s7250_s5 + $0x198] sm:$0xff]  ;;  %v3567_v27 = vld [vmem:[%s7250_s5 + $0x400] sm:$0xff]  ;;  %v3569_v28 = vld [vmem:[%s7250_s5 + $0x410] sm:$0xff] }
 0x271   : > { %4359 = vmatprep.subr.bf16.mxu1 %v4358_v43  ;;  %v4396_v43 = vpack.c.bf16 %v1683_v40, %v1681_v39  ;;  %v4398_v44 = vpack.c.bf16 %v1688_v42, %v1686_v41  ;;  %v1692_v47 = vld [vmem:[%s7250_s5 + $0x1b8] sm:$0xff]  ;;  %v3575_v39 = vld [vmem:[%s7250_s5 + $0x440] sm:$0xff]  ;;  %v3577_v40 = vld [vmem:[%s7250_s5 + $0x450] sm:$0xff] }
 0x272   : > { %v3580_v41 = vld [vmem:[%s7250_s5 + $0x468] sm:$0xff]  ;;  %v3582_v42 = vld [vmem:[%s7250_s5 + $0x478] sm:$0xff] }
 0x274   : > { %4361 = vmatpush1.bf16.msra.mxu1 %v4360_v48  ;;  %v4400_v48 = vpack.c.bf16 %v1687_v58, %v1685_v45  ;;  %v3579_v45 = vld [vmem:[%s7250_s5 + $0x460] sm:$0xff]  ;;  %v3581_v58 = vld [vmem:[%s7250_s5 + $0x470] sm:$0xff] }
 0x275   : > { %4363 = vmatprep.subr.bf16.mxu1 %v4362_v49  ;;  %v4402_v49 = vpack.c.bf16 %v1692_v47, %v1690_v46  ;;  %v3584_v46 = vld [vmem:[%s7250_s5 + $0x488] sm:$0xff]  ;;  %v3586_v47 = vld [vmem:[%s7250_s5 + $0x498] sm:$0xff] }
 0x278   : > { %4365 = vmatpush1.bf16.msra.mxu1 %v4364_v53  ;;  %v4404_v53 = vpack.c.bf16 %v1691_v2, %v1689_v50  ;;  %v3583_v50 = vld [vmem:[%s7250_s5 + $0x480] sm:$0xff]  ;;  %v3585_v2 = vld [vmem:[%s7250_s5 + $0x490] sm:$0xff] }
 0x279   : > { %4367 = vmatprep.subr.bf16.mxu1 %v4366_v54  ;;  %v4406_v54 = vpack.c.bf16 %v3554_v52, %v3552_v51  ;;  %v3588_v51 = vld [vmem:[%s7250_s5 + $0x4a8] sm:$0xff]  ;;  %v3590_v52 = vld [vmem:[%s7250_s5 + $0x4b8] sm:$0xff] }
 0x27c   : > { %4369 = vmatpush1.bf16.msra.mxu1 %v4368_v60  ;;  %v4408_v60 = vpack.c.bf16 %v3553_v57, %v3551_v55  ;;  %v3587_v55 = vld [vmem:[%s7250_s5 + $0x4a0] sm:$0xff]  ;;  %v3589_v57 = vld [vmem:[%s7250_s5 + $0x4b0] sm:$0xff] }
 0x27d   : > { %4371 = vmatprep.subr.bf16.mxu1 %v4370_v61  ;;  %v6071_v61 = vld [vmem:[#allocation2 + $0x18] sm:$0xf] }
 0x27e   : > { %v2001_v6 = vrot.slane %v6071_v61, 2 }
 0x280   : > { %4373 = vmatpush1.bf16.msra.mxu1 %v4372_v3  ;;  %v3560_v3 = vld [vmem:[%s7250_s5 + $0x3c8] sm:$0xff]  ;;  %v2002_v16 = vsel %vm1996_vm3, %v2000_v9, %v2001_v6  ;;  %v3597_v9 = vld [vmem:[%s7250_s5 + $0x4f0] sm:$0xff] }
 0x281   : > { %4375 = vmatprep.subr.bf16.mxu1 %v4374_v4  ;;  %v3562_v4 = vld [vmem:[%s7250_s5 + $0x3d8] sm:$0xff] }
 0x284   : > { %4377 = vmatpush1.bf16.msra.mxu1 %v4376_v10  ;;  %v4414_v10 = vpack.c.bf16 %v3562_v4, %v3560_v3  ;;  %v3598_v3 = vld [vmem:[%s7250_s5 + $0x4f8] sm:$0xff]  ;;  %v4448_v4 = vpack.c.bf16 %v3593_v0, %v3591_v63  ;;  %v3618_v63 = vld [vmem:[%s7250_s5 + $0x588] sm:$0xff] }
 0x285   : > { %4379 = vmatprep.subr.bf16.mxu1 %v4378_v11  ;;  %v3559_v11 = vld [vmem:[%s7250_s5 + $0x3c0] sm:$0xff]  ;;  %v3620_v0 = vld [vmem:[%s7250_s5 + $0x598] sm:$0xff] }
 0x286   : > { %v4470_v61 = vpack.c.bf16 %v3620_v0, %v3618_v63 }
 0x288   : > { %4381 = vmatpush1.bf16.msra.mxu1 %v4380_v17  ;;  %v4416_v17 = vpack.c.bf16 %v3561_v12, %v3559_v11  ;;  %v3602_v11 = vld [vmem:[%s7250_s5 + $0x518] sm:$0xff] }
 0x289   : > { %4383 = vmatprep.subr.bf16.mxu1 %v4382_v18  ;;  %v4418_v18 = vpack.c.bf16 %v3566_v15, %v3564_v14  ;;  %v3599_v14 = vld [vmem:[%s7250_s5 + $0x500] sm:$0xff]  ;;  %v3601_v15 = vld [vmem:[%s7250_s5 + $0x510] sm:$0xff] }
 0x28c   : > { %4385 = vmatpush1.bf16.msra.mxu1 %v4384_v25  ;;  %v4420_v25 = vpack.c.bf16 %v3565_v21, %v3563_v19  ;;  %v3605_v19 = vld [vmem:[%s7250_s5 + $0x530] sm:$0xff]  ;;  %v2429_v21 = vld [vmem:[%s7252_s7 + $0x8] sm:$0xff] }
 0x28d   : > { %4387 = vmatprep.subr.bf16.mxu1 %v4386_v26  ;;  %v4422_v26 = vpack.c.bf16 %v3570_v24, %v3568_v23  ;;  %v2431_v23 = vld [vmem:[%s7252_s7 + $0x18] sm:$0xff]  ;;  %v2428_v24 = vld [vmem:[%s7252_s7] sm:$0xff] }
 0x290   : > { %4389 = vmatpush1.bf16.msra.mxu1 %v4388_v31  ;;  %v4424_v31 = vpack.c.bf16 %v3569_v28, %v3567_v27  ;;  %v2430_v27 = vld [vmem:[%s7252_s7 + $0x10] sm:$0xff]  ;;  %v2433_v28 = vld [vmem:[%s7252_s7 + $0x28] sm:$0xff] }
 0x291   : > { %4391 = vmatprep.subr.bf16.mxu1 %v4390_v32  ;;  %v4426_v32 = vpack.c.bf16 %v3574_v30, %v3572_v29  ;;  %v2435_v29 = vld [vmem:[%s7252_s7 + $0x38] sm:$0xff] }
 0x294   : > { %4393 = vmatpush1.bf16.msra.mxu1 %v4392_v37  ;;  %v4428_v37 = vpack.c.bf16 %v3573_v34, %v3571_v33  ;;  %v2432_v33 = vld [vmem:[%s7252_s7 + $0x20] sm:$0xff]  ;;  %v2434_v34 = vld [vmem:[%s7252_s7 + $0x30] sm:$0xff] }
 0x295   : > { %4395 = vmatprep.subr.bf16.mxu1 %v4394_v38  ;;  %v4430_v38 = vpack.c.bf16 %v3578_v36, %v3576_v35  ;;  %v2437_v35 = vld [vmem:[%s7252_s7 + $0x48] sm:$0xff] }
 0x296   : > { %v3610_v36 = vld [vmem:[%s7250_s5 + $0x548] sm:$0xff] }
 0x298   : > { %4397 = vmatpush1.bf16.msra.mxu1 %v4396_v43  ;;  %v4432_v43 = vpack.c.bf16 %v3577_v40, %v3575_v39  ;;  %v1933_v39 = vld [vmem:[#allocation2 + $0x10] sm:$0xf]  ;;  %v4580_v40 = vpack.c.bf16 %v2434_v34, %v2432_v33  ;;  %v2455_v33 = vld [vmem:[%s7252_s7 + $0xd8] sm:$0xff]  ;;  %v3626_v34 = vld [vmem:[%s7250_s5 + $0x5c8] sm:$0xff] }
 0x299   : > { %4399 = vmatprep.subr.bf16.mxu1 %v4398_v44  ;;  %v4434_v44 = vpack.c.bf16 %v3582_v42, %v3580_v41  ;;  %v3609_v42 = vld [vmem:[%s7250_s5 + $0x540] sm:$0xff] }
 0x29c   : > { %4401 = vmatpush1.bf16.msra.mxu1 %v4400_v48  ;;  %v4436_v48 = vpack.c.bf16 %v3581_v58, %v3579_v45  ;;  %v2438_v45 = vld [vmem:[%s7252_s7 + $0x50] sm:$0xff]  ;;  %v1931_v58 = vld [vmem:[#allocation2] sm:$0xfc] }
 0x29d   : > { %4403 = vmatprep.subr.bf16.mxu1 %v4402_v49  ;;  %v4438_v49 = vpack.c.bf16 %v3586_v47, %v3584_v46  ;;  %v3611_v47 = vld [vmem:[%s7250_s5 + $0x550] sm:$0xff] }
 0x2a0   : > { %4405 = vmatpush1.bf16.msra.mxu1 %v4404_v53  ;;  %v4440_v53 = vpack.c.bf16 %v3585_v2, %v3583_v50  ;;  %v3616_v50 = vld [vmem:[%s7250_s5 + $0x578] sm:$0xff]  ;;  %v2441_v2 = vld [vmem:[%s7252_s7 + $0x68] sm:$0xff] }
 0x2a1   : > { %4407 = vmatprep.subr.bf16.mxu1 %v4406_v54  ;;  %v4442_v54 = vpack.c.bf16 %v3590_v52, %v3588_v51  ;;  %v2443_v51 = vld [vmem:[%s7252_s7 + $0x78] sm:$0xff]  ;;  %v3613_v52 = vld [vmem:[%s7250_s5 + $0x560] sm:$0xff] }
 0x2a3   : > { %1919 = vmatmul.mubr.f32.vlgmr.msra.gmra.mrb[4].mxu1 %v5884_v13  ;;  %v1635_v13 = vld [vmem:[#allocation2 + $0x10] sm:$0x3] }
 0x2a4   : > { %3550 = vmatprep.mubr.msk.f32.mxu1 %vm1540_vm0, %v1636_v5  ;;  %4409 = vmatpush1.bf16.msra.mxu1 %v4408_v60  ;;  %v4444_v60 = vpack.c.bf16 %v3589_v57, %v3587_v55  ;;  %v4450_v5 = vpack.c.bf16 %v3598_v3, %v3596_v1  ;;  %v4464_v55 = vpack.c.bf16 %v3611_v47, %v3609_v42  ;;  %v6293_v57 = vld [vmem:[#allocation2 + $0x18] sm:$0x1f] }
 0x2a5   : > { %4411 = vmatprep.subr.bf16.mxu1 %v4410_v62  ;;  %v4446_v62 = vpack.c.bf16 %v3594_v56, %v3592_v59  ;;  %v2440_v59 = vld [vmem:[%s7252_s7 + $0x60] sm:$0xff]  ;;  %v2442_v56 = vld [vmem:[%s7252_s7 + $0x70] sm:$0xff]  ;;  %v4586_v1 = vpack.c.bf16 %v2443_v51, %v2441_v2 }
 0x2a6   : > { %v2456_v2 = vld [vmem:[%s7252_s7 + $0xe0] sm:$0xff]  ;;  %v2458_v51 = vld [vmem:[%s7252_s7 + $0xf0] sm:$0xff] }
 0x2a7   : > { %1925 = vmatmul.mubr.f32.gmra.mrb[6].mxu1 %v1635_v13 }
 0x2a8   : > { %4413 = vmatpush1.bf16.msra.mxu1 %v4412_v8  ;;  %3607 = vmatprep.mubr.msk.f32.mxu1 %vm1540_vm0, %v2002_v16  ;;  %v3595_v8 = vld [vmem:[%s7250_s5 + $0x4e0] sm:$0xff]  ;;  %v3604_v16 = vld [vmem:[%s7250_s5 + $0x528] sm:$0xff] }
 0x2a9   : > { %4415 = vmatprep.subr.bf16.mxu1 %v4414_v10  ;;  %v3600_v10 = vld [vmem:[%s7250_s5 + $0x508] sm:$0xff]  ;;  %v4452_v12 = vpack.c.bf16 %v3597_v9, %v3595_v8  ;;  %v2447_v8 = vld [vmem:[%s7252_s7 + $0x98] sm:$0xff]  ;;  %v2160_v9 = vrot.slane %v6293_v57, 3 }
 0x2aa   : > { %v4454_v13 = vpack.c.bf16 %v3602_v11, %v3600_v10  ;;  %v4588_v10 = vpack.c.bf16 %v2442_v56, %v2440_v59  ;;  %v3634_v59 = vld [vmem:[%s7250_s5 + $0x608] sm:$0xff]  ;;  %v3636_v56 = vld [vmem:[%s7250_s5 + $0x618] sm:$0xff] }
 0x2ab   : > { %v4486_v0 = vpack.c.bf16 %v3636_v56, %v3634_v59  ;;  %v3672_v59 = vld [vmem:[%s7250_s5 + $0x728] sm:$0xff]  ;;  %v3674_v56 = vld [vmem:[%s7250_s5 + $0x738] sm:$0xff] }
 0x2ac   : > { %4417 = vmatpush1.bf16.msra.mxu1 %v4416_v17  ;;  %v3606_v17 = vld [vmem:[%s7250_s5 + $0x538] sm:$0xff]  ;;  %v3680_v57 = vld [vmem:[%s7250_s5 + $0x768] sm:$0xff] }
 0x2ad   : > { %4419 = vmatprep.subr.bf16.mxu1 %v4418_v18  ;;  %v3603_v18 = vld [vmem:[%s7250_s5 + $0x520] sm:$0xff]  ;;  %v4458_v30 = vpack.c.bf16 %v3606_v17, %v3604_v16  ;;  %v2449_v17 = vld [vmem:[%s7252_s7 + $0xa8] sm:$0xff] }
 0x2ae   : > { %v4460_v41 = vpack.c.bf16 %v3605_v19, %v3603_v18  ;;  %v2451_v18 = vld [vmem:[%s7252_s7 + $0xb8] sm:$0xff]  ;;  %v3622_v19 = vld [vmem:[%s7250_s5 + $0x5a8] sm:$0xff] }
 0x2b0   : > { %4421 = vmatpush1.bf16.msra.mxu1 %v4420_v25  ;;  %v4456_v25 = vpack.c.bf16 %v3601_v15, %v3599_v14  ;;  %v2446_v14 = vld [vmem:[%s7252_s7 + $0x90] sm:$0xff] }
 0x2b1   : > { %4423 = vmatprep.subr.bf16.mxu1 %v4422_v26  ;;  %v4574_v26 = vpack.c.bf16 %v2431_v23, %v2429_v21  ;;  %v3624_v21 = vld [vmem:[%s7250_s5 + $0x5b8] sm:$0xff] }
 0x2b3   : > { %4575 = vmatprep.subr.bf16.mxu0 %v4574_v26  ;;  %v3621_v26 = vld [vmem:[%s7250_s5 + $0x5a0] sm:$0xff] }
 0x2b4   : > { %4425 = vmatpush1.bf16.msra.mxu1 %v4424_v31  ;;  %v4576_v31 = vpack.c.bf16 %v2430_v27, %v2428_v24  ;;  %v4594_v27 = vpack.c.bf16 %v2451_v18, %v2449_v17  ;;  %v3646_v17 = vld [vmem:[%s7250_s5 + $0x668] sm:$0xff]  ;;  %v3648_v18 = vld [vmem:[%s7250_s5 + $0x678] sm:$0xff] }
 0x2b5   : > { %4427 = vmatprep.subr.bf16.mxu1 %v4426_v32  ;;  %v4578_v32 = vpack.c.bf16 %v2435_v29, %v2433_v28  ;;  %v2448_v28 = vld [vmem:[%s7252_s7 + $0xa0] sm:$0xff]  ;;  %v2450_v29 = vld [vmem:[%s7252_s7 + $0xb0] sm:$0xff] }
 0x2b6   : > { %4577 = vmatpush1.bf16.msra.mxu0 %v4576_v31  ;;  %v3623_v31 = vld [vmem:[%s7250_s5 + $0x5b0] sm:$0xff] }
 0x2b7   : > { %4579 = vmatprep.subr.bf16.mxu0 %v4578_v32  ;;  %v2453_v32 = vld [vmem:[%s7252_s7 + $0xc8] sm:$0xff] }
 0x2b8   : > { %4429 = vmatpush1.bf16.msra.mxu1 %v4428_v37  ;;  %v3612_v37 = vld [vmem:[%s7250_s5 + $0x558] sm:$0xff] }
 0x2b9   : > { %4431 = vmatprep.subr.bf16.mxu1 %v4430_v38  ;;  %v2439_v38 = vld [vmem:[%s7252_s7 + $0x58] sm:$0xff]  ;;  %v4462_v46 = vpack.c.bf16 %v3612_v37, %v3610_v36  ;;  %v4596_v36 = vpack.c.bf16 %v2450_v29, %v2448_v28  ;;  %v4476_v37 = vpack.c.bf16 %v3623_v31, %v3621_v26  ;;  %v3649_v29 = vld [vmem:[%s7250_s5 + $0x680] sm:$0xff]  ;;  %v3654_v31 = vld [vmem:[%s7250_s5 + $0x6a8] sm:$0xff] }
 0x2ba   : > { %4581 = vmatpush1.bf16.msra.mxu0 %v4580_v40  ;;  %v2452_v40 = vld [vmem:[%s7252_s7 + $0xc0] sm:$0xff]  ;;  %v3652_v26 = vld [vmem:[%s7250_s5 + $0x698] sm:$0xff] }
 0x2bc   : > { %4433 = vmatpush1.bf16.msra.mxu1 %v4432_v43  ;;  %v4582_v43 = vpack.c.bf16 %v2439_v38, %v2437_v35  ;;  %v3628_v35 = vld [vmem:[%s7250_s5 + $0x5d8] sm:$0xff]  ;;  %v3625_v38 = vld [vmem:[%s7250_s5 + $0x5c0] sm:$0xff] }
 0x2bd   : > { %4435 = vmatprep.subr.bf16.mxu1 %v4434_v44  ;;  %v2436_v44 = vld [vmem:[%s7252_s7 + $0x40] sm:$0xff]  ;;  %v4478_v42 = vpack.c.bf16 %v3628_v35, %v3626_v34 }
 0x2be   : > { %4583 = vmatprep.subr.bf16.mxu0 %v4582_v43  ;;  %v3627_v43 = vld [vmem:[%s7250_s5 + $0x5d0] sm:$0xff]  ;;  %v3653_v35 = vld [vmem:[%s7250_s5 + $0x6a0] sm:$0xff] }
 0x2c0   : > { %4437 = vmatpush1.bf16.msra.mxu1 %v4436_v48  ;;  %v3614_v48 = vld [vmem:[%s7250_s5 + $0x568] sm:$0xff] }
 0x2c1   : > { %4439 = vmatprep.subr.bf16.mxu1 %v4438_v49  ;;  %v1998_v49 = vrot.slane %v1933_v39, 2  ;;  %v4598_v39 = vpack.c.bf16 %v2455_v33, %v2453_v32  ;;  %v3656_v32 = vld [vmem:[%s7250_s5 + $0x6b8] sm:$0xff] }
 0x2c2   : > { %v4506_v34 = vpack.c.bf16 %v3656_v32, %v3654_v31  ;;  %v3687_v32 = vld [vmem:[%s7250_s5 + $0x7a0] sm:$0xff] }
 0x2c4   : > { %4441 = vmatpush1.bf16.msra.mxu1 %v4440_v53  ;;  %v4584_v53 = vpack.c.bf16 %v2438_v45, %v2436_v44  ;;  %v2457_v44 = vld [vmem:[%s7252_s7 + $0xe8] sm:$0xff]  ;;  %v2459_v45 = vld [vmem:[%s7252_s7 + $0xf8] sm:$0xff] }
 0x2c5   : > { %4443 = vmatprep.subr.bf16.mxu1 %v4442_v54  ;;  %v1997_v54 = vrot.slane %v1931_v58, 2  ;;  %v3630_v58 = vld [vmem:[%s7250_s5 + $0x5e8] sm:$0xff] }
 0x2c6   : > { %4585 = vmatpush1.bf16.msra.mxu0 %v4584_v53  ;;  %v3631_v53 = vld [vmem:[%s7250_s5 + $0x5f0] sm:$0xff] }
 0x2c7   : > { %v1999_v3 = vsel %vm1996_vm3, %v1997_v54, %v1998_v49  ;;  %4587 = vmatprep.subr.bf16.mxu0 %v4586_v1  ;;  %v2461_v54 = vld [vmem:[%s7252_s7 + $0x108] sm:$0xff]  ;;  %v3633_v1 = vld [vmem:[%s7250_s5 + $0x600] sm:$0xff] }
 0x2c8   : > { %4445 = vmatpush1.bf16.msra.mxu1 %v4444_v60  ;;  %v4466_v60 = vpack.c.bf16 %v3616_v50, %v3614_v48  ;;  %v4480_v48 = vpack.c.bf16 %v3627_v43, %v3625_v38  ;;  %v4602_v50 = vpack.c.bf16 %v2459_v45, %v2457_v44  ;;  %v3660_v38 = vld [vmem:[%s7250_s5 + $0x6d8] sm:$0xff]  ;;  %v3662_v43 = vld [vmem:[%s7250_s5 + $0x6e8] sm:$0xff] }
 0x2c9   : > { %4447 = vmatprep.subr.bf16.mxu1 %v4446_v62  ;;  %v3615_v62 = vld [vmem:[%s7250_s5 + $0x570] sm:$0xff]  ;;  %v3664_v44 = vld [vmem:[%s7250_s5 + $0x6f8] sm:$0xff] }
 0x2ca   : > { %v4468_v11 = vpack.c.bf16 %v3615_v62, %v3613_v52  ;;  %4589 = vmatpush1.bf16.msra.mxu0 %v4588_v10 }
 0x2cc   : > { %4449 = vmatpush1.bf16.msra.mxu1 %v4448_v4  ;;  %v2091_v4 = vld [vmem:[#allocation2 + $0x8] sm:$0xf8] }
 0x2cd   : > { %4451 = vmatprep.subr.bf16.mxu1 %v4450_v5  ;;  %v2445_v5 = vld [vmem:[%s7252_s7 + $0x88] sm:$0xff]  ;;  %v2159_v15 = vrot.slane %v2091_v4, 3 }
 0x2ce   : > { %v4590_v16 = vpack.c.bf16 %v2447_v8, %v2445_v5  ;;  %v3638_v4 = vld [vmem:[%s7250_s5 + $0x628] sm:$0xff]  ;;  %v3640_v5 = vld [vmem:[%s7250_s5 + $0x638] sm:$0xff] }
 0x2cf   : > { %v2161_v23 = vsel %vm2155_vm4, %v2159_v15, %v2160_v9  ;;  %v4490_v10 = vpack.c.bf16 %v3640_v5, %v3638_v4  ;;  %v2250_v5 = vld [vmem:[#allocation2 + $0x8] sm:$0xf0] }
 0x2d0   : > { %4453 = vmatpush1.bf16.msra.mxu1 %v4452_v12  ;;  %v3617_v12 = vld [vmem:[%s7250_s5 + $0x580] sm:$0xff]  ;;  %4591 = vmatprep.subr.bf16.mxu0 %v4590_v16  ;;  %v3643_v16 = vld [vmem:[%s7250_s5 + $0x650] sm:$0xff] }
 0x2d1   : > { %4455 = vmatprep.subr.bf16.mxu1 %v4454_v13  ;;  %v2444_v13 = vld [vmem:[%s7252_s7 + $0x80] sm:$0xff] }
 0x2d2   : > { %v4592_v24 = vpack.c.bf16 %v2446_v14, %v2444_v13  ;;  %v3642_v13 = vld [vmem:[%s7250_s5 + $0x648] sm:$0xff]  ;;  %v3644_v14 = vld [vmem:[%s7250_s5 + $0x658] sm:$0xff] }
 0x2d4   : > { %4457 = vmatpush1.bf16.msra.mxu1 %v4456_v25  ;;  %4593 = vmatpush1.bf16.msra.mxu0 %v4592_v24  ;;  %v3647_v24 = vld [vmem:[%s7250_s5 + $0x670] sm:$0xff] }
 0x2d5   : > { %4459 = vmatprep.subr.bf16.mxu1 %v4458_v30  ;;  %v4474_v30 = vpack.c.bf16 %v3624_v21, %v3622_v19  ;;  %4595 = vmatprep.subr.bf16.mxu0 %v4594_v27  ;;  %v4498_v21 = vpack.c.bf16 %v3648_v18, %v3646_v17  ;;  %v3679_v18 = vld [vmem:[%s7250_s5 + $0x760] sm:$0xff] }
 0x2d8   : > { %4461 = vmatpush1.bf16.msra.mxu1 %v4460_v41  ;;  %v2454_v41 = vld [vmem:[%s7252_s7 + $0xd0] sm:$0xff]  ;;  %4597 = vmatpush1.bf16.msra.mxu0 %v4596_v36 }
 0x2d9   : > { %4463 = vmatprep.subr.bf16.mxu1 %v4462_v46  ;;  %v3632_v46 = vld [vmem:[%s7250_s5 + $0x5f8] sm:$0xff]  ;;  %v4600_v47 = vpack.c.bf16 %v2454_v41, %v2452_v40  ;;  %4599 = vmatprep.subr.bf16.mxu0 %v4598_v39  ;;  %v3655_v36 = vld [vmem:[%s7250_s5 + $0x6b0] sm:$0xff]  ;;  %v3657_v41 = vld [vmem:[%s7250_s5 + $0x6c0] sm:$0xff] }
 0x2da   : > { %v4482_v52 = vpack.c.bf16 %v3632_v46, %v3630_v58  ;;  %v4508_v39 = vpack.c.bf16 %v3655_v36, %v3653_v35  ;;  %v4514_v58 = vpack.c.bf16 %v3664_v44, %v3662_v43  ;;  %v3661_v46 = vld [vmem:[%s7250_s5 + $0x6e0] sm:$0xff]  ;;  %v3694_v35 = vld [vmem:[%s7250_s5 + $0x7d8] sm:$0xff] }
 0x2db   : > { %2074 = vmatmul.mubr.f32.vlgmr.msra.gmra.mrb[4].mxu1 %v1999_v3  ;;  %v3635_v3 = vld [vmem:[%s7250_s5 + $0x610] sm:$0xff]  ;;  %v3695_v44 = vld [vmem:[%s7250_s5 + $0x7e0] sm:$0xff] }
 0x2dc   : > { %3608 = vmatprep.mubr.msk.f32.mxu1 %vm1540_vm0, %v2001_v6  ;;  %4465 = vmatpush1.bf16.msra.mxu1 %v4464_v55  ;;  %v3619_v6 = vld [vmem:[%s7250_s5 + $0x590] sm:$0xff]  ;;  %v2463_v55 = vld [vmem:[%s7252_s7 + $0x118] sm:$0xff]  ;;  %v4488_v8 = vpack.c.bf16 %v3635_v3, %v3633_v1  ;;  %v3671_v1 = vld [vmem:[%s7250_s5 + $0x720] sm:$0xff] }
 0x2dd   : > { %4467 = vmatprep.subr.bf16.mxu1 %v4466_v60  ;;  %v4472_v25 = vpack.c.bf16 %v3619_v6, %v3617_v12  ;;  %4601 = vmatpush1.bf16.msra.mxu0 %v4600_v47  ;;  %v4604_v60 = vpack.c.bf16 %v2458_v51, %v2456_v2  ;;  %v4606_v63 = vpack.c.bf16 %v2463_v55, %v2461_v54  ;;  %v3639_v12 = vld [vmem:[%s7250_s5 + $0x630] sm:$0xff]  ;;  %v3641_v6 = vld [vmem:[%s7250_s5 + $0x640] sm:$0xff] }
 0x2de   : > { %4603 = vmatprep.subr.bf16.mxu0 %v4602_v50  ;;  %v4496_v19 = vpack.c.bf16 %v3643_v16, %v3641_v6  ;;  %v3663_v47 = vld [vmem:[%s7250_s5 + $0x6f0] sm:$0xff]  ;;  %v2090_v51 = vld [vmem:[#allocation2] sm:$0xf8] }
 0x2df   : > { %2080 = vmatmul.mubr.f32.gmra.mrb[6].mxu1 %v1998_v49  ;;  %v3629_v49 = vld [vmem:[%s7250_s5 + $0x5e0] sm:$0xff]  ;;  %v2092_v50 = vld [vmem:[#allocation2 + $0x10] sm:$0x1f]  ;;  %v4516_v2 = vpack.c.bf16 %v3663_v47, %v3661_v46  ;;  %v3702_v46 = vld [vmem:[%s7250_s5 + $0x818] sm:$0xff] }
 0x2e0   : > { %4469 = vmatpush1.bf16.msra.mxu1 %v4468_v11  ;;  %3665 = vmatprep.mubr.msk.f32.mxu1 %vm1540_vm0, %v2161_v23  ;;  %v4484_v62 = vpack.c.bf16 %v3631_v53, %v3629_v49  ;;  %v3637_v11 = vld [vmem:[%s7250_s5 + $0x620] sm:$0xff]  ;;  %v3670_v49 = vld [vmem:[%s7250_s5 + $0x718] sm:$0xff]  ;;  %v3669_v54 = vld [vmem:[%s7250_s5 + $0x710] sm:$0xff]  ;;  %v2157_v55 = vrot.slane %v2092_v50, 3 }
 0x2e1   : > { %4471 = vmatprep.subr.bf16.mxu1 %v4470_v61  ;;  %4605 = vmatpush1.bf16.msra.mxu0 %v4604_v60  ;;  %v4492_v15 = vpack.c.bf16 %v3639_v12, %v3637_v11  ;;  %v4494_v61 = vpack.c.bf16 %v3644_v14, %v3642_v13  ;;  %v3645_v23 = vld [vmem:[%s7250_s5 + $0x660] sm:$0xff]  ;;  %v2156_v60 = vrot.slane %v2090_v51, 3  ;;  %v3673_v3 = vld [vmem:[%s7250_s5 + $0x730] sm:$0xff]  ;;  %v2318_v13 = vrot.slane %v2250_v5, 4  ;;  %v3706_v51 = vld [vmem:[%s7250_s5 + $0x838] sm:$0xff] }
 0x2e2   : > { %4607 = vmatprep.subr.bf16.mxu0 %v4606_v63  ;;  %v4500_v27 = vpack.c.bf16 %v3647_v24, %v3645_v23  ;;  %v3667_v53 = vld [vmem:[%s7250_s5 + $0x700] sm:$0xff]  ;;  %v6529_v63 = vld [vmem:[#allocation2 + $0x18] sm:$0x3f]  ;;  %v4524_v12 = vpack.c.bf16 %v3673_v3, %v3671_v1  ;;  %v3701_v50 = vld [vmem:[%s7250_s5 + $0x810] sm:$0xff] }
 0x2e3   : > { %v2158_v4 = vsel %vm2155_vm4, %v2156_v60, %v2157_v55  ;;  %v2319_v11 = vrot.slane %v6529_v63, 4  ;;  %v3686_v23 = vld [vmem:[%s7250_s5 + $0x798] sm:$0xff]  ;;  %v3709_v1 = vld [vmem:[%s7250_s5 + $0x850] sm:$0xff]  ;;  %v3712_v3 = vld [vmem:[%s7250_s5 + $0x868] sm:$0xff] }
 0x2e4   : > { %4473 = vmatpush1.bf16.msra.mxu1 %v4472_v25  ;;  %v3650_v25 = vld [vmem:[%s7250_s5 + $0x688] sm:$0xff]  ;;  %v2467_v63 = vld [vmem:[%s7252_s7 + $0x138] sm:$0xff] }
 0x2e5   : > { %4475 = vmatprep.subr.bf16.mxu1 %v4474_v30  ;;  %v4502_v28 = vpack.c.bf16 %v3652_v26, %v3650_v25  ;;  %v3651_v30 = vld [vmem:[%s7250_s5 + $0x690] sm:$0xff]  ;;  %v2320_v6 = vsel %vm2314_vm5, %v2318_v13, %v2319_v11  ;;  %v3683_v26 = vld [vmem:[%s7250_s5 + $0x780] sm:$0xff]  ;;  %v3716_v13 = vld [vmem:[%s7250_s5 + $0x888] sm:$0xff] }
 0x2e6   : > { %v4504_v33 = vpack.c.bf16 %v3651_v30, %v3649_v29  ;;  %v3690_v29 = vld [vmem:[%s7250_s5 + $0x7b8] sm:$0xff] }
 0x2e8   : > { %4477 = vmatpush1.bf16.msra.mxu1 %v4476_v37  ;;  %v3658_v37 = vld [vmem:[%s7250_s5 + $0x6c8] sm:$0xff] }
 0x2e9   : > { %4479 = vmatprep.subr.bf16.mxu1 %v4478_v42  ;;  %v4510_v40 = vpack.c.bf16 %v3660_v38, %v3658_v37  ;;  %v3659_v42 = vld [vmem:[%s7250_s5 + $0x6d0] sm:$0xff]  ;;  %v3691_v38 = vld [vmem:[%s7250_s5 + $0x7c0] sm:$0xff] }
 0x2ea   : > { %v4512_v45 = vpack.c.bf16 %v3659_v42, %v3657_v41  ;;  %v3698_v41 = vld [vmem:[%s7250_s5 + $0x7f8] sm:$0xff] }
 0x2ec   : > { %4481 = vmatpush1.bf16.msra.mxu1 %v4480_v48  ;;  %v3668_v48 = vld [vmem:[%s7250_s5 + $0x708] sm:$0xff] }
 0x2ed   : > { %4483 = vmatprep.subr.bf16.mxu1 %v4482_v52  ;;  %v4518_v52 = vpack.c.bf16 %v3670_v49, %v3668_v48  ;;  %v3699_v49 = vld [vmem:[%s7250_s5 + $0x800] sm:$0xff] }
 0x2f0   : > { %4485 = vmatpush1.bf16.msra.mxu1 %v4484_v62  ;;  %v4520_v62 = vpack.c.bf16 %v3669_v54, %v3667_v53  ;;  %v3703_v54 = vld [vmem:[%s7250_s5 + $0x820] sm:$0xff] }
 0x2f1   : > { %4487 = vmatprep.subr.bf16.mxu1 %v4486_v0  ;;  %v4522_v0 = vpack.c.bf16 %v3674_v56, %v3672_v59  ;;  %v3708_v59 = vld [vmem:[%s7250_s5 + $0x848] sm:$0xff]  ;;  %v3710_v56 = vld [vmem:[%s7250_s5 + $0x858] sm:$0xff] }
 0x2f4   : > { %4489 = vmatpush1.bf16.msra.mxu1 %v4488_v8  ;;  %v3676_v8 = vld [vmem:[%s7250_s5 + $0x748] sm:$0xff] }
 0x2f5   : > { %4491 = vmatprep.subr.bf16.mxu1 %v4490_v10  ;;  %v3678_v10 = vld [vmem:[%s7250_s5 + $0x758] sm:$0xff] }
 0x2f6   : > { %v4526_v14 = vpack.c.bf16 %v3678_v10, %v3676_v8  ;;  %v3711_v10 = vld [vmem:[%s7250_s5 + $0x860] sm:$0xff] }
 0x2f8   : > { %4493 = vmatpush1.bf16.msra.mxu1 %v4492_v15  ;;  %v3675_v15 = vld [vmem:[%s7250_s5 + $0x740] sm:$0xff] }
 0x2f9   : > { %4495 = vmatprep.subr.bf16.mxu1 %v4494_v61  ;;  %v3677_v61 = vld [vmem:[%s7250_s5 + $0x750] sm:$0xff] }
 0x2fa   : > { %v4528_v16 = vpack.c.bf16 %v3677_v61, %v3675_v15 }
 0x2fc   : > { %4497 = vmatpush1.bf16.msra.mxu1 %v4496_v19  ;;  %v3681_v19 = vld [vmem:[%s7250_s5 + $0x770] sm:$0xff] }
 0x2fd   : > { %4499 = vmatprep.subr.bf16.mxu1 %v4498_v21  ;;  %v3684_v21 = vld [vmem:[%s7250_s5 + $0x788] sm:$0xff]  ;;  %v4532_v24 = vpack.c.bf16 %v3681_v19, %v3679_v18  ;;  %v3719_v19 = vld [vmem:[%s7250_s5 + $0x8a0] sm:$0xff] }
 0x2fe   : > { %v4534_v25 = vpack.c.bf16 %v3686_v23, %v3684_v21  ;;  %v3721_v21 = vld [vmem:[%s7250_s5 + $0x8b0] sm:$0xff] }
 0x2ff   : > { %v2251_v23 = vld [vmem:[#allocation2 + $0x10] sm:$0x3f] }
 0x300   : > { %4501 = vmatpush1.bf16.msra.mxu1 %v4500_v27  ;;  %v3685_v27 = vld [vmem:[%s7250_s5 + $0x790] sm:$0xff] }
 0x301   : > { %4503 = vmatprep.subr.bf16.mxu1 %v4502_v28  ;;  %v3688_v28 = vld [vmem:[%s7250_s5 + $0x7a8] sm:$0xff]  ;;  %v4536_v30 = vpack.c.bf16 %v3685_v27, %v3683_v26  ;;  %v2316_v26 = vrot.slane %v2251_v23, 4 }
 0x302   : > { %v4538_v31 = vpack.c.bf16 %v3690_v29, %v3688_v28  ;;  %v2460_v29 = vld [vmem:[%s7252_s7 + $0x100] sm:$0xff] }
 0x304   : > { %4505 = vmatpush1.bf16.msra.mxu1 %v4504_v33  ;;  %v3689_v33 = vld [vmem:[%s7250_s5 + $0x7b0] sm:$0xff] }
 0x305   : > { %4507 = vmatprep.subr.bf16.mxu1 %v4506_v34  ;;  %v3692_v34 = vld [vmem:[%s7250_s5 + $0x7c8] sm:$0xff]  ;;  %v4540_v36 = vpack.c.bf16 %v3689_v33, %v3687_v32 }
 0x306   : > { %v4542_v37 = vpack.c.bf16 %v3694_v35, %v3692_v34  ;;  %v2465_v32 = vld [vmem:[%s7252_s7 + $0x128] sm:$0xff]  ;;  %v2466_v34 = vld [vmem:[%s7252_s7 + $0x130] sm:$0xff] }
 0x307   : > { %v4610_v33 = vpack.c.bf16 %v2467_v63, %v2465_v32  ;;  %v3729_v32 = vld [vmem:[%s7253_s8 + $0xa8] sm:$0xff] }
 0x308   : > { %4509 = vmatpush1.bf16.msra.mxu1 %v4508_v39  ;;  %v3693_v39 = vld [vmem:[%s7250_s5 + $0x7d0] sm:$0xff] }
 0x309   : > { %4511 = vmatprep.subr.bf16.mxu1 %v4510_v40  ;;  %v3696_v40 = vld [vmem:[%s7250_s5 + $0x7e8] sm:$0xff]  ;;  %v4544_v42 = vpack.c.bf16 %v3693_v39, %v3691_v38 }
 0x30a   : > { %v4546_v43 = vpack.c.bf16 %v3698_v41, %v3696_v40 }
 0x30c   : > { %4513 = vmatpush1.bf16.msra.mxu1 %v4512_v45  ;;  %v3697_v45 = vld [vmem:[%s7250_s5 + $0x7f0] sm:$0xff] }
 0x30d   : > { %4515 = vmatprep.subr.bf16.mxu1 %v4514_v58  ;;  %v3700_v58 = vld [vmem:[%s7250_s5 + $0x808] sm:$0xff]  ;;  %v4548_v47 = vpack.c.bf16 %v3697_v45, %v3695_v44 }
 0x30e   : > { %v4550_v48 = vpack.c.bf16 %v3702_v46, %v3700_v58  ;;  %v2567_v44 = vld [vmem:[%s7253_s8 + $0x8] sm:$0xff] }
 0x310   : > { %4517 = vmatpush1.bf16.msra.mxu1 %v4516_v2  ;;  %v3704_v2 = vld [vmem:[%s7250_s5 + $0x828] sm:$0xff] }
 0x311   : > { %4519 = vmatprep.subr.bf16.mxu1 %v4518_v52  ;;  %v4552_v52 = vpack.c.bf16 %v3701_v50, %v3699_v49  ;;  %v4554_v53 = vpack.c.bf16 %v3706_v51, %v3704_v2  ;;  %v2568_v2 = vld [vmem:[%s7253_s8 + $0x10] sm:$0xff]  ;;  %v2569_v51 = vld [vmem:[%s7253_s8 + $0x18] sm:$0xff] }
 0x313   : > { %2233 = vmatmul.mubr.f32.vlgmr.msra.gmra.mrb[4].mxu1 %v2158_v4  ;;  %v3714_v4 = vld [vmem:[%s7250_s5 + $0x878] sm:$0xff] }
 0x314   : > { %3666 = vmatprep.mubr.msk.f32.mxu1 %vm1540_vm0, %v2160_v9  ;;  %4521 = vmatpush1.bf16.msra.mxu1 %v4520_v62  ;;  %v3682_v9 = vld [vmem:[%s7250_s5 + $0x778] sm:$0xff]  ;;  %v4558_v62 = vpack.c.bf16 %v3710_v56, %v3708_v59  ;;  %v4562_v8 = vpack.c.bf16 %v3714_v4, %v3712_v3  ;;  %v2570_v59 = vld [vmem:[%s7253_s8 + $0x20] sm:$0xff]  ;;  %v2571_v56 = vld [vmem:[%s7253_s8 + $0x28] sm:$0xff] }
 0x315   : > { %4523 = vmatprep.subr.bf16.mxu1 %v4522_v0  ;;  %v4530_v17 = vpack.c.bf16 %v3682_v9, %v3680_v57  ;;  %v3707_v0 = vld [vmem:[%s7250_s5 + $0x840] sm:$0xff]  ;;  %v3717_v9 = vld [vmem:[%s7250_s5 + $0x890] sm:$0xff]  ;;  %v2575_v4 = vld [vmem:[%s7253_s8 + $0x48] sm:$0xff] }
 0x316   : > { %v4560_v5 = vpack.c.bf16 %v3709_v1, %v3707_v0  ;;  %v3715_v57 = vld [vmem:[%s7250_s5 + $0x880] sm:$0xff]  ;;  %v2573_v0 = vld [vmem:[%s7253_s8 + $0x38] sm:$0xff] }
 0x317   : > { %2239 = vmatmul.mubr.f32.gmra.mrb[6].mxu1 %v2157_v55  ;;  %v3705_v55 = vld [vmem:[%s7250_s5 + $0x830] sm:$0xff]  ;;  %v2574_v3 = vld [vmem:[%s7253_s8 + $0x40] sm:$0xff] }
 0x318   : > { %4525 = vmatpush1.bf16.msra.mxu1 %v4524_v12  ;;  %3723 = vmatprep.mubr.msk.f32.mxu1 %vm1540_vm0, %v2320_v6  ;;  %v4556_v60 = vpack.c.bf16 %v3705_v55, %v3703_v54  ;;  %v3713_v12 = vld [vmem:[%s7250_s5 + $0x870] sm:$0xff]  ;;  %v3720_v6 = vld [vmem:[%s7250_s5 + $0x8a8] sm:$0xff]  ;;  %v4618_v54 = vpack.c.bf16 %v2569_v51, %v2568_v2 }
 0x319   : > { %4527 = vmatprep.subr.bf16.mxu1 %v4526_v14  ;;  %v3718_v14 = vld [vmem:[%s7250_s5 + $0x898] sm:$0xff]  ;;  %v4564_v15 = vpack.c.bf16 %v3713_v12, %v3711_v10  ;;  %v3737_v2 = vld [vmem:[%s7253_s8 + $0xe8] sm:$0xff] }
 0x31a   : > { %v4566_v61 = vpack.c.bf16 %v3718_v14, %v3716_v13  ;;  %v2577_v10 = vld [vmem:[%s7253_s8 + $0x58] sm:$0xff]  ;;  %v2578_v13 = vld [vmem:[%s7253_s8 + $0x60] sm:$0xff]  ;;  %v2579_v14 = vld [vmem:[%s7253_s8 + $0x68] sm:$0xff] }
 0x31c   : > { %4529 = vmatpush1.bf16.msra.mxu1 %v4528_v16  ;;  %v3722_v16 = vld [vmem:[%s7250_s5 + $0x8b8] sm:$0xff] }
 0x31d   : > { %4531 = vmatprep.subr.bf16.mxu1 %v4530_v17  ;;  %v4568_v17 = vpack.c.bf16 %v3717_v9, %v3715_v57  ;;  %v4570_v18 = vpack.c.bf16 %v3722_v16, %v3720_v6  ;;  %v2581_v57 = vld [vmem:[%s7253_s8 + $0x78] sm:$0xff]  ;;  %v2582_v9 = vld [vmem:[%s7253_s8 + $0x80] sm:$0xff]  ;;  %v2583_v16 = vld [vmem:[%s7253_s8 + $0x88] sm:$0xff] }
 0x320   : > { %4533 = vmatpush1.bf16.msra.mxu1 %v4532_v24  ;;  %v4572_v24 = vpack.c.bf16 %v3721_v21, %v3719_v19  ;;  %v2585_v19 = vld [vmem:[%s7253_s8 + $0x98] sm:$0xff] }
 0x321   : > { %4535 = vmatprep.subr.bf16.mxu1 %v4534_v25  ;;  %v2249_v25 = vld [vmem:[#allocation2] sm:$0xf0] }
 0x322   : > { %v2315_v27 = vrot.slane %v2249_v25, 4 }
 0x324   : > { %4537 = vmatpush1.bf16.msra.mxu1 %v4536_v30  ;;  %v2317_v28 = vsel %vm2314_vm5, %v2315_v27, %v2316_v26  ;;  %v2462_v30 = vld [vmem:[%s7252_s7 + $0x110] sm:$0xff] }
 0x325   : > { %4539 = vmatprep.subr.bf16.mxu1 %v4538_v31  ;;  %v4608_v31 = vpack.c.bf16 %v2462_v30, %v2460_v29 }
 0x327   : > { %4609 = vmatpush1.bf16.msra.mxu0 %v4608_v31  ;;  %v3728_v31 = vld [vmem:[%s7253_s8 + $0xa0] sm:$0xff] }
 0x328   : > { %4541 = vmatpush1.bf16.msra.mxu1 %v4540_v36  ;;  %4611 = vmatprep.subr.bf16.mxu0 %v4610_v33  ;;  %v4889_v36 = vmov 0.0|0.0  }
 0x329   : > { %4543 = vmatprep.subr.bf16.mxu1 %v4542_v37  ;;  %v2408_v37 = vld [vmem:[%s7251_s6] sm:$0x3] }
 0x32a   : > { %v2413_v38 = vrot.slane %v2408_v37, %v5813_v20  ;;  %v2417_v39 = vrot.slane %v2408_v37, %v5818_v22 }
 0x32c   : > { %4545 = vmatpush1.bf16.msra.mxu1 %v4544_v42 }
 0x32d   : > { %4547 = vmatprep.subr.bf16.mxu1 %v4546_v43  ;;  %v2566_v43 = vld [vmem:[%s7253_s8] sm:$0xff] }
 0x330   : > { %4549 = vmatpush1.bf16.msra.mxu1 %v4548_v47  ;;  %v4615_v47 = vpack.c.bf16 %v2567_v44, %v2566_v43 }
 0x331   : > { %4551 = vmatprep.subr.bf16.mxu1 %v4550_v48 }
 0x334   : > { %4553 = vmatpush1.bf16.msra.mxu1 %v4552_v52 }
 0x335   : > { %4555 = vmatprep.subr.bf16.mxu1 %v4554_v53 }
 0x338   : > { %4557 = vmatpush1.bf16.msra.mxu1 %v4556_v60  ;;  %v4621_v60 = vpack.c.bf16 %v2571_v56, %v2570_v59  ;;  %v3741_v59 = vld [vmem:[%s7253_s8 + $0x108] sm:$0xff] }
 0x339   : > { %4559 = vmatprep.subr.bf16.mxu1 %v4558_v62  ;;  %v2572_v62 = vld [vmem:[%s7253_s8 + $0x30] sm:$0xff] }
 0x33a   : > { %v4624_v1 = vpack.c.bf16 %v2573_v0, %v2572_v62  ;;  %v3743_v62 = vld [vmem:[%s7253_s8 + $0x118] sm:$0xff] }
 0x33c   : > { %4561 = vmatpush1.bf16.msra.mxu1 %v4560_v5  ;;  %v4627_v5 = vpack.c.bf16 %v2575_v4, %v2574_v3  ;;  %v3745_v3 = vld [vmem:[%s7253_s8 + $0x128] sm:$0xff] }
 0x33d   : > { %4563 = vmatprep.subr.bf16.mxu1 %v4562_v8  ;;  %v2576_v8 = vld [vmem:[%s7253_s8 + $0x50] sm:$0xff] }
 0x33e   : > { %v4630_v12 = vpack.c.bf16 %v2577_v10, %v2576_v8  ;;  %v3747_v8 = vld [vmem:[%s7253_s8 + $0x138] sm:$0xff] }
 0x340   : > { %4565 = vmatpush1.bf16.msra.mxu1 %v4564_v15  ;;  %v4633_v15 = vpack.c.bf16 %v2579_v14, %v2578_v13  ;;  %v3106_v13 = vld [vmem:[%s7255_s10] sm:$0xff]  ;;  %v3107_v14 = vld [vmem:[%s7255_s10 + $0x8] sm:$0xff] }
 0x341   : > { %4567 = vmatprep.subr.bf16.mxu1 %v4566_v61  ;;  %v2580_v61 = vld [vmem:[%s7253_s8 + $0x70] sm:$0xff] }
 0x342   : > { %v4636_v6 = vpack.c.bf16 %v2581_v57, %v2580_v61  ;;  %v4765_v57 = vpack.c.bf16 %v3107_v14, %v3106_v13 }
 0x344   : > { %4569 = vmatpush1.bf16.msra.mxu1 %v4568_v17  ;;  %v4639_v17 = vpack.c.bf16 %v2583_v16, %v2582_v9  ;;  %v3109_v9 = vld [vmem:[%s7255_s10 + $0x18] sm:$0xff]  ;;  %v3750_v16 = vld [vmem:[%s7253_s8 + $0x148] sm:$0xff] }
 0x345   : > { %4571 = vmatprep.subr.bf16.mxu1 %v4570_v18  ;;  %v2584_v18 = vld [vmem:[%s7253_s8 + $0x90] sm:$0xff] }
 0x346   : > { %v4642_v21 = vpack.c.bf16 %v2585_v19, %v2584_v18  ;;  %v3110_v19 = vld [vmem:[%s7255_s10 + $0x20] sm:$0xff] }
 0x348   : > { %4573 = vmatpush1.bf16.msra.mxu1 %v4572_v24 }
 0x349   : > { %4764 = vmatprep.subr.bf16.mxu1 %v4889_v36 }
 0x34b   : > { %2392 = vmatmul.mubr.f32.vlgmr.msra.gmra.mrb[4].mxu1 %v2317_v28 }
 0x34c   : > { %3724 = vmatprep.mubr.msk.f32.mxu1 %vm1540_vm0, %v2319_v11  ;;  %v2464_v11 = vld [vmem:[%s7252_s7 + $0x120] sm:$0xff]  ;;  %4766 = vmatpush3.bf16.msra.mxu1 %v4765_v57 }
 0x34d   : > { %v4612_v35 = vpack.c.bf16 %v2466_v34, %v2464_v11  ;;  %4767 = vmatprep.subr.bf16.mxu1 %v4889_v36 }
 0x34f   : > { %2398 = vmatmul.mubr.f32.gmra.mrb[6].mxu1 %v2316_v26  ;;  %4613 = vmatpush1.bf16.msra.mxu0 %v4612_v35 }
 0x350   : > { %4614 = vmatprep.subr.bf16.mxu0 %v4889_v36  ;;  %3880 = vmatprep.mubr.msk.f32.mxu1 %vm4890_vm8, %v4888_v7 }
 0x41e   : > { %v2393_v40 = vpop.f32.mrb[4].mxu1 }
 0x41f   : > { %v6719_v41 = vadd.f32 %v2413_v38, %v2393_v40  ;;  %v2395_v42 = vpop.f32.mrb[5].mxu1  ;;  %v4645_v40 = vpack.c.bf16 %v3729_v32, %v3728_v31  ;;  %v3753_v32 = vld [vmem:[%s7253_s8 + $0x160] sm:$0xff] }
 0x420   : > { %v6727_v45 = vadd.f32 %v2417_v39, %v2395_v42  ;;  %v3731_v42 = vld [vmem:[%s7253_s8 + $0xb8] sm:$0xff] }
 0x421   : > { %v2424_v48 = vmax.f32 %v6719_v41, 0.0  ;;  %v3730_v41 = vld [vmem:[%s7253_s8 + $0xb0] sm:$0xff] }
 0x422   : > { %v2425_v58 = vmax.f32 %v6727_v45, 0.0  ;;  %v2399_v46 = vpop.f32.mrb[6].mxu1  ;;  %v4648_v44 = vpack.c.bf16 %v3731_v42, %v3730_v41  ;;  %v3732_v45 = vld [vmem:[%s7253_s8 + $0xc0] sm:$0xff]  ;;  %v3117_v41 = vld [vmem:[%s7255_s10 + $0x58] sm:$0xff] }
 0x423   : > { %v6731_v49 = vadd.f32 %v2413_v38, %v2399_v46  ;;  %v2401_v50 = vpop.f32.mrb[7].mxu1 }
 0x424   : > { %v6739_v52 = vadd.f32 %v2417_v39, %v2401_v50  ;;  %3725 = vmatprep.mubr.msk.f32.mxu0 %vm2468_vm6, %v2425_v58  ;;  %v3736_v50 = vld [vmem:[%s7253_s8 + $0xe0] sm:$0xff] }
 0x425   : > { %2540 = vmatmul.mubr.f32.vlgmr.msra.gmra.mrb[8].mxu0 %v2424_v48  ;;  %v2426_v55 = vmax.f32 %v6731_v49, 0.0  ;;  %v4657_v51 = vpack.c.bf16 %v3737_v2, %v3736_v50 }
 0x426   : > { %v2427_v53 = vmax.f32 %v6739_v52, 0.0  ;;  %4616 = vmatpush1.bf16.msra.mxu0 %v4615_v47  ;;  %v3734_v47 = vld [vmem:[%s7253_s8 + $0xd0] sm:$0xff] }
 0x427   : > { %4617 = vmatprep.subr.bf16.mxu0 %v4889_v36  ;;  %v3738_v52 = vld [vmem:[%s7253_s8 + $0xf0] sm:$0xff] }
 0x428   : > { %3726 = vmatprep.mubr.msk.f32.mxu0 %vm2468_vm6, %v2427_v53 }
 0x429   : > { %2546 = vmatmul.mubr.f32.gmra.mrb[10].mxu0 %v2426_v55 }
 0x42a   : > { %4619 = vmatpush1.bf16.msra.mxu0 %v4618_v54 }
 0x42b   : > { %4620 = vmatprep.subr.bf16.mxu0 %v4889_v36 }
 0x42e   : > { %4622 = vmatpush1.bf16.msra.mxu0 %v4621_v60  ;;  %v3742_v60 = vld [vmem:[%s7253_s8 + $0x110] sm:$0xff] }
 0x42f   : > { %4623 = vmatprep.subr.bf16.mxu0 %v4889_v36  ;;  %v4666_v0 = vpack.c.bf16 %v3743_v62, %v3742_v60  ;;  %v3766_v60 = vld [vmem:[%s7253_s8 + $0x1c8] sm:$0xff] }
 0x432   : > { %4625 = vmatpush1.bf16.msra.mxu0 %v4624_v1  ;;  %v3744_v1 = vld [vmem:[%s7253_s8 + $0x120] sm:$0xff] }
 0x433   : > { %4626 = vmatprep.subr.bf16.mxu0 %v4889_v36  ;;  %v4669_v4 = vpack.c.bf16 %v3745_v3, %v3744_v1  ;;  %v3768_v1 = vld [vmem:[%s7253_s8 + $0x1d8] sm:$0xff] }
 0x436   : > { %4628 = vmatpush1.bf16.msra.mxu0 %v4627_v5  ;;  %v3746_v5 = vld [vmem:[%s7253_s8 + $0x130] sm:$0xff] }
 0x437   : > { %4629 = vmatprep.subr.bf16.mxu0 %v4889_v36  ;;  %v4672_v61 = vpack.c.bf16 %v3747_v8, %v3746_v5  ;;  %v3770_v8 = vld [vmem:[%s7253_s8 + $0x1e0] sm:$0xff] }
 0x43a   : > { %4631 = vmatpush1.bf16.msra.mxu0 %v4630_v12 }
 0x43b   : > { %4632 = vmatprep.subr.bf16.mxu0 %v4889_v36 }
 0x43e   : > { %4634 = vmatpush1.bf16.msra.mxu0 %v4633_v15  ;;  %v3108_v15 = vld [vmem:[%s7255_s10 + $0x10] sm:$0xff] }
 0x43f   : > { %4635 = vmatprep.subr.bf16.mxu0 %v4889_v36  ;;  %v4768_v18 = vpack.c.bf16 %v3109_v9, %v3108_v15  ;;  %v3772_v15 = vld [vmem:[%s7253_s8 + $0x1f0] sm:$0xff] }
 0x441   : > { %4769 = vmatpush3.bf16.msra.mxu1 %v4768_v18  ;;  %v3776_v18 = vld [vmem:[%s7253_s8 + $0x210] sm:$0xff] }
 0x442   : > { %4637 = vmatpush1.bf16.msra.mxu0 %v4636_v6  ;;  %v3749_v6 = vld [vmem:[%s7253_s8 + $0x140] sm:$0xff]  ;;  %4770 = vmatprep.subr.bf16.mxu1 %v4889_v36 }
 0x443   : > { %4638 = vmatprep.subr.bf16.mxu0 %v4889_v36 }
 0x446   : > { %4640 = vmatpush1.bf16.msra.mxu0 %v4639_v17 }
 0x447   : > { %4641 = vmatprep.subr.bf16.mxu0 %v4889_v36 }
 0x44a   : > { %4643 = vmatpush1.bf16.msra.mxu0 %v4642_v21  ;;  %v3111_v21 = vld [vmem:[%s7255_s10 + $0x28] sm:$0xff] }
 0x44b   : > { %4644 = vmatprep.subr.bf16.mxu0 %v4889_v36 }
 0x4f8   : > { %v2541_v23 = vpop.f32.mrb[8].mxu0 }
 0x4f9   : > { %v2552_v24 = vmax.f32 %v2424_v48, %v2541_v23  ;;  %v2543_v25 = vpop.f32.mrb[9].mxu0  ;;  %v3735_v48 = vld [vmem:[%s7253_s8 + $0xd8] sm:$0xff]  ;;  %v4675_v23 = vpack.c.bf16 %v3750_v16, %v3749_v6  ;;  %v3774_v6 = vld [vmem:[%s7253_s8 + $0x200] sm:$0xff]  ;;  %v3775_v16 = vld [vmem:[%s7253_s8 + $0x208] sm:$0xff] }
 0x4fa   : > { %v2553_v26 = vmax.f32 %v2425_v58, %v2543_v25  ;;  %v3733_v58 = vld [vmem:[%s7253_s8 + $0xc8] sm:$0xff]  ;;  %v4654_v49 = vpack.c.bf16 %v3735_v48, %v3734_v47  ;;  %v3751_v25 = vld [vmem:[%s7253_s8 + $0x150] sm:$0xff] }
 0x4fb   : > { %2556 = vst [vmem:[#allocation3] sm:$0xff] %v2552_v24  ;;  %v4651_v46 = vpack.c.bf16 %v3733_v58, %v3732_v45  ;;  %v3118_v58 = vld [vmem:[%s7255_s10 + $0x60] sm:$0xff]  ;;  %v3759_v48 = vld [vmem:[%s7253_s8 + $0x190] sm:$0xff] }
 0x4fc   : > { %2557 = vst.msk [vmem:[#allocation3 + $0x8] sm:$0xff] %vm2468_vm6, %v2553_v26  ;;  %v2547_v27 = vpop.f32.mrb[10].mxu0  ;;  %v3752_v26 = vld [vmem:[%s7253_s8 + $0x158] sm:$0xff] }
 0x4fd   : > { %v2554_v28 = vmax.f32 %v2426_v55, %v2547_v27  ;;  %v2549_v29 = vpop.f32.mrb[11].mxu0  ;;  %v3740_v55 = vld [vmem:[%s7253_s8 + $0x100] sm:$0xff]  ;;  %v4678_v31 = vpack.c.bf16 %v3752_v26, %v3751_v25  ;;  %v3780_v26 = vld [vmem:[%s7253_s8 + $0x230] sm:$0xff] }
 0x4fe   : > { %v2555_v30 = vmax.f32 %v2427_v53, %v2549_v29  ;;  %v3739_v53 = vld [vmem:[%s7253_s8 + $0xf8] sm:$0xff]  ;;  %v4663_v56 = vpack.c.bf16 %v3741_v59, %v3740_v55  ;;  %v3112_v29 = vld [vmem:[%s7255_s10 + $0x30] sm:$0xff] }
 0x4ff   : > { %2558 = vst [vmem:[#allocation3 + $0x10] sm:$0x3] %v2554_v28  ;;  %v4660_v54 = vpack.c.bf16 %v3739_v53, %v3738_v52  ;;  %v4771_v28 = vpack.c.bf16 %v3111_v21, %v3110_v19  ;;  %v3762_v52 = vld [vmem:[%s7253_s8 + $0x1a8] sm:$0xff]  ;;  %v3764_v55 = vld [vmem:[%s7253_s8 + $0x1b8] sm:$0xff] }
 0x500   : > { %2560 = vst.msk [vmem:[#allocation3 + $0x18] sm:$0x3] %vm2559_vm7, %v2555_v30  ;;  %v3113_v30 = vld [vmem:[%s7255_s10 + $0x38] sm:$0xff] }
 0x501   : > { %4772 = vmatpush3.bf16.msra.mxu1 %v4771_v28  ;;  %v3777_v19 = vld [vmem:[%s7253_s8 + $0x218] sm:$0xff] }
 0x502   : > { %4773 = vmatprep.subr.bf16.mxu1 %v4889_v36  ;;  %v4714_v21 = vpack.c.bf16 %v3777_v19, %v3776_v18  ;;  %v3195_v18 = vld [vmem:[%s7257_s12 + $0x8] sm:$0xff]  ;;  %v3196_v19 = vld [vmem:[%s7257_s12 + $0x10] sm:$0xff] }
 0x503   : > { %v2562_v63 = vld [vmem:[#allocation3] ss:$8 sm:$0x3]  ;;  %v2564_v33 = vld [vmem:[#allocation3 + $0x1] ss:$8 sm:$0x3] }
 0x504   : > { %v2565_v11 = vmax.f32 %v2562_v63, %v2564_v33  ;;  %v2670_v34 = vld [vmem:[#allocation3 + $0x2] ss:$8 sm:$0x3]  ;;  %v2672_v35 = vld [vmem:[#allocation3 + $0x3] ss:$8 sm:$0x3]  ;;  %v4774_v33 = vpack.c.bf16 %v3113_v30, %v3112_v29 }
 0x505   : > { %v6814_v37 = vmax.f32 %v2670_v34, %v2672_v35  ;;  %v2779_v10 = vld [vmem:[#allocation3 + $0x4] ss:$8 sm:$0x3]  ;;  %v2781_v12 = vld [vmem:[#allocation3 + $0x5] ss:$8 sm:$0x3] }
 0x506   : > { %v2590_v38 = vrot.slane %v2565_v11, %v5813_v20  ;;  %v2594_v39 = vrot.slane %v2565_v11, %v5818_v22  ;;  %v6903_v17 = vmax.f32 %v2779_v10, %v2781_v12  ;;  %v3754_v63 = vld [vmem:[%s7253_s8 + $0x168] sm:$0xff]  ;;  %v3114_v11 = vld [vmem:[%s7255_s10 + $0x40] sm:$0xff]  ;;  %4775 = vmatpush3.bf16.msra.mxu1 %v4774_v33 }
 0x507   : > { %v2703_v43 = vrot.slane %v6814_v37, %v5818_v22  ;;  %v2699_v24 = vrot.slane %v6814_v37, %v5813_v20  ;;  %v3115_v34 = vld [vmem:[%s7255_s10 + $0x48] sm:$0xff]  ;;  %v4681_v35 = vpack.c.bf16 %v3754_v63, %v3753_v32  ;;  %v3755_v37 = vld [vmem:[%s7253_s8 + $0x170] sm:$0xff]  ;;  %4776 = vmatprep.subr.bf16.mxu1 %v4889_v36  ;;  %v3782_v29 = vld [vmem:[%s7253_s8 + $0x240] sm:$0xff] }
 0x508   : > { %3727 = vmatprep.mubr.msk.f32.mxu0 %vm2468_vm6, %v2594_v39  ;;  %v2812_v27 = vrot.slane %v6903_v17, %v5818_v22  ;;  %v4777_v39 = vpack.c.bf16 %v3115_v34, %v3114_v11  ;;  %v2888_v3 = vld [vmem:[#allocation3 + $0x6] ss:$8 sm:$0x3]  ;;  %v2808_v14 = vrot.slane %v6903_v17, %v5813_v20  ;;  %v4711_v17 = vpack.c.bf16 %v3775_v16, %v3774_v6  ;;  %v3784_v32 = vld [vmem:[%s7253_s8 + $0x250] sm:$0xff]  ;;  %v3785_v63 = vld [vmem:[%s7253_s8 + $0x258] sm:$0xff] }
 0x509   : > { %2663 = vmatmul.mubr.f32.vlgmr.msra.gmra.mrb[12].mxu0 %v2590_v38  ;;  %v3756_v38 = vld [vmem:[%s7253_s8 + $0x178] sm:$0xff]  ;;  %v3771_v10 = vld [vmem:[%s7253_s8 + $0x1e8] sm:$0xff]  ;;  %v4726_v33 = vpack.c.bf16 %v3785_v63, %v3784_v32  ;;  %v3786_v11 = vld [vmem:[%s7253_s8 + $0x260] sm:$0xff] }
 0x50a   : > { %4646 = vmatpush1.bf16.msra.mxu0 %v4645_v40  ;;  %3748 = vmatprep.mubr.msk.f32.mxu0 %vm2468_vm6, %v2703_v43  ;;  %v3116_v40 = vld [vmem:[%s7255_s10 + $0x50] sm:$0xff]  ;;  %v4684_v42 = vpack.c.bf16 %v3756_v38, %v3755_v37  ;;  %v3757_v43 = vld [vmem:[%s7253_s8 + $0x180] sm:$0xff]  ;;  %v4705_v13 = vpack.c.bf16 %v3771_v10, %v3770_v8  ;;  %v3783_v30 = vld [vmem:[%s7253_s8 + $0x248] sm:$0xff] }
 0x50b   : > { %4647 = vmatprep.subr.bf16.mxu0 %v4889_v36  ;;  %4778 = vmatpush3.bf16.msra.mxu1 %v4777_v39  ;;  %v4780_v45 = vpack.c.bf16 %v3117_v41, %v3116_v40  ;;  %v3787_v34 = vld [vmem:[%s7253_s8 + $0x268] sm:$0xff]  ;;  %v3788_v37 = vld [vmem:[%s7253_s8 + $0x270] sm:$0xff]  ;;  %v3789_v38 = vld [vmem:[%s7253_s8 + $0x278] sm:$0xff] }
 0x50c   : > { %4779 = vmatprep.subr.bf16.mxu1 %v4889_v36  ;;  %v2997_v39 = vld [vmem:[#allocation3 + $0x10] ss:$8 sm:$0x3]  ;;  %v2999_v40 = vld [vmem:[#allocation3 + $0x11] ss:$8 sm:$0x3]  ;;  %v4732_v41 = vpack.c.bf16 %v3789_v38, %v3788_v37 }
 0x50d   : > { %v3807_v10 = vld [vmem:[%s7253_s8 + $0x300] sm:$0xff]  ;;  %v3121_v6 = vld [vmem:[%s7255_s10 + $0x78] sm:$0xff]  ;;  %v3204_v63 = vld [vmem:[%s7257_s12 + $0x50] sm:$0xff] }
 0x50e   : > { %4649 = vmatpush1.bf16.msra.mxu0 %v4648_v44  ;;  %v3758_v44 = vld [vmem:[%s7253_s8 + $0x188] sm:$0xff]  ;;  %v2561_v38 = vld [vmem:[%s7254_s9] sm:$0x1] }
 0x50f   : > { %4650 = vmatprep.subr.bf16.mxu0 %v4889_v36  ;;  %v4687_v47 = vpack.c.bf16 %v3758_v44, %v3757_v43  ;;  %4781 = vmatpush3.bf16.msra.mxu1 %v4780_v45  ;;  %v3792_v43 = vld [vmem:[%s7253_s8 + $0x288] sm:$0xff]  ;;  %v3000_v44 = vmax.f32 %v2997_v39, %v2999_v40 }
 0x510   : > { %4782 = vmatprep.subr.bf16.mxu1 %v4889_v36 }
 0x512   : > { %4652 = vmatpush1.bf16.msra.mxu0 %v4651_v46  ;;  %v3119_v46 = vld [vmem:[%s7255_s10 + $0x68] sm:$0xff] }
 0x513   : > { %4653 = vmatprep.subr.bf16.mxu0 %v4889_v36  ;;  %v4783_v50 = vpack.c.bf16 %v3119_v46, %v3118_v58  ;;  %v3793_v46 = vld [vmem:[%s7253_s8 + $0x290] sm:$0xff] }
 0x515   : > { %4784 = vmatpush3.bf16.msra.mxu1 %v4783_v50  ;;  %v3795_v50 = vld [vmem:[%s7253_s8 + $0x2a0] sm:$0xff] }
 0x516   : > { %4655 = vmatpush1.bf16.msra.mxu0 %v4654_v49  ;;  %v3760_v49 = vld [vmem:[%s7253_s8 + $0x198] sm:$0xff]  ;;  %4785 = vmatprep.subr.bf16.mxu1 %v4889_v36 }
 0x517   : > { %4656 = vmatprep.subr.bf16.mxu0 %v4889_v36  ;;  %v4690_v2 = vpack.c.bf16 %v3760_v49, %v3759_v48  ;;  %v3030_v48 = vrot.slane %v3000_v44, %v5818_v22 }
 0x51a   : > { %4658 = vmatpush1.bf16.msra.mxu0 %v4657_v51  ;;  %v3761_v51 = vld [vmem:[%s7253_s8 + $0x1a0] sm:$0xff] }
 0x51b   : > { %4659 = vmatprep.subr.bf16.mxu0 %v4889_v36  ;;  %v4693_v53 = vpack.c.bf16 %v3762_v52, %v3761_v51  ;;  %v3798_v52 = vld [vmem:[%s7253_s8 + $0x2b8] sm:$0xff] }
 0x51e   : > { %4661 = vmatpush1.bf16.msra.mxu0 %v4660_v54  ;;  %v3763_v54 = vld [vmem:[%s7253_s8 + $0x1b0] sm:$0xff] }
 0x51f   : > { %4662 = vmatprep.subr.bf16.mxu0 %v4889_v36  ;;  %v4696_v59 = vpack.c.bf16 %v3764_v55, %v3763_v54  ;;  %v3799_v54 = vld [vmem:[%s7253_s8 + $0x2c0] sm:$0xff]  ;;  %v3800_v55 = vld [vmem:[%s7253_s8 + $0x2c8] sm:$0xff] }
 0x522   : > { %4664 = vmatpush1.bf16.msra.mxu0 %v4663_v56  ;;  %v3765_v56 = vld [vmem:[%s7253_s8 + $0x1c0] sm:$0xff] }
 0x523   : > { %4665 = vmatprep.subr.bf16.mxu0 %v4889_v36  ;;  %v4699_v62 = vpack.c.bf16 %v3766_v60, %v3765_v56  ;;  %v3801_v56 = vld [vmem:[%s7253_s8 + $0x2d0] sm:$0xff]  ;;  %v3802_v60 = vld [vmem:[%s7253_s8 + $0x2d8] sm:$0xff] }
 0x526   : > { %4667 = vmatpush1.bf16.msra.mxu0 %v4666_v0  ;;  %v3767_v0 = vld [vmem:[%s7253_s8 + $0x1d0] sm:$0xff] }
 0x527   : > { %4668 = vmatprep.subr.bf16.mxu0 %v4889_v36  ;;  %v4702_v5 = vpack.c.bf16 %v3768_v1, %v3767_v0  ;;  %v3803_v0 = vld [vmem:[%s7253_s8 + $0x2e0] sm:$0xff]  ;;  %v3804_v1 = vld [vmem:[%s7253_s8 + $0x2e8] sm:$0xff] }
 0x52a   : > { %4670 = vmatpush1.bf16.msra.mxu0 %v4669_v4  ;;  %v2890_v4 = vld [vmem:[#allocation3 + $0x7] ss:$8 sm:$0x3] }
 0x52b   : > { %4671 = vmatprep.subr.bf16.mxu0 %v4889_v36  ;;  %v7017_v12 = vmax.f32 %v2888_v3, %v2890_v4  ;;  %v4753_v3 = vpack.c.bf16 %v3804_v1, %v3803_v0  ;;  %v3805_v4 = vld [vmem:[%s7253_s8 + $0x2f0] sm:$0xff] }
 0x52d   : > { %v2921_v57 = vrot.slane %v7017_v12, %v5818_v22  ;;  %v2917_v58 = vrot.slane %v7017_v12, %v5813_v20  ;;  %v3797_v22 = vld [vmem:[%s7253_s8 + $0x2b0] sm:$0xff]  ;;  %v3808_v12 = vld [vmem:[%s7253_s8 + $0x308] sm:$0xff] }
 0x52e   : > { %4673 = vmatpush1.bf16.msra.mxu0 %v4672_v61  ;;  %v3773_v61 = vld [vmem:[%s7253_s8 + $0x1f8] sm:$0xff] }
 0x52f   : > { %4674 = vmatprep.subr.bf16.mxu0 %v4889_v36  ;;  %v4708_v9 = vpack.c.bf16 %v3773_v61, %v3772_v15  ;;  %v3810_v15 = vld [vmem:[%s7253_s8 + $0x318] sm:$0xff] }
 0x531   : > { %2772 = vmatmul.mubr.f32.vlgmr.msra.gmra.mrb[12].mxu0 %v2699_v24  ;;  %v3779_v24 = vld [vmem:[%s7253_s8 + $0x228] sm:$0xff] }
 0x532   : > { %4676 = vmatpush1.bf16.msra.mxu0 %v4675_v23  ;;  %3769 = vmatprep.mubr.msk.f32.mxu0 %vm2468_vm6, %v2812_v27  ;;  %v3778_v23 = vld [vmem:[%s7253_s8 + $0x220] sm:$0xff]  ;;  %v3781_v27 = vld [vmem:[%s7253_s8 + $0x238] sm:$0xff] }
 0x533   : > { %4677 = vmatprep.subr.bf16.mxu0 %v4889_v36  ;;  %v4717_v25 = vpack.c.bf16 %v3779_v24, %v3778_v23  ;;  %v4720_v28 = vpack.c.bf16 %v3781_v27, %v3780_v26  ;;  %v3197_v23 = vld [vmem:[%s7257_s12 + $0x18] sm:$0xff]  ;;  %v3198_v24 = vld [vmem:[%s7257_s12 + $0x20] sm:$0xff]  ;;  %v3200_v27 = vld [vmem:[%s7257_s12 + $0x30] sm:$0xff] }
 0x536   : > { %4679 = vmatpush1.bf16.msra.mxu0 %v4678_v31  ;;  %v4723_v31 = vpack.c.bf16 %v3783_v30, %v3782_v29  ;;  %v3202_v30 = vld [vmem:[%s7257_s12 + $0x40] sm:$0xff] }
 0x537   : > { %4680 = vmatprep.subr.bf16.mxu0 %v4889_v36 }
 0x53a   : > { %4682 = vmatpush1.bf16.msra.mxu0 %v4681_v35  ;;  %v4729_v35 = vpack.c.bf16 %v3787_v34, %v3786_v11  ;;  %v3206_v34 = vld [vmem:[%s7257_s12 + $0x60] sm:$0xff] }
 0x53b   : > { %4683 = vmatprep.subr.bf16.mxu0 %v4889_v36 }
 0x53e   : > { %4685 = vmatpush1.bf16.msra.mxu0 %v4684_v42  ;;  %v3791_v42 = vld [vmem:[%s7253_s8 + $0x280] sm:$0xff] }
 0x53f   : > { %4686 = vmatprep.subr.bf16.mxu0 %v4889_v36  ;;  %v4735_v45 = vpack.c.bf16 %v3792_v43, %v3791_v42  ;;  %v3208_v43 = vld [vmem:[%s7257_s12 + $0x70] sm:$0xff] }
 0x542   : > { %4688 = vmatpush1.bf16.msra.mxu0 %v4687_v47  ;;  %v3794_v47 = vld [vmem:[%s7253_s8 + $0x298] sm:$0xff] }
 0x543   : > { %4689 = vmatprep.subr.bf16.mxu0 %v4889_v36  ;;  %v4738_v49 = vpack.c.bf16 %v3794_v47, %v3793_v46 }
 0x546   : > { %4691 = vmatpush1.bf16.msra.mxu0 %v4690_v2  ;;  %v3796_v2 = vld [vmem:[%s7253_s8 + $0x2a8] sm:$0xff] }
 0x547   : > { %4692 = vmatprep.subr.bf16.mxu0 %v4889_v36  ;;  %v4741_v51 = vpack.c.bf16 %v3796_v2, %v3795_v50 }
 0x54a   : > { %4694 = vmatpush1.bf16.msra.mxu0 %v4693_v53  ;;  %v4744_v53 = vpack.c.bf16 %v3798_v52, %v3797_v22 }
 0x54b   : > { %4695 = vmatprep.subr.bf16.mxu0 %v4889_v36 }
 0x54e   : > { %4697 = vmatpush1.bf16.msra.mxu0 %v4696_v59  ;;  %v4747_v59 = vpack.c.bf16 %v3800_v55, %v3799_v54 }
 0x54f   : > { %4698 = vmatprep.subr.bf16.mxu0 %v4889_v36 }
 0x552   : > { %4700 = vmatpush1.bf16.msra.mxu0 %v4699_v62  ;;  %v4750_v62 = vpack.c.bf16 %v3802_v60, %v3801_v56 }
 0x553   : > { %4701 = vmatprep.subr.bf16.mxu0 %v4889_v36 }
 0x556   : > { %4703 = vmatpush1.bf16.msra.mxu0 %v4702_v5  ;;  %v3806_v5 = vld [vmem:[%s7253_s8 + $0x2f8] sm:$0xff] }
 0x557   : > { %4704 = vmatprep.subr.bf16.mxu0 %v4889_v36  ;;  %v4756_v8 = vpack.c.bf16 %v3806_v5, %v3805_v4 }
 0x559   : > { %2881 = vmatmul.mubr.f32.vlgmr.msra.gmra.mrb[12].mxu0 %v2808_v14  ;;  %v3809_v14 = vld [vmem:[%s7253_s8 + $0x310] sm:$0xff] }
 0x55a   : > { %4706 = vmatpush1.bf16.msra.mxu0 %v4705_v13  ;;  %3790 = vmatprep.mubr.msk.f32.mxu0 %vm2468_vm6, %v2921_v57  ;;  %v4759_v13 = vpack.c.bf16 %v3808_v12, %v3807_v10  ;;  %v4762_v61 = vpack.c.bf16 %v3810_v15, %v3809_v14  ;;  %v3026_v57 = vrot.slane %v3000_v44, %v5813_v20  ;;  %v3209_v44 = vld [vmem:[%s7257_s12 + $0x78] sm:$0xff] }
 0x55b   : > { %4707 = vmatprep.subr.bf16.mxu0 %v4889_v36 }
 0x55e   : > { %4709 = vmatpush1.bf16.msra.mxu0 %v4708_v9  ;;  %v3120_v9 = vld [vmem:[%s7255_s10 + $0x70] sm:$0xff] }
 0x55f   : > { %4710 = vmatprep.subr.bf16.mxu0 %v4889_v36  ;;  %v4786_v16 = vpack.c.bf16 %v3121_v6, %v3120_v9 }
 0x561   : > { %4787 = vmatpush3.bf16.msra.mxu1 %v4786_v16 }
 0x562   : > { %4712 = vmatpush1.bf16.msra.mxu0 %v4711_v17  ;;  %v3194_v17 = vld [vmem:[%s7257_s12] sm:$0xff] }
 0x563   : > { %4713 = vmatprep.subr.bf16.mxu0 %v4889_v36 }
 0x566   : > { %4715 = vmatpush1.bf16.msra.mxu0 %v4714_v21  ;;  %v4789_v21 = vpack.c.bf16 %v3195_v18, %v3194_v17 }
 0x567   : > { %4716 = vmatprep.subr.bf16.mxu0 %v4889_v36 }
 0x56a   : > { %4718 = vmatpush1.bf16.msra.mxu0 %v4717_v25  ;;  %v3199_v25 = vld [vmem:[%s7257_s12 + $0x28] sm:$0xff] }
 0x56b   : > { %4719 = vmatprep.subr.bf16.mxu0 %v4889_v36  ;;  %v4795_v26 = vpack.c.bf16 %v3199_v25, %v3198_v24 }
 0x56e   : > { %4721 = vmatpush1.bf16.msra.mxu0 %v4720_v28  ;;  %v3201_v28 = vld [vmem:[%s7257_s12 + $0x38] sm:$0xff] }
 0x56f   : > { %4722 = vmatprep.subr.bf16.mxu0 %v4889_v36  ;;  %v4798_v29 = vpack.c.bf16 %v3201_v28, %v3200_v27 }
 0x572   : > { %4724 = vmatpush1.bf16.msra.mxu0 %v4723_v31  ;;  %v3203_v31 = vld [vmem:[%s7257_s12 + $0x48] sm:$0xff] }
 0x573   : > { %4725 = vmatprep.subr.bf16.mxu0 %v4889_v36  ;;  %v4801_v32 = vpack.c.bf16 %v3203_v31, %v3202_v30 }
 0x576   : > { %4727 = vmatpush1.bf16.msra.mxu0 %v4726_v33  ;;  %v3205_v33 = vld [vmem:[%s7257_s12 + $0x58] sm:$0xff] }
 0x577   : > { %4728 = vmatprep.subr.bf16.mxu0 %v4889_v36  ;;  %v4804_v11 = vpack.c.bf16 %v3205_v33, %v3204_v63 }
 0x57a   : > { %4730 = vmatpush1.bf16.msra.mxu0 %v4729_v35  ;;  %v3207_v35 = vld [vmem:[%s7257_s12 + $0x68] sm:$0xff] }
 0x57b   : > { %4731 = vmatprep.subr.bf16.mxu0 %v4889_v36  ;;  %v4807_v37 = vpack.c.bf16 %v3207_v35, %v3206_v34 }
 0x57e   : > { %4733 = vmatpush1.bf16.msra.mxu0 %v4732_v41 }
 0x57f   : > { %4734 = vmatprep.subr.bf16.mxu0 %v4889_v36 }
 0x581   : > { %2990 = vmatmul.mubr.f32.vlgmr.msra.gmra.mrb[12].mxu0 %v2917_v58 }
 0x582   : > { %4736 = vmatpush1.bf16.msra.mxu0 %v4735_v45  ;;  %3811 = vmatprep.mubr.msk.f32.mxu0 %vm2468_vm6, %v3030_v48  ;;  %v3122_v45 = vld [vmem:[%s7256_s11] sm:$0x1] }
 0x583   : > { %4737 = vmatprep.subr.bf16.mxu0 %v4889_v36 }
 0x586   : > { %4739 = vmatpush1.bf16.msra.mxu0 %v4738_v49  ;;  %v3210_v49 = vld [vmem:[%s7258_s13] sm:$0x1] }
 0x587   : > { %4740 = vmatprep.subr.bf16.mxu0 %v4889_v36 }
 0x58a   : > { %4742 = vmatpush1.bf16.msra.mxu0 %v4741_v51 }
 0x58b   : > { %4743 = vmatprep.subr.bf16.mxu0 %v4889_v36 }
 0x58e   : > { %4745 = vmatpush1.bf16.msra.mxu0 %v4744_v53 }
 0x58f   : > { %4746 = vmatprep.subr.bf16.mxu0 %v4889_v36 }
 0x592   : > { %4748 = vmatpush1.bf16.msra.mxu0 %v4747_v59 }
 0x593   : > { %4749 = vmatprep.subr.bf16.mxu0 %v4889_v36 }
 0x596   : > { %4751 = vmatpush1.bf16.msra.mxu0 %v4750_v62 }
 0x597   : > { %4752 = vmatprep.subr.bf16.mxu0 %v4889_v36 }
 0x59a   : > { %4754 = vmatpush1.bf16.msra.mxu0 %v4753_v3 }
 0x59b   : > { %4755 = vmatprep.subr.bf16.mxu0 %v4889_v36 }
 0x59e   : > { %4757 = vmatpush1.bf16.msra.mxu0 %v4756_v8 }
 0x59f   : > { %4758 = vmatprep.subr.bf16.mxu0 %v4889_v36 }
 0x5a2   : > { %4760 = vmatpush1.bf16.msra.mxu0 %v4759_v13 }
 0x5a3   : > { %4761 = vmatprep.subr.bf16.mxu0 %v4889_v36 }
 0x5a6   : > { %4763 = vmatpush1.bf16.msra.mxu0 %v4762_v61 }
 0x5a7   : > { %4788 = vmatprep.subr.bf16.mxu0 %v4889_v36 }
 0x5a9   : > { %3099 = vmatmul.mubr.f32.vlgmr.msra.gmra.mrb[12].mxu0 %v3026_v57 }
 0x5aa   : > { %3915 = vmatprep.mubr.msk.f32.mxu0 %vm4890_vm8, %v4888_v7  ;;  %4790 = vmatpush3.bf16.msra.mxu0 %v4789_v21  ;;  %v4792_v7 = vpack.c.bf16 %v3197_v23, %v3196_v19 }
 0x5ab   : > { %4791 = vmatprep.subr.bf16.mxu0 %v4889_v36 }
 0x5ae   : > { %4793 = vmatpush3.bf16.msra.mxu0 %v4792_v7 }
 0x5af   : > { %4794 = vmatprep.subr.bf16.mxu0 %v4889_v36 }
 0x5b2   : > { %4796 = vmatpush3.bf16.msra.mxu0 %v4795_v26 }
 0x5b3   : > { %4797 = vmatprep.subr.bf16.mxu0 %v4889_v36 }
 0x5b6   : > { %4799 = vmatpush3.bf16.msra.mxu0 %v4798_v29 }
 0x5b7   : > { %4800 = vmatprep.subr.bf16.mxu0 %v4889_v36 }
 0x5ba   : > { %4802 = vmatpush3.bf16.msra.mxu0 %v4801_v32 }
 0x5bb   : > { %4803 = vmatprep.subr.bf16.mxu0 %v4889_v36 }
 0x5be   : > { %4805 = vmatpush3.bf16.msra.mxu0 %v4804_v11 }
 0x5bf   : > { %4806 = vmatprep.subr.bf16.mxu0 %v4889_v36 }
 0x5c2   : > { %4808 = vmatpush3.bf16.msra.mxu0 %v4807_v37 }
 0x5c3   : > { %4809 = vmatprep.subr.bf16.mxu0 %v4889_v36  ;;  %v4810_v36 = vpack.c.bf16 %v3209_v44, %v3208_v43 }
 0x5c6   : > { %4811 = vmatpush3.bf16.msra.mxu0 %v4810_v36 }
 0x67c   : > { %v3100_v39 = vpop.f32.mrb[12].mxu0 }
 0x67d   : > { %v4812_v40 = vadd.f32 %v3100_v39, %v2561_v38  ;;  %v3102_v41 = vpop.f32.mrb[13].mxu0 }
 0x67f   : > { %v3105_v42 = vmax.f32 %v4812_v40, 0.0 }
 0x681   : > { %3881 = vmatmul.mubr.f32.vlgmr.msra.gmra.mrb[8].mxu1 %v3105_v42 }
 0x754   : > { %v3189_v58 = vpop.f32.mrb[8].mxu1 }
 0x755   : > { %v3190_v46 = vadd.f32 %v3189_v58, %v3122_v45  ;;  %v3882_v47 = vpop.f32.mrb[9].mxu1 }
 0x757   : > { %v3193_v48 = vmax.f32 %v3190_v46, 0.0 }
 0x759   : > { %3916 = vmatmul.mubr.f32.vlgmr.msra.gmra.mrb[14].mxu0 %v3193_v48 }
 0x82c   : > { %v3277_v50 = vpop.f32.mrb[14].mxu0 }
 0x82d   : > { %v3278_v2 = vadd.f32 %v3277_v50, %v3210_v49  ;;  %v3917_v51 = vpop.f32.mrb[15].mxu0 }
 0x82f   : > { %v3284_v22 = vrot.slane %v3278_v2, %v5813_v20 }
 0x831   : > { %3285 = vst [vmem:[%s489_s26] sm:$0xff] %v3284_v22 }
 0x832 PF: > { %s24_s29 = sadd.s32 1, %s4886_s29  }
 0x833   : > { %p21_p5 = scmp.ge.s32.totalorder %s24_s29, 4  }
 0x835   :  { %23 = sbr.rel (!%p21_p5) target bundleno = 1 (0x1), region = 130 }

</bundles_post_ra>
